<compile_context>
chip_gen: v7x
topology: tpu7x:2x2x1
jax: 0.10.0
libtpu: 0.0.40
codegen_flags: <defaults>
</compile_context>

<pallas_src>
import functools

import jax
import jax.numpy as jnp
from jax import lax
from jax.experimental import pallas as pl
from jax.experimental.pallas import tpu as pltpu

GUARD = 16  # extra flattened rows so the kx=2 shift of the last tile stays in-bounds


def repconv_kernel(x_ref, w_ref, b_ref, o_ref, xc_ref, acc_ref, *, Wp):
    """One (image, row-tile) grid step of the fused RepConv.

    x_ref  : (1, 1, TB, C1p)      bf16  haloed, row-flattened input window
                                        (TB = TW + 2*Wp + GUARD)
    w_ref  : (3, 3*C1p, C2p)      bf16  fused weights, w[ky, kx*C1p + c1, c2]
    b_ref  : (1, C2p)             f32   summed fused biases of both branches
    o_ref  : (1, 1, TW, C2p)      bf16  output rows (cols >= W discarded outside)
    xc_ref : (TW + 2*Wp, 3*C1p)   bf16  scratch: im2col-over-kx operand
    acc_ref: (TW, C2p)            f32   scratch: accumulator
    """
    C1p = x_ref.shape[-1]
    TW = o_ref.shape[-2]
    nrows = TW + 2 * Wp

    # im2col over kx only: xc[s, kx*C1p + c] = x[s + kx, c].
    # Column slabs are lane-aligned (multiples of 128); the kx = 1, 2 row
    # shifts happen once here instead of inside 6 of the 9 conv taps.
    xc_ref[:, 0:C1p] = x_ref[0, 0, 0:nrows, :]
    xc_ref[:, C1p:2 * C1p] = x_ref[0, 0, 1:nrows + 1, :]
    xc_ref[:, 2 * C1p:3 * C1p] = x_ref[0, 0, 2:nrows + 2, :]

    # 3 MXU matmuls with K = 3*C1p and sublane-aligned row offsets (ky * Wp),
    # accumulated in f32 into a single scratch ref.
    # TODO(synk): on v5e (128-deep MXU, single vst slot) a 9-tap K=C1p variant
    # without the xc build may be preferable; keep the folded form for v6e/v7x.
    acc_ref[...] = jnp.dot(xc_ref[0:TW, :], w_ref[0],
                           preferred_element_type=jnp.float32)
    acc_ref[...] += jnp.dot(xc_ref[Wp:Wp + TW, :], w_ref[1],
                            preferred_element_type=jnp.float32)
    acc_ref[...] += jnp.dot(xc_ref[2 * Wp:2 * Wp + TW, :], w_ref[2],
                            preferred_element_type=jnp.float32)

    y = acc_ref[...] + b_ref[...]                    # bias add, f32
    o_ref[0, 0] = (y * jax.nn.sigmoid(y)).astype(o_ref.dtype)   # SiLU -> bf16


def _round_up(v, m):
    return (v + m - 1) // m * m


def _vmem_limit_bytes():
    """Per-generation VMEM request (headroom below physical VMEM)."""
    kind = ""
    try:
        kind = jax.devices()[0].device_kind.lower()
    except Exception:
        pass
    if "v5" in kind or "v6" in kind:
        return 100 * 1024 * 1024        # 128 MiB physical on v5e/v5p/v6e
    return 48 * 1024 * 1024             # v7x: 64 MiB physical per TensorCore


def _tile_vmem_bytes(th, Wp, C1p, C2p):
    tw = th * Wp
    tb = (th + 2) * Wp + GUARD
    return (2 * tb * C1p * 2                 # input window, double-buffered, bf16
            + 2 * tw * C2p * 2               # output block, double-buffered, bf16
            + (tw + 2 * Wp) * 3 * C1p * 2    # im2col scratch, bf16
            + tw * C2p * 4                   # f32 accumulator scratch
            + 2 * 9 * C1p * C2p * 2          # weights (double-buffered)
            + 2 * C2p * 4)                   # bias


def _pick_row_tile(H, Wp, C1p, C2p, N, budget_bytes):
    """Largest row-tile whose working set fits the budget; keep N*R even."""
    th = 1
    for cand in range(1, H + 1):
        if _tile_vmem_bytes(cand, Wp, C1p, C2p) <= budget_bytes:
            th = cand
    r = pl.cdiv(H, th)
    if (N * r) % 2 == 1 and r < H:
        # Split once more so both v7x TensorCores get work ("parallel" grid),
        # but never create an all-padding tile.
        r2, th2 = r + 1, pl.cdiv(H, r + 1)
        if (r2 - 1) * th2 < H:
            r, th = r2, th2
    return th, r


def fuse_bn(w_oihw, gamma, beta, mean, var, eps=1e-5):
    """Fold eval-mode BatchNorm2d into conv weight (OIHW) and bias."""
    scale = gamma / jnp.sqrt(var + eps)                   # (C2,)
    return w_oihw * scale[:, None, None, None], beta - mean * scale


@functools.partial(jax.jit, static_argnames=("row_tile", "out_dtype"))
def repconv_forward(x_nchw, params, row_tile=None, out_dtype=jnp.bfloat16):
    """Full RepConv forward (eval mode); NCHW in, NCHW out (bf16 by default)."""
    N, C1, H, W = x_nchw.shape
    C2 = params["w3"].shape[0]

    # --- fold BN into each branch, then the 1x1 into the 3x3 centre tap ---
    w3_f, b3 = fuse_bn(params["w3"], params["g3"], params["b3"],
                       params["m3"], params["v3"])
    w1_f, b1 = fuse_bn(params["w1"], params["g1"], params["b1"],
                       params["m1"], params["v1"])
    w3_f = w3_f.at[:, :, 1, 1].add(w1_f[:, :, 0, 0])      # exact RepVGG fusion
    bias = b3 + b1
    # TODO(synk): identity-BN branch (bn=True) omitted -- default RepConv ctor
    # uses bn=False so id_out == 0 in forward.

    # --- lane/sublane-dense padding ---
    C1p = _round_up(C1, 128)
    C2p = _round_up(C2, 128)
    Wp = _round_up(W + 2, 16)          # 1 left halo + W + right halo, x16 for bf16

    # Weight slab: w_slab[ky, kx*C1p + c1, c2] matches the xc channel layout.
    w_hwio = jnp.transpose(w3_f, (2, 3, 1, 0))            # (3, 3, C1, C2)
    w_hwio = jnp.pad(w_hwio, ((0, 0), (0, 0), (0, C1p - C1), (0, C2p - C2)))
    w_slab = w_hwio.reshape(3, 3 * C1p, C2p).astype(jnp.bfloat16)
    bias_p = jnp.pad(bias, (0, C2p - C2)).astype(jnp.float32)[None, :]

    # --- row-tile size from per-generation VMEM budget ---
    vmem_limit = _vmem_limit_bytes()
    if row_tile is None:
        TH, R = _pick_row_tile(H, Wp, C1p, C2p, N, int(vmem_limit * 0.75))
    else:
        TH = row_tile
        R = pl.cdiv(H, TH)
    Hp = R * TH                       # padded output-row count (>= H)
    TW = TH * Wp
    TB = (TH + 2) * Wp + GUARD

    # --- NHWC bf16, zero halo, width/channel padding, overlapping row tiles ---
    # TODO(synk): keep the surrounding model NHWC/bf16 end-to-end so this
    # transpose and the overlapping-window slab stop costing extra HBM passes
    # (or switch the row dim to pl.Element indexing straight off the flattened
    # image once that path is validated on all three generations).
    x = jnp.transpose(x_nchw, (0, 2, 3, 1)).astype(jnp.bfloat16)
    x = jnp.pad(x, ((0, 0), (1, 1 + Hp - H), (1, Wp - W - 1), (0, C1p - C1)))
    x_flat = x.reshape(N, (Hp + 2) * Wp, C1p)
    x_flat = jnp.pad(x_flat, ((0, 0), (0, GUARD), (0, 0)))
    slab = jnp.concatenate(
        [x_flat[:, None, r * TW:r * TW + TB, :] for r in range(R)], axis=1)

    cost = pl.CostEstimate(
        flops=2 * N * R * TW * 9 * C1p * C2p,
        transcendentals=N * R * TW * C2p,
        bytes_accessed=(slab.size * 2 + N * R * TW * C2p * 2
                        + w_slab.size * 2 + bias_p.size * 4),
    )

    kernel = functools.partial(repconv_kernel, Wp=Wp)
    out = pl.pallas_call(
        kernel,
        out_shape=jax.ShapeDtypeStruct((N, R, TW, C2p), jnp.bfloat16),
        grid=(N, R),
        in_specs=[
            pl.BlockSpec((1, 1, TB, C1p), lambda n, r: (n, r, 0, 0)),
            # TODO(synk): single-buffer these grid-invariant operands
            # (pipeline_mode=pl.Buffered(1)) once verified on the target
            # toolchain; saves ~9*C1p*C2p*2 bytes of resident VMEM.
            pl.BlockSpec((3, 3 * C1p, C2p), lambda n, r: (0, 0, 0)),
            pl.BlockSpec((1, C2p), lambda n, r: (0, 0)),
        ],
        out_specs=pl.BlockSpec((1, 1, TW, C2p), lambda n, r: (n, r, 0, 0)),
        scratch_shapes=[
            pltpu.VMEM((TW + 2 * Wp, 3 * C1p), jnp.bfloat16),
            pltpu.VMEM((TW, C2p), jnp.float32),
        ],
        compiler_params=pltpu.CompilerParams(
            dimension_semantics=("parallel", "parallel"),
            vmem_limit_bytes=vmem_limit),
        cost_estimate=cost,
    )(slab, w_slab, bias_p)

    out = out.reshape(N, Hp, Wp, C2p)[:, :H, :W, :C2]     # still bf16
    return jnp.transpose(out, (0, 3, 1, 2)).astype(out_dtype)   # NCHW


def repconv_reference(x_nchw, params):
    """Pure-JAX f32 reference (lax conv) for verification."""
    w3_f, b3 = fuse_bn(params["w3"], params["g3"], params["b3"],
                       params["m3"], params["v3"])
    w1_f, b1 = fuse_bn(params["w1"], params["g1"], params["b1"],
                       params["m1"], params["v1"])
    x = jnp.transpose(x_nchw, (0, 2, 3, 1))               # NHWC
    dn = lax.conv_dimension_numbers(x.shape, (3, 3, 1, 1),
                                    ("NHWC", "HWIO", "NHWC"))
    y3 = lax.conv_general_dilated(x, jnp.transpose(w3_f, (2, 3, 1, 0)),
                                  (1, 1), ((1, 1), (1, 1)),
                                  dimension_numbers=dn)
    y1 = lax.conv_general_dilated(x, jnp.transpose(w1_f, (2, 3, 1, 0)),
                                  (1, 1), ((0, 0), (0, 0)),
                                  dimension_numbers=dn)
    y = y3 + b3 + y1 + b1
    y = y * jax.nn.sigmoid(y)
    return jnp.transpose(y, (0, 3, 1, 2))                 # NCHW


if __name__ == "__main__":
    # Small shapes: batch=2, c1=4, c2=8, spatial=16x16.
    N, C1, C2, H, W = 2, 4, 8, 16, 16

    key = jax.random.PRNGKey(0)
    ks = jax.random.split(key, 11)
    params = {
        # conv1: 3x3 no bias (OIHW); conv2: 1x1 no bias (OIHW)
        "w3": jax.random.normal(ks[0], (C2, C1, 3, 3), jnp.float32) * 0.1,
        "w1": jax.random.normal(ks[1], (C2, C1, 1, 1), jnp.float32) * 0.1,
        # BN params for each branch (deterministic, synthetic, eval mode)
        "g3": jax.random.uniform(ks[2], (C2,), jnp.float32, 0.5, 1.5),
        "b3": jax.random.normal(ks[3], (C2,), jnp.float32) * 0.1,
        "m3": jax.random.normal(ks[4], (C2,), jnp.float32) * 0.1,
        "v3": jax.random.uniform(ks[5], (C2,), jnp.float32, 0.5, 1.5),
        "g1": jax.random.uniform(ks[6], (C2,), jnp.float32, 0.5, 1.5),
        "b1": jax.random.normal(ks[7], (C2,), jnp.float32) * 0.1,
        "m1": jax.random.normal(ks[8], (C2,), jnp.float32) * 0.1,
        "v1": jax.random.uniform(ks[9], (C2,), jnp.float32, 0.5, 1.5),
    }
    x = jax.random.normal(ks[10], (N, C1, H, W), jnp.float32)

    ref = repconv_reference(x, params)

    # 1) auto-tiled path (VMEM-budget-derived row tile, grid=(2, 1))
    out_a = jax.block_until_ready(repconv_forward(x, params))
    # 2) forced tile that does NOT divide H: multi-tile halo + bottom padding
    out_b = jax.block_until_ready(repconv_forward(x, params, row_tile=6))

    for out in (out_a, out_b):
        assert out.shape == (N, C2, H, W), out.shape
        o32 = out.astype(jnp.float32)
        max_err = float(jnp.max(jnp.abs(o32 - ref)))
        # bf16 activations/weights/output with f32 accumulation -> loose tol.
        assert jnp.allclose(o32, ref, atol=5e-2, rtol=5e-2), max_err

    print("KERNEL_OK")
</pallas_src>

<mosaic_0001>
module attributes {stable_mosaic.version = 11 : i64} {
  func.func @repconv_kernel(%arg0: i32, %arg1: i32, %arg2: memref<1x1x592x128xbf16, #tpu.memory_space<vmem>>, %arg3: memref<3x384x128xbf16, #tpu.memory_space<vmem>>, %arg4: memref<1x128xf32, #tpu.memory_space<vmem>>, %arg5: memref<1x1x512x128xbf16, #tpu.memory_space<vmem>>, %arg6: memref<576x384xbf16, #tpu.memory_space<vmem>>, %arg7: memref<512x128xf32, #tpu.memory_space<vmem>>) attributes {dimension_semantics = [#tpu.dimension_semantics<parallel>, #tpu.dimension_semantics<parallel>], iteration_bounds = array<i64: 2, 1>, scalar_prefetch = 0 : i64, scratch_operands = 2 : i64, tpu.core_type = #tpu.core_type<tc>, window_params = [{transform_indices = @transform_0, window_bounds = array<i64: 1, 1, 592, 128>}, {pipeline_mode = #tpu.pipeline_mode<synchronous>, transform_indices = @transform_1, window_bounds = array<i64: 3, 384, 128>}, {pipeline_mode = #tpu.pipeline_mode<synchronous>, transform_indices = @transform_2, window_bounds = array<i64: 1, 128>}, {transform_indices = @transform_3, window_bounds = array<i64: 1, 1, 512, 128>}]} {
    %c0 = arith.constant 0 : index
    %c0_0 = arith.constant 0 : index
    %c0_1 = arith.constant 0 : index
    %c0_2 = arith.constant 0 : index
    %0 = vector.load %arg2[%c0, %c0_0, %c0_1, %c0_2] : memref<1x1x592x128xbf16, #tpu.memory_space<vmem>>, vector<1x1x576x128xbf16>
    %1 = vector.shape_cast %0 : vector<1x1x576x128xbf16> to vector<576x128xbf16>
    %c0_3 = arith.constant 0 : index
    %c0_4 = arith.constant 0 : index
    %2 = vector.load %arg6[%c0_3, %c0_4] : memref<576x384xbf16, #tpu.memory_space<vmem>>, vector<576x128xbf16>
    tpu.vector_store %arg6[%c0_3, %c0_4], %1 {strides = array<i32>} : memref<576x384xbf16, #tpu.memory_space<vmem>>, vector<576x128xbf16>,
    %c0_5 = arith.constant 0 : index
    %c0_6 = arith.constant 0 : index
    %c1 = arith.constant 1 : index
    %c0_7 = arith.constant 0 : index
    %3 = vector.load %arg2[%c0_5, %c0_6, %c1, %c0_7] : memref<1x1x592x128xbf16, #tpu.memory_space<vmem>>, vector<1x1x576x128xbf16>
    %4 = vector.shape_cast %3 : vector<1x1x576x128xbf16> to vector<576x128xbf16>
    %c0_8 = arith.constant 0 : index
    %c128 = arith.constant 128 : index
    %5 = vector.load %arg6[%c0_8, %c128] : memref<576x384xbf16, #tpu.memory_space<vmem>>, vector<576x128xbf16>
    tpu.vector_store %arg6[%c0_8, %c128], %4 {strides = array<i32>} : memref<576x384xbf16, #tpu.memory_space<vmem>>, vector<576x128xbf16>,
    %c0_9 = arith.constant 0 : index
    %c0_10 = arith.constant 0 : index
    %c2 = arith.constant 2 : index
    %c0_11 = arith.constant 0 : index
    %6 = vector.load %arg2[%c0_9, %c0_10, %c2, %c0_11] : memref<1x1x592x128xbf16, #tpu.memory_space<vmem>>, vector<1x1x576x128xbf16>
    %7 = vector.shape_cast %6 : vector<1x1x576x128xbf16> to vector<576x128xbf16>
    %c0_12 = arith.constant 0 : index
    %c256 = arith.constant 256 : index
    %8 = vector.load %arg6[%c0_12, %c256] : memref<576x384xbf16, #tpu.memory_space<vmem>>, vector<576x128xbf16>
    tpu.vector_store %arg6[%c0_12, %c256], %7 {strides = array<i32>} : memref<576x384xbf16, #tpu.memory_space<vmem>>, vector<576x128xbf16>,
    %c0_13 = arith.constant 0 : index
    %c0_14 = arith.constant 0 : index
    %9 = vector.load %arg6[%c0_13, %c0_14] : memref<576x384xbf16, #tpu.memory_space<vmem>>, vector<512x384xbf16>
    %c0_15 = arith.constant 0 : index
    %c0_16 = arith.constant 0 : index
    %c0_17 = arith.constant 0 : index
    %10 = vector.load %arg3[%c0_15, %c0_16, %c0_17] : memref<3x384x128xbf16, #tpu.memory_space<vmem>>, vector<1x384x128xbf16>
    %11 = vector.shape_cast %10 : vector<1x384x128xbf16> to vector<384x128xbf16>
    %cst = arith.constant dense<0.000000e+00> : vector<512x128xf32>
    %12 = tpu.matmul %9, %11, %cst {dimension_numbers = #tpu.dot_dimension_numbers<[1], [0], [0], [1], [0, 0, 1, 1], [], []>} : vector<512x384xbf16>, vector<384x128xbf16>, vector<512x128xf32> -> vector<512x128xf32>
    %c0_18 = arith.constant 0 : index
    %c0_19 = arith.constant 0 : index
    %13 = vector.load %arg7[%c0_18, %c0_19] : memref<512x128xf32, #tpu.memory_space<vmem>>, vector<512x128xf32>
    tpu.vector_store %arg7[%c0_18, %c0_19], %12 {strides = array<i32>} : memref<512x128xf32, #tpu.memory_space<vmem>>, vector<512x128xf32>,
    %c0_20 = arith.constant 0 : index
    %c0_21 = arith.constant 0 : index
    %14 = vector.load %arg7[%c0_20, %c0_21] : memref<512x128xf32, #tpu.memory_space<vmem>>, vector<512x128xf32>
    %c32 = arith.constant 32 : index
    %c0_22 = arith.constant 0 : index
    %15 = vector.load %arg6[%c32, %c0_22] : memref<576x384xbf16, #tpu.memory_space<vmem>>, vector<512x384xbf16>
    %c1_23 = arith.constant 1 : index
    %c0_24 = arith.constant 0 : index
    %c0_25 = arith.constant 0 : index
    %16 = vector.load %arg3[%c1_23, %c0_24, %c0_25] : memref<3x384x128xbf16, #tpu.memory_space<vmem>>, vector<1x384x128xbf16>
    %17 = vector.shape_cast %16 : vector<1x384x128xbf16> to vector<384x128xbf16>
    %cst_26 = arith.constant dense<0.000000e+00> : vector<512x128xf32>
    %18 = tpu.matmul %15, %17, %cst_26 {dimension_numbers = #tpu.dot_dimension_numbers<[1], [0], [0], [1], [0, 0, 1, 1], [], []>} : vector<512x384xbf16>, vector<384x128xbf16>, vector<512x128xf32> -> vector<512x128xf32>
    %19 = arith.addf %14, %18 : vector<512x128xf32>
    %c0_27 = arith.constant 0 : index
    %c0_28 = arith.constant 0 : index
    %20 = vector.load %arg7[%c0_27, %c0_28] : memref<512x128xf32, #tpu.memory_space<vmem>>, vector<512x128xf32>
    tpu.vector_store %arg7[%c0_27, %c0_28], %19 {strides = array<i32>} : memref<512x128xf32, #tpu.memory_space<vmem>>, vector<512x128xf32>,
    %c0_29 = arith.constant 0 : index
    %c0_30 = arith.constant 0 : index
    %21 = vector.load %arg7[%c0_29, %c0_30] : memref<512x128xf32, #tpu.memory_space<vmem>>, vector<512x128xf32>
    %c64 = arith.constant 64 : index
    %c0_31 = arith.constant 0 : index
    %22 = vector.load %arg6[%c64, %c0_31] : memref<576x384xbf16, #tpu.memory_space<vmem>>, vector<512x384xbf16>
    %c2_32 = arith.constant 2 : index
    %c0_33 = arith.constant 0 : index
    %c0_34 = arith.constant 0 : index
    %23 = vector.load %arg3[%c2_32, %c0_33, %c0_34] : memref<3x384x128xbf16, #tpu.memory_space<vmem>>, vector<1x384x128xbf16>
    %24 = vector.shape_cast %23 : vector<1x384x128xbf16> to vector<384x128xbf16>
    %cst_35 = arith.constant dense<0.000000e+00> : vector<512x128xf32>
    %25 = tpu.matmul %22, %24, %cst_35 {dimension_numbers = #tpu.dot_dimension_numbers<[1], [0], [0], [1], [0, 0, 1, 1], [], []>} : vector<512x384xbf16>, vector<384x128xbf16>, vector<512x128xf32> -> vector<512x128xf32>
    %26 = arith.addf %21, %25 : vector<512x128xf32>
    %c0_36 = arith.constant 0 : index
    %c0_37 = arith.constant 0 : index
    %27 = vector.load %arg7[%c0_36, %c0_37] : memref<512x128xf32, #tpu.memory_space<vmem>>, vector<512x128xf32>
    tpu.vector_store %arg7[%c0_36, %c0_37], %26 {strides = array<i32>} : memref<512x128xf32, #tpu.memory_space<vmem>>, vector<512x128xf32>,
    %c0_38 = arith.constant 0 : index
    %c0_39 = arith.constant 0 : index
    %28 = vector.load %arg7[%c0_38, %c0_39] : memref<512x128xf32, #tpu.memory_space<vmem>>, vector<512x128xf32>
    %c0_40 = arith.constant 0 : index
    %c0_41 = arith.constant 0 : index
    %29 = vector.load %arg4[%c0_40, %c0_41] : memref<1x128xf32, #tpu.memory_space<vmem>>, vector<1x128xf32>
    %30 = vector.broadcast %29 : vector<1x128xf32> to vector<512x128xf32>
    %31 = arith.addf %28, %30 : vector<512x128xf32>
    %32 = arith.negf %31 : vector<512x128xf32>
    %33 = math.exp %32 : vector<512x128xf32>
    %cst_42 = arith.constant 1.000000e+00 : f32
    %34 = vector.broadcast %cst_42 : f32 to vector<512x128xf32>
    %35 = arith.addf %34, %33 : vector<512x128xf32>
    %36 = arith.divf %34, %35 : vector<512x128xf32>
    %37 = arith.mulf %31, %36 : vector<512x128xf32>
    %38 = arith.truncf %37 : vector<512x128xf32> to vector<512x128xbf16>
    %c0_43 = arith.constant 0 : index
    %c0_44 = arith.constant 0 : index
    %c0_45 = arith.constant 0 : index
    %c0_46 = arith.constant 0 : index
    %39 = vector.load %arg5[%c0_43, %c0_44, %c0_45, %c0_46] : memref<1x1x512x128xbf16, #tpu.memory_space<vmem>>, vector<1x1x512x128xbf16>
    %40 = vector.shape_cast %39 : vector<1x1x512x128xbf16> to vector<512x128xbf16>
    %41 = vector.shape_cast %38 : vector<512x128xbf16> to vector<1x1x512x128xbf16>
    tpu.vector_store %arg5[%c0_43, %c0_44, %c0_45, %c0_46], %41 {strides = array<i32>} : memref<1x1x512x128xbf16, #tpu.memory_space<vmem>>, vector<1x1x512x128xbf16>,
    return
  }
  func.func @transform_0(%arg0: i32, %arg1: i32) -> (i32, i32, i32, i32) {
    %c0_i32 = arith.constant 0 : i32
    %c0_i32_0 = arith.constant 0 : i32
    %c0_i32_1 = arith.constant 0 : i32
    return %arg0, %arg1, %c0_i32, %c0_i32_0 : i32, i32, i32, i32
  }
  func.func @transform_1(%arg0: i32, %arg1: i32) -> (i32, i32, i32) {
    %c0_i32 = arith.constant 0 : i32
    %c0_i32_0 = arith.constant 0 : i32
    %c0_i32_1 = arith.constant 0 : i32
    %c0_i32_2 = arith.constant 0 : i32
    return %c0_i32, %c0_i32_0, %c0_i32_1 : i32, i32, i32
  }
  func.func @transform_2(%arg0: i32, %arg1: i32) -> (i32, i32) {
    %c0_i32 = arith.constant 0 : i32
    %c0_i32_0 = arith.constant 0 : i32
    %c0_i32_1 = arith.constant 0 : i32
    return %c0_i32, %c0_i32_0 : i32, i32
  }
  func.func @transform_3(%arg0: i32, %arg1: i32) -> (i32, i32, i32, i32) {
    %c0_i32 = arith.constant 0 : i32
    %c0_i32_0 = arith.constant 0 : i32
    %c0_i32_1 = arith.constant 0 : i32
    return %arg0, %arg1, %c0_i32, %c0_i32_0 : i32, i32, i32, i32
  }
}

</mosaic_0001>

<bundles_post_ra>
// kernel: repconv_forward.1
= control target key start
LH: loop header
LB: loop body
LE: loop exit
PB: predicated region body
PF: predicated region fallthrough
CT: control target
= control target key end

     0   :  { %s7186_s12 = smov 0   ;;  %s7188_s13 = smov 0   ;;  %s9512_s0 = inlined_call_operand.vmem [shape: bf16[2,1,592,128], index: 0, kind: input, shape index: {}]   ;;  %s9513_s1 = inlined_call_operand.vmem [shape: bf16[3,384,128], index: 1, kind: input, shape index: {}]   ;;  %s9514_s2 = inlined_call_operand.vmem [shape: f32[1,128], index: 2, kind: input, shape index: {}]   ;;  %s9515_s3 = inlined_call_operand.vmem [shape: bf16[2,1,512,128], index: 3, kind: output, shape index: {}]  }
   0x1   :  { %s7190_s14 = smov 0  }
   0x2 LB: > { %s25_s15 = sadd.s32 1, %s7159_s13  ;;  %p5602_p0 = scmp.ge.s32.totalorder %s7163_s14, 1  ;;  %s7163_s14 = sphi %s7190_s14, %s13_s14   ;;  %s7159_s13 = sphi %s7188_s13, %s9991_s13   ;;  %s7155_s12 = sphi %s7186_s12, %s9990_s12  }
   0x3   : > { %p27_p1 = scmp.ge.s32.totalorder %s25_s15, 2  ;;  %p157_p2 = scmp.lt.s32.totalorder %s7163_s14, 3 }
   0x5   : > { %s9993_s15 = smov (%p27_p1, %s25_s15), 0  ;;  %p158_p3 = pnand %p5602_p0, %p157_p2 }
   0x7   : > { %161 = sbr.rel (%p158_p3) target bundleno = 892 (0x37c), region = 32 }
   0xe   : > { %v6673_v0 = vld [vmem:[%s9513_s1] sm:$0xff]   ;;  %v7165_v1 = vmov 0   ;;  %v6675_v3 = vld [vmem:[%s9513_s1 + $0x8] sm:$0xff]   ;;  %p189_p4 = scmp.lt.s32.totalorder %s7155_s12, 1  ;;  %v7228_v5 = vld [vmem:[%s9513_s1 + $0x90] sm:$0xff]   ;;  %vm1409_vm0 = vcmask 1046528  }
   0xf   : > { %1843 = vmatprep.subr.bf16.mxu0 %v7165_v1  ;;  %v7211_v2 = vld [vmem:[%s9513_s1 + $0x80] sm:$0xff]   ;;  %v7221_v4 = vld [vmem:[%s9513_s1 + $0x88] sm:$0xff]   ;;  %v6677_v6 = vld [vmem:[%s9513_s1 + $0x10] sm:$0xff]   ;;  %vm788_vm1 = vsmask.f32 7424 }
  0x10   : > { %1844 = vmatpush1.bf16.msra.mxu0 %v6673_v0  ;;  %6631 = vmatprep.subr.bf16.mxu1 %v7211_v2  ;;  %s9995_s12 = smov (!%p189_p4, %s7155_s12), 1  ;;  %v7241_v7 = vld [vmem:[%s9513_s1 + $0x98] sm:$0xff]   ;;  %v7253_v9 = vld [vmem:[%s9513_s1 + $0xa0] sm:$0xff]   ;;  %v7267_v11 = vld [vmem:[%s9513_s1 + $0xa8] sm:$0xff]  }
  0x11   : > { %1845 = vmatprep.subr.bf16.mxu0 %v7165_v1  ;;  %6639 = vmatpush3.bf16.msra.mxu1 %v7211_v2  ;;  %v6679_v8 = vld [vmem:[%s9513_s1 + $0x18] sm:$0xff]   ;;  %s6647_s5 = smul.u32 296, %s9995_s12  ;;  %v6681_v10 = vld [vmem:[%s9513_s1 + $0x20] sm:$0xff]   ;;  %v6683_v14 = vld [vmem:[%s9513_s1 + $0x28] sm:$0xff]  }
  0x12   : > { %6632 = vmatprep.subr.bf16.mxu1 %v7221_v4  ;;  %v7285_v17 = vld [vmem:[%s9513_s1 + $0xb0] sm:$0xff]   ;;  %v7300_v20 = vld [vmem:[%s9513_s1 + $0xb8] sm:$0xff]   ;;  %v6691_v26 = vld [vmem:[%s9513_s1 + $0x40] sm:$0xff]  }
  0x13   : > { %s7261_s16 = scalar_lea.vmem %s9512_s0, %s6647_s5  ;;  %v6685_v19 = vld [vmem:[%s9513_s1 + $0x30] sm:$0xff]   ;;  %v6687_v23 = vld [vmem:[%s9513_s1 + $0x38] sm:$0xff]   ;;  %v6693_v27 = vld [vmem:[%s9513_s1 + $0xc0] sm:$0xff]   ;;  %s6015_s5 = sshll.u32 %s9995_s12, 8 }
  0x14   : > { %1846 = vmatpush1.bf16.msra.mxu0 %v6675_v3  ;;  %v7272_v12 = vld [vmem:[%s7261_s16 + $0x60] sm:$0xff]   ;;  %v6690_v13 = vld [vmem:[%s7261_s16 + $0x68] sm:$0xff]   ;;  %v6692_v21 = vld [vmem:[%s7261_s16 + $0x70] sm:$0xff]   ;;  %s9070_s7 = scalar_lea.vmem %s9515_s3, %s6015_s5 }
  0x15   : > { %1847 = vmatprep.subr.bf16.mxu0 %v7165_v1  ;;  %6640 = vmatpush3.bf16.msra.mxu1 %v7221_v4  ;;  %v9517_v15 = vrot.slane %v7272_v12, 1  ;;  %v1435_v16 = vrot.slane %v6690_v13, 1  ;;  %v6696_v22 = vld [vmem:[%s7261_s16 + $0x78] sm:$0xff]   ;;  %v1437_v24 = vrot.slane %v6692_v21, 1  ;;  %v6698_v29 = vld [vmem:[%s7261_s16 + $0x80] sm:$0xff]   ;;  %v6701_v31 = vld [vmem:[%s7261_s16 + $0x88] sm:$0xff]  }
  0x16   : > { %6633 = vmatprep.subr.bf16.mxu1 %v7228_v5  ;;  %v1439_v25 = vrot.slane %v6696_v22, 1  ;;  %v6694_v32 = vld [vmem:[%s9513_s1 + $0x48] sm:$0xff]   ;;  %v1441_v34 = vrot.slane %v6698_v29, 1  ;;  %v6697_v35 = vld [vmem:[%s9513_s1 + $0x50] sm:$0xff]   ;;  %v1443_v36 = vrot.slane %v6701_v31, 1  ;;  %v6707_v39 = vld [vmem:[%s7261_s16 + $0x98] sm:$0xff]  }
  0x17   : > { %v7290_v18 = vsel %vm1409_vm0, %v9517_v15, %v1435_v16  ;;  %v7321_v28 = vsel %vm1409_vm0, %v1435_v16, %v1437_v24  ;;  %v6695_v33 = vld [vmem:[%s9513_s1 + $0xc8] sm:$0xff]   ;;  %v6699_v37 = vld [vmem:[%s9513_s1 + $0xd0] sm:$0xff]   ;;  %v6712_v41 = vld [vmem:[%s7261_s16] sm:$0xff]   ;;  %v1447_v51 = vrot.slane %v6707_v39, 1 }
  0x18   : > { %1848 = vmatpush1.bf16.msra.mxu0 %v6677_v6  ;;  %6431 = vmatprep.mubr.bf16.mxu1 %v7290_v18  ;;  %v7326_v30 = vsel %vm1409_vm0, %v1437_v24, %v1439_v25  ;;  %v6703_v38 = vld [vmem:[%s7261_s16 + $0x90] sm:$0xff]   ;;  %v7349_v40 = vsel %vm1409_vm0, %v1439_v25, %v1441_v34  ;;  %v7354_v42 = vsel %vm1409_vm0, %v1441_v34, %v1443_v36  ;;  %v6713_v43 = vld [vmem:[%s7261_s16 + $0x8] sm:$0xff]   ;;  %v6700_v44 = vld [vmem:[%s9513_s1 + $0x58] sm:$0xff]   ;;  %v790_v45 = vshrl.u32 %v6712_v41, 16 }
  0x19   : > { %1849 = vmatprep.subr.bf16.mxu0 %v7165_v1  ;;  %6641 = vmatpush3.bf16.msra.mxu1 %v7228_v5  ;;  %v792_v46 = vshll.u32 %v6712_v41, 16  ;;  %v6704_v47 = vld [vmem:[%s9513_s1 + $0xd8] sm:$0xff]   ;;  %v797_v48 = vshll.u32 %v6713_v43, 16  ;;  %v1445_v49 = vrot.slane %v6703_v38, 1  ;;  %v6702_v53 = vld [vmem:[%s9513_s1 + $0x60] sm:$0xff]   ;;  %v6715_v60 = vld [vmem:[%s7261_s16 + $0xa8] sm:$0xff]  }
  0x1a   : > { %6634 = vmatprep.subr.bf16.mxu1 %v7241_v7  ;;  %v6706_v55 = vld [vmem:[%s9513_s1 + $0xe0] sm:$0xff]   ;;  %v6705_v61 = vld [vmem:[%s9513_s1 + $0x68] sm:$0xff]   ;;  %v6719_v62 = vld [vmem:[%s7261_s16 + $0x10] sm:$0xff]   ;;  %v1451_v6 = vrot.slane %v6715_v60, 1 }
  0x1b   : > { %v794_v50 = vrot.slane %v792_v46, 1  ;;  %v799_v52 = vrot.slane %v797_v48, 1  ;;  %v7375_v56 = vsel %vm1409_vm0, %v1443_v36, %v1445_v49  ;;  %v6709_v57 = vld [vmem:[%s7261_s16 + $0xa0] sm:$0xff]   ;;  %v7381_v59 = vsel %vm1409_vm0, %v1445_v49, %v1447_v51  ;;  %v6710_v0 = vld [vmem:[%s9513_s1 + $0xe8] sm:$0xff]   ;;  %v6708_v3 = vld [vmem:[%s9513_s1 + $0x70] sm:$0xff]  }
  0x1c   : > { %1850 = vmatpush1.bf16.msra.mxu0 %v6679_v8  ;;  %v1449_v63 = vrot.slane %v6709_v57, 1  ;;  %v6716_v8 = vld [vmem:[%s9513_s1 + $0xf0] sm:$0xff]   ;;  %v805_v13 = vshll.u32 %v6719_v62, 16  ;;  %v6721_v21 = vld [vmem:[%s7261_s16 + $0xb8] sm:$0xff]   ;;  %v6714_v29 = vld [vmem:[%s7261_s16] sm:$0xff]  }
  0x1d   : > { %1851 = vmatprep.subr.bf16.mxu0 %v7165_v1  ;;  %6642 = vmatpush3.bf16.msra.mxu1 %v7241_v7  ;;  %v795_v54 = vor.u32 %v794_v50, %v790_v45  ;;  %v6717_v16 = vld [vmem:[%s7261_s16 + $0xb0] sm:$0xff]   ;;  %v6711_v22 = vld [vmem:[%s9513_s1 + $0x78] sm:$0xff]   ;;  %v1455_v31 = vrot.slane %v6721_v21, 1  ;;  %v6727_v39 = vld [vmem:[%s7261_s16 + $0xc8] sm:$0xff]  }
  0x1e   : > { %6635 = vmatprep.subr.bf16.mxu1 %v7253_v9  ;;  %v807_v24 = vrot.slane %v805_v13, 1  ;;  %v6724_v25 = vld [vmem:[%s7261_s16 + $0x18] sm:$0xff]   ;;  %v6725_v46 = vld [vmem:[%s9513_s1 + $0x108] sm:$0xff]   ;;  %v6728_v48 = vld [vmem:[%s7261_s16 + $0xd0] sm:$0xff]  }
  0x1f   : > { %v800_v58 = vsel %vm788_vm1, %v795_v54, %v799_v52  ;;  %v813_v36 = vshll.u32 %v6724_v25, 16  ;;  %v817_v50 = vshrl.u32 %v6724_v25, 16  ;;  %v6732_v54 = vld [vmem:[%s7261_s16 + $0xd8] sm:$0xff]   ;;  %v1461_v60 = vrot.slane %v6728_v48, 1  ;;  %v6738_v13 = vld [vmem:[%s7261_s16 + $0xe8] sm:$0xff]   ;;  %v7547_v48 = vld [vmem:[%s7261_s16 + $0x100] sm:$0xff]  }
  0x20   : > { %1852 = vmatpush1.bf16.msra.mxu0 %v6681_v10  ;;  %1875 = vmatprep.mubr.bf16.mxu0 %v800_v58  ;;  %v801_v10 = vshrl.u32 %v6713_v43, 16  ;;  %v6736_v58 = vld [vmem:[%s7261_s16 + $0x28] sm:$0xff]   ;;  %v7505_v25 = vld [vmem:[%s7261_s16 + $0x18] sm:$0xff]   ;;  %9572 = vst [vmem:[#allocation13_spill] sm:$0xff] %v7547_v48 }
  0x21   : > { %1853 = vmatprep.subr.bf16.mxu0 %v7165_v1  ;;  %6643 = vmatpush3.bf16.msra.mxu1 %v7253_v9  ;;  %v815_v43 = vrot.slane %v813_v36, 1 }
  0x22   : > { %6636 = vmatprep.subr.bf16.mxu1 %v7267_v11 }
  0x24   : > { %1854 = vmatpush1.bf16.msra.mxu0 %v6683_v14  ;;  %v7403_v14 = vsel %vm1409_vm0, %v1447_v51, %v1449_v63 }
  0x25   : > { %1855 = vmatprep.subr.bf16.mxu0 %v7165_v1  ;;  %6644 = vmatpush3.bf16.msra.mxu1 %v7267_v11 }
  0x26   : > { %6637 = vmatprep.subr.bf16.mxu1 %v7285_v17 }
  0x28   : > { %1856 = vmatpush1.bf16.msra.mxu0 %v6685_v19  ;;  %v7408_v19 = vsel %vm1409_vm0, %v1449_v63, %v1451_v6  ;;  %v1463_v63 = vrot.slane %v6732_v54, 1  ;;  %v9516_v54 = vrot.slane %v7547_v48, 1 }
  0x29   : > { %1857 = vmatprep.subr.bf16.mxu0 %v7165_v1  ;;  %6645 = vmatpush3.bf16.msra.mxu1 %v7285_v17 }
  0x2a   : > { %6638 = vmatprep.subr.bf16.mxu1 %v7300_v20 }
  0x2c   : > { %1858 = vmatpush1.bf16.msra.mxu0 %v6687_v23  ;;  %v803_v23 = vor.u32 %v801_v10, %v799_v52  ;;  %v6735_v10 = vld [vmem:[%s9513_s1 + $0x120] sm:$0xff]  }
  0x2d   : > { %1859 = vmatprep.subr.bf16.mxu0 %v7165_v1  ;;  %6646 = vmatpush3.bf16.msra.mxu1 %v7300_v20 }
  0x2e   : > { %2838 = vmatprep.subr.bf16.mxu1 %v7165_v1  ;;  %v808_v34 = vsel %vm788_vm1, %v803_v23, %v807_v24 }
  0x30   : > { %1860 = vmatpush1.bf16.msra.mxu0 %v6691_v26  ;;  %6432 = vmatmul.mubr.bf16.vlgmr.msra.gmra.mrb[0].mxu1 %v7321_v28  ;;  %v1453_v26 = vrot.slane %v6717_v16, 1 }
  0x31   : > { %1861 = vmatprep.subr.bf16.mxu0 %v7165_v1  ;;  %2839 = vmatpush1.bf16.msra.mxu1 %v6693_v27  ;;  %v6718_v27 = vld [vmem:[%s9513_s1 + $0xf8] sm:$0xff]  }
  0x32   : > { %6435 = vmatprep.mubr.bf16.mxu1 %v7326_v30  ;;  %2840 = vmatprep.subr.bf16.mxu1 %v7165_v1  ;;  %v7433_v38 = vsel %vm1409_vm0, %v1453_v26, %v1455_v31 }
  0x33   : > { %9564 = vst [vmem:[#allocation5_spill] sm:$0xff] %v7433_v38 }
  0x34   : > { %1862 = vmatpush1.bf16.msra.mxu0 %v6694_v32  ;;  %v6722_v32 = vld [vmem:[%s7261_s16 + $0xc0] sm:$0xff]  }
  0x35   : > { %1863 = vmatprep.subr.bf16.mxu0 %v7165_v1  ;;  %2841 = vmatpush1.bf16.msra.mxu1 %v6695_v33  ;;  %v809_v33 = vshrl.u32 %v6719_v62, 16  ;;  %v1457_v45 = vrot.slane %v6722_v32, 1  ;;  %v7474_v62 = vld [vmem:[%s7261_s16 + $0x10] sm:$0xff]  }
  0x36   : > { %2842 = vmatprep.subr.bf16.mxu1 %v7165_v1 }
  0x37   : > { %v811_v41 = vor.u32 %v809_v33, %v807_v24  ;;  %v7454_v52 = vsel %vm1409_vm0, %v1455_v31, %v1457_v45  ;;  %v6740_v24 = vld [vmem:[%s9513_s1 + $0x128] sm:$0xff]   ;;  %v6744_v33 = vld [vmem:[%s9513_s1 + $0x130] sm:$0xff]  }
  0x38   : > { %1864 = vmatpush1.bf16.msra.mxu0 %v6697_v35  ;;  %6436 = vmatmul.mubr.bf16.gmra.mrb[4].mxu1 %v7349_v40  ;;  %v6723_v35 = vld [vmem:[%s9513_s1 + $0x100] sm:$0xff]   ;;  %9565 = vst [vmem:[#allocation6_spill] sm:$0xff] %v7454_v52 }
  0x39   : > { %1865 = vmatprep.subr.bf16.mxu0 %v7165_v1  ;;  %2843 = vmatpush1.bf16.msra.mxu1 %v6699_v37  ;;  %v7430_v37 = vsel %vm1409_vm0, %v1451_v6, %v1453_v26  ;;  %v7450_v49 = vsel %vm788_vm1, %v811_v41, %v815_v43  ;;  %v829_v6 = vshll.u32 %v6736_v58, 16  ;;  %v833_v26 = vshrl.u32 %v6736_v58, 16 }
  0x3a   : > { %6439 = vmatprep.mubr.bf16.mxu1 %v7354_v42  ;;  %2844 = vmatprep.subr.bf16.mxu1 %v7165_v1  ;;  %9563 = vst [vmem:[#allocation4_spill] sm:$0xff] %v7430_v37 }
  0x3b   : > { %v831_v21 = vrot.slane %v829_v6, 1  ;;  %v7576_v6 = vld [vmem:[%s7261_s16 + $0x30] sm:$0xff]  }
  0x3c   : > { %1866 = vmatpush1.bf16.msra.mxu0 %v6700_v44  ;;  %v6730_v44 = vld [vmem:[%s7261_s16 + $0x20] sm:$0xff]  }
  0x3d   : > { %1867 = vmatprep.subr.bf16.mxu0 %v7165_v1  ;;  %2845 = vmatpush1.bf16.msra.mxu1 %v6704_v47  ;;  %v6720_v47 = vld [vmem:[%s7261_s16 + $0x8] sm:$0xff]   ;;  %v821_v51 = vshll.u32 %v6730_v44, 16 }
  0x3e   : > { %2846 = vmatprep.subr.bf16.mxu1 %v7165_v1 }
  0x3f   : > { %v823_v57 = vrot.slane %v821_v51, 1 }
  0x40   : > { %1868 = vmatpush1.bf16.msra.mxu0 %v6702_v53  ;;  %6440 = vmatmul.mubr.bf16.gmra.mrb[8].mxu1 %v7375_v56  ;;  %v6729_v53 = vld [vmem:[%s9513_s1 + $0x110] sm:$0xff]  }
  0x41   : > { %1869 = vmatprep.subr.bf16.mxu0 %v7165_v1  ;;  %2847 = vmatpush1.bf16.msra.mxu1 %v6706_v55  ;;  %v819_v55 = vor.u32 %v817_v50, %v815_v43  ;;  %v6746_v43 = vld [vmem:[%s9513_s1 + $0x138] sm:$0xff]  }
  0x42   : > { %6443 = vmatprep.mubr.bf16.mxu1 %v7381_v59  ;;  %2848 = vmatprep.subr.bf16.mxu1 %v7165_v1 }
  0x44   : > { %1870 = vmatpush1.bf16.msra.mxu0 %v6705_v61  ;;  %v6734_v61 = vld [vmem:[%s9513_s1 + $0x118] sm:$0xff]  }
  0x45   : > { %1871 = vmatprep.subr.bf16.mxu0 %v7165_v1  ;;  %2849 = vmatpush1.bf16.msra.mxu1 %v6710_v0  ;;  %v7480_v0 = vsel %vm788_vm1, %v819_v55, %v823_v57  ;;  %v7560_v55 = vld [vmem:[%s7261_s16 + $0x28] sm:$0xff]  }
  0x46   : > { %2850 = vmatprep.subr.bf16.mxu1 %v7165_v1 }
  0x48   : > { %1872 = vmatpush1.bf16.msra.mxu0 %v6708_v3  ;;  %6444 = vmatmul.mubr.bf16.gmra.mrb[12].mxu1 %v7403_v14  ;;  %v825_v3 = vshrl.u32 %v6730_v44, 16  ;;  %v7536_v44 = vld [vmem:[%s7261_s16 + $0x20] sm:$0xff]  }
  0x49   : > { %1873 = vmatprep.subr.bf16.mxu0 %v7165_v1  ;;  %6447 = vmatprep.mubr.bf16.mxu1 %v7408_v19 }
  0x4a   : > { %2851 = vmatpush1.bf16.msra.mxu1 %v6716_v8  ;;  %v827_v16 = vor.u32 %v825_v3, %v823_v57 }
  0x4b   : > { %2852 = vmatprep.subr.bf16.mxu1 %v7165_v1 }
  0x4c   : > { %1874 = vmatpush1.bf16.msra.mxu0 %v6711_v22  ;;  %v6741_v22 = vld [vmem:[%s7261_s16 + $0x30] sm:$0xff]  }
  0x4d   : > { %6391 = vmatprep.subr.bf16.mxu0 %v7211_v2  ;;  %v837_v31 = vshll.u32 %v6741_v22, 16 }
  0x4e   : > { %2853 = vmatpush1.bf16.msra.mxu1 %v6718_v27  ;;  %v7510_v27 = vsel %vm788_vm1, %v827_v16, %v831_v21 }
  0x4f   : > { %1876 = vmatmul.mubr.bf16.vlgmr.msra.gmra.mrb[0].mxu0 %v6714_v29  ;;  %2854 = vmatprep.subr.bf16.mxu1 %v7165_v1  ;;  %v6739_v29 = vld [vmem:[%s7261_s16 + $0xf0] sm:$0xff]   ;;  %v839_v36 = vrot.slane %v837_v31, 1 }
  0x50   : > { %6392 = vmatpush3.bf16.msra.mxu0 %v7211_v2  ;;  %1883 = vmatprep.mubr.bf16.mxu0 %v808_v34  ;;  %v1459_v2 = vrot.slane %v6727_v39, 1  ;;  %v6743_v34 = vld [vmem:[%s7261_s16 + $0xf8] sm:$0xff]   ;;  %v1469_v41 = vrot.slane %v6739_v29, 1  ;;  %v6759_v31 = vld [vmem:[%s9513_s1 + $0x190] sm:$0xff]  }
  0x51   : > { %6448 = vmatmul.mubr.bf16.gmra.mrb[16].mxu1 %v7430_v37  ;;  %6393 = vmatprep.subr.bf16.mxu0 %v7221_v4  ;;  %v6747_v39 = vld [vmem:[%s7261_s16 + $0x38] sm:$0xff]  }
  0x52   : > { %6451 = vmatprep.mubr.bf16.mxu1 %v7433_v38  ;;  %2855 = vmatpush1.bf16.msra.mxu1 %v6723_v35  ;;  %v7484_v8 = vsel %vm1409_vm0, %v1459_v2, %v1461_v60  ;;  %v835_v35 = vor.u32 %v833_v26, %v831_v21  ;;  %v6749_v21 = vld [vmem:[%s9513_s1 + $0x180] sm:$0xff]  }
  0x53   : > { %2856 = vmatprep.subr.bf16.mxu1 %v7165_v1  ;;  %9567 = vst [vmem:[#allocation8_spill] sm:$0xff] %v7484_v8 }
  0x54   : > { %6394 = vmatpush3.bf16.msra.mxu0 %v7221_v4  ;;  %v7460_v4 = vsel %vm1409_vm0, %v1457_v45, %v1459_v2  ;;  %v7541_v45 = vsel %vm788_vm1, %v835_v35, %v839_v36  ;;  %v7608_v35 = vld [vmem:[%s7261_s16 + $0x40] sm:$0xff]  }
  0x55   : > { %6395 = vmatprep.subr.bf16.mxu0 %v7228_v5  ;;  %9566 = vst [vmem:[#allocation7_spill] sm:$0xff] %v7460_v4 }
  0x56   : > { %2857 = vmatpush1.bf16.msra.mxu1 %v6725_v46  ;;  %v841_v46 = vshrl.u32 %v6741_v22, 16  ;;  %v6755_v22 = vld [vmem:[%s7261_s16 + $0x50] sm:$0xff]  }
  0x57   : > { %1884 = vmatmul.mubr.bf16.gmra.mrb[4].mxu0 %v6720_v47  ;;  %2858 = vmatprep.subr.bf16.mxu1 %v7165_v1  ;;  %v845_v47 = vshll.u32 %v6747_v39, 16  ;;  %v869_v26 = vshll.u32 %v6755_v22, 16 }
  0x58   : > { %1891 = vmatprep.mubr.bf16.mxu0 %v7450_v49  ;;  %6396 = vmatpush3.bf16.msra.mxu0 %v7228_v5  ;;  %v6733_v5 = vld [vmem:[%s7261_s16 + $0xe0] sm:$0xff]   ;;  %v843_v51 = vor.u32 %v841_v46, %v839_v36  ;;  %v6764_v36 = vld [vmem:[%s9513_s1 + $0x198] sm:$0xff]   ;;  %v7627_v46 = vld [vmem:[%s7261_s16 + $0x48] sm:$0xff]  }
  0x59   : > { %6452 = vmatmul.mubr.bf16.gmra.mrb[20].mxu1 %v7454_v52  ;;  %6397 = vmatprep.subr.bf16.mxu0 %v7241_v7  ;;  %v1465_v23 = vrot.slane %v6733_v5, 1  ;;  %v6752_v5 = vld [vmem:[%s7261_s16 + $0x48] sm:$0xff]  }
  0x5a   : > { %6455 = vmatprep.mubr.bf16.mxu1 %v7460_v4  ;;  %2859 = vmatpush1.bf16.msra.mxu1 %v6729_v53  ;;  %v847_v53 = vrot.slane %v845_v47, 1  ;;  %v861_v16 = vshll.u32 %v6752_v5, 16 }
  0x5b   : > { %2860 = vmatprep.subr.bf16.mxu1 %v7165_v1  ;;  %v7515_v32 = vsel %vm1409_vm0, %v1463_v63, %v1465_v23 }
  0x5c   : > { %6398 = vmatpush3.bf16.msra.mxu0 %v7241_v7  ;;  %v7492_v7 = vsel %vm1409_vm0, %v1461_v60, %v1463_v63  ;;  %9569 = vst [vmem:[#allocation10_spill] sm:$0xff] %v7515_v32  ;;  %v7563_v58 = vsel %vm788_vm1, %v843_v51, %v847_v53  ;;  %v849_v60 = vshrl.u32 %v6747_v39, 16  ;;  %v873_v39 = vshrl.u32 %v6755_v22, 16  ;;  %v6774_v51 = vld [vmem:[%s9513_s1 + $0x1a8] sm:$0xff]  }
  0x5d   : > { %6399 = vmatprep.subr.bf16.mxu0 %v7253_v9  ;;  %9568 = vst [vmem:[#allocation9_spill] sm:$0xff] %v7492_v7 }
  0x5e   : > { %2861 = vmatpush1.bf16.msra.mxu1 %v6734_v61  ;;  %v851_v3 = vor.u32 %v849_v60, %v847_v53 }
  0x5f   : > { %1892 = vmatmul.mubr.bf16.gmra.mrb[8].mxu0 %v7474_v62  ;;  %2862 = vmatprep.subr.bf16.mxu1 %v7165_v1 }
  0x60   : > { %1899 = vmatprep.mubr.bf16.mxu0 %v7480_v0  ;;  %6400 = vmatpush3.bf16.msra.mxu0 %v7253_v9  ;;  %v1467_v9 = vrot.slane %v6738_v13, 1 }
  0x61   : > { %6456 = vmatmul.mubr.bf16.gmra.mrb[24].mxu1 %v7484_v8  ;;  %6401 = vmatprep.subr.bf16.mxu0 %v7267_v11 }
  0x62   : > { %6459 = vmatprep.mubr.bf16.mxu1 %v7492_v7  ;;  %2863 = vmatpush1.bf16.msra.mxu1 %v6735_v10  ;;  %v7544_v2 = vsel %vm1409_vm0, %v1467_v9, %v1469_v41 }
  0x63   : > { %2864 = vmatprep.subr.bf16.mxu1 %v7165_v1  ;;  %9571 = vst [vmem:[#allocation12_spill] sm:$0xff] %v7544_v2 }
  0x64   : > { %6402 = vmatpush3.bf16.msra.mxu0 %v7267_v11  ;;  %v7522_v11 = vsel %vm1409_vm0, %v1465_v23, %v1467_v9  ;;  %v7593_v9 = vld [vmem:[%s7261_s16 + $0x38] sm:$0xff]  }
  0x65   : > { %6403 = vmatprep.subr.bf16.mxu0 %v7285_v17  ;;  %9570 = vst [vmem:[#allocation11_spill] sm:$0xff] %v7522_v11 }
  0x66   : > { %2865 = vmatpush1.bf16.msra.mxu1 %v6740_v24  ;;  %v6754_v24 = vld [vmem:[%s9513_s1 + $0x188] sm:$0xff]  }
  0x67   : > { %1900 = vmatmul.mubr.bf16.gmra.mrb[12].mxu0 %v7505_v25  ;;  %2866 = vmatprep.subr.bf16.mxu1 %v7165_v1 }
  0x68   : > { %1907 = vmatprep.mubr.bf16.mxu0 %v7510_v27  ;;  %6404 = vmatpush3.bf16.msra.mxu0 %v7285_v17  ;;  %v1471_v17 = vrot.slane %v6743_v34, 1 }
  0x69   : > { %6460 = vmatmul.mubr.bf16.gmra.mrb[28].mxu1 %v7515_v32  ;;  %6405 = vmatprep.subr.bf16.mxu0 %v7300_v20 }
  0x6a   : > { %6463 = vmatprep.mubr.bf16.mxu1 %v7522_v11  ;;  %2867 = vmatpush1.bf16.msra.mxu1 %v6744_v33  ;;  %v7551_v50 = vsel %vm1409_vm0, %v1469_v41, %v1471_v17  ;;  %v7568_v61 = vsel %vm1409_vm0, %v1471_v17, %v9516_v54  ;;  %v6757_v33 = vld [vmem:[%s7261_s16 + $0x58] sm:$0xff]   ;;  %v6760_v17 = vld [vmem:[%s7261_s16 + $0x60] sm:$0xff]  }
  0x6b   : > { %2868 = vmatprep.subr.bf16.mxu1 %v7165_v1  ;;  %9573 = vst [vmem:[#allocation14_spill] sm:$0xff] %v7551_v50  ;;  %9574 = vst [vmem:[#allocation15_spill] sm:$0xff] %v7568_v61  ;;  %v877_v41 = vshll.u32 %v6757_v33, 16  ;;  %v881_v53 = vshrl.u32 %v6757_v33, 16 }
  0x6c   : > { %6406 = vmatpush3.bf16.msra.mxu0 %v7300_v20  ;;  %v6750_v20 = vld [vmem:[%s7261_s16 + $0x40] sm:$0xff]  }
  0x6d   : > { %v853_v57 = vshll.u32 %v6750_v20, 16  ;;  %v857_v13 = vshrl.u32 %v6750_v20, 16  ;;  %v879_v20 = vrot.slane %v877_v41, 1 }
  0x6e   : > { %2869 = vmatpush1.bf16.msra.mxu1 %v6746_v43 }
  0x6f   : > { %1908 = vmatmul.mubr.bf16.gmra.mrb[16].mxu0 %v7536_v44  ;;  %3897 = vmatprep.subr.bf16.mxu1 %v7165_v1  ;;  %v855_v63 = vrot.slane %v853_v57, 1  ;;  %v885_v57 = vshll.u32 %v6760_v17, 16 }
  0x70   : > { %1915 = vmatprep.mubr.bf16.mxu0 %v7541_v45 }
  0x71   : > { %6464 = vmatmul.mubr.bf16.gmra.mrb[32].mxu1 %v7544_v2  ;;  %v7579_v10 = vsel %vm788_vm1, %v851_v3, %v855_v63  ;;  %v859_v23 = vor.u32 %v857_v13, %v855_v63  ;;  %v887_v63 = vrot.slane %v885_v57, 1  ;;  %v7646_v3 = vld [vmem:[%s7261_s16 + $0x50] sm:$0xff]   ;;  %v883_v13 = vor.u32 %v881_v53, %v879_v20  ;;  %v6804_v57 = vld [vmem:[%s9513_s1 + $0x1d8] sm:$0xff]  }
  0x72   : > { %6467 = vmatprep.mubr.bf16.mxu1 %v7551_v50 }
  0x77   : > { %1916 = vmatmul.mubr.bf16.gmra.mrb[20].mxu0 %v7560_v55 }
  0x78   : > { %1923 = vmatprep.mubr.bf16.mxu0 %v7563_v58 }
  0x79   : > { %6468 = vmatmul.mubr.bf16.gmra.mrb[36].mxu1 %v7568_v61 }
  0x7a   : > { %2870 = vmatprep.mubr.bf16.mxu1 %v7450_v49  ;;  %v863_v49 = vrot.slane %v861_v16, 1  ;;  %v6784_v16 = vld [vmem:[%s9513_s1 + $0x1b8] sm:$0xff]  }
  0x7c   : > { %v7597_v29 = vsel %vm788_vm1, %v859_v23, %v863_v49  ;;  %v7654_v23 = vsel %vm788_vm1, %v883_v13, %v887_v63 }
  0x7f   : > { %1924 = vmatmul.mubr.bf16.gmra.mrb[24].mxu0 %v7576_v6 }
  0x80   : > { %1931 = vmatprep.mubr.bf16.mxu0 %v7579_v10 }
  0x81   : > { %2871 = vmatmul.mubr.bf16.vlgmr.msra.gmra.mrb[40].mxu1 %v7474_v62  ;;  %v865_v62 = vshrl.u32 %v6752_v5, 16  ;;  %v6762_v5 = vld [vmem:[%s7261_s16 + $0x68] sm:$0xff]  }
  0x82   : > { %3898 = vmatpush1.bf16.msra.mxu1 %v6749_v21  ;;  %2878 = vmatprep.mubr.bf16.mxu1 %v7480_v0  ;;  %v871_v0 = vrot.slane %v869_v26, 1  ;;  %v889_v21 = vshrl.u32 %v6760_v17, 16  ;;  %v893_v22 = vshll.u32 %v6762_v5, 16 }
  0x83   : > { %3899 = vmatprep.subr.bf16.mxu1 %v7165_v1  ;;  %v867_v34 = vor.u32 %v865_v62, %v863_v49  ;;  %v6765_v49 = vld [vmem:[%s7261_s16 + $0x70] sm:$0xff]  }
  0x84   : > { %v875_v47 = vor.u32 %v873_v39, %v871_v0  ;;  %v891_v26 = vor.u32 %v889_v21, %v887_v63  ;;  %v895_v62 = vrot.slane %v893_v22, 1  ;;  %v901_v33 = vshll.u32 %v6765_v49, 16  ;;  %v6767_v39 = vld [vmem:[%s7261_s16 + $0x78] sm:$0xff]   ;;  %v6768_v22 = vld [vmem:[%s7261_s16 + $0x70] sm:$0xff]  }
  0x85   : > { %v7616_v43 = vsel %vm788_vm1, %v867_v34, %v871_v0  ;;  %v897_v0 = vshrl.u32 %v6762_v5, 16  ;;  %v905_v17 = vshrl.u32 %v6765_v49, 16  ;;  %v913_v63 = vshrl.u32 %v6767_v39, 16 }
  0x86   : > { %3900 = vmatpush1.bf16.msra.mxu1 %v6754_v24  ;;  %v7635_v60 = vsel %vm788_vm1, %v875_v47, %v879_v20  ;;  %v7665_v24 = vld [vmem:[%s7261_s16 + $0x58] sm:$0xff]   ;;  %v7673_v34 = vsel %vm788_vm1, %v891_v26, %v895_v62  ;;  %v909_v47 = vshll.u32 %v6767_v39, 16 }
  0x87   : > { %1932 = vmatmul.mubr.bf16.gmra.mrb[28].mxu0 %v7593_v9  ;;  %3901 = vmatprep.subr.bf16.mxu1 %v7165_v1  ;;  %v899_v41 = vor.u32 %v897_v0, %v895_v62  ;;  %v6775_v0 = vld [vmem:[%s7261_s16 + $0x90] sm:$0xff]  }
  0x88   : > { %1939 = vmatprep.mubr.bf16.mxu0 %v7597_v29  ;;  %v911_v53 = vrot.slane %v909_v47, 1  ;;  %v6773_v47 = vld [vmem:[%s7261_s16 + $0x80] sm:$0xff]  }
  0x89   : > { %2879 = vmatmul.mubr.bf16.gmra.mrb[44].mxu1 %v7505_v25  ;;  %v6769_v25 = vld [vmem:[%s9513_s1 + $0x1a0] sm:$0xff]  }
  0x8a   : > { %2886 = vmatprep.mubr.bf16.mxu1 %v7510_v27  ;;  %3902 = vmatpush1.bf16.msra.mxu1 %v6759_v31  ;;  %v6794_v31 = vld [vmem:[%s9513_s1 + $0x1c8] sm:$0xff]   ;;  %v915_v21 = vor.u32 %v913_v63, %v911_v53 }
  0x8b   : > { %3903 = vmatprep.subr.bf16.mxu1 %v7165_v1 }
  0x8e   : > { %3904 = vmatpush1.bf16.msra.mxu1 %v6764_v36  ;;  %v903_v36 = vrot.slane %v901_v33, 1  ;;  %v6771_v33 = vld [vmem:[%s7261_s16 + $0x78] sm:$0xff]  }
  0x8f   : > { %1940 = vmatmul.mubr.bf16.gmra.mrb[32].mxu0 %v7608_v35  ;;  %3905 = vmatprep.subr.bf16.mxu1 %v7165_v1 }
  0x90   : > { %1947 = vmatprep.mubr.bf16.mxu0 %v7616_v43  ;;  %v7687_v20 = vsel %vm788_vm1, %v899_v41, %v903_v36 }
  0x91   : > { %2887 = vmatmul.mubr.bf16.gmra.mrb[48].mxu1 %v7536_v44  ;;  %v6779_v44 = vld [vmem:[%s9513_s1 + $0x1b0] sm:$0xff]  }
  0x92   : > { %2894 = vmatprep.mubr.bf16.mxu1 %v7541_v45  ;;  %3906 = vmatpush1.bf16.msra.mxu1 %v6769_v25  ;;  %v6763_v25 = vld [vmem:[%s7261_s16 + $0x60] sm:$0xff]  }
  0x93   : > { %3907 = vmatprep.subr.bf16.mxu1 %v7165_v1 }
  0x96   : > { %3908 = vmatpush1.bf16.msra.mxu1 %v6774_v51  ;;  %v6770_v51 = vld [vmem:[%s7261_s16 + $0x80] sm:$0xff]  }
  0x97   : > { %1948 = vmatmul.mubr.bf16.gmra.mrb[36].mxu0 %v7627_v46  ;;  %3909 = vmatprep.subr.bf16.mxu1 %v7165_v1  ;;  %v917_v5 = vshll.u32 %v6770_v51, 16  ;;  %v921_v49 = vshrl.u32 %v6770_v51, 16 }
  0x98   : > { %1955 = vmatprep.mubr.bf16.mxu0 %v7635_v60 }
  0x99   : > { %2895 = vmatmul.mubr.bf16.gmra.mrb[52].mxu1 %v7560_v55  ;;  %v6789_v55 = vld [vmem:[%s9513_s1 + $0x1c0] sm:$0xff]  }
  0x9a   : > { %2902 = vmatprep.mubr.bf16.mxu1 %v7563_v58  ;;  %3910 = vmatpush1.bf16.msra.mxu1 %v6779_v44  ;;  %v6766_v44 = vld [vmem:[%s7261_s16 + $0x68] sm:$0xff]  }
  0x9b   : > { %3911 = vmatprep.subr.bf16.mxu1 %v7165_v1 }
  0x9e   : > { %3912 = vmatpush1.bf16.msra.mxu1 %v6784_v16  ;;  %v6772_v16 = vld [vmem:[%s7261_s16 + $0x88] sm:$0xff]  }
  0x9f   : > { %1956 = vmatmul.mubr.bf16.gmra.mrb[40].mxu0 %v7646_v3  ;;  %3913 = vmatprep.subr.bf16.mxu1 %v7165_v1  ;;  %v925_v26 = vshll.u32 %v6772_v16, 16 }
  0xa0   : > { %1963 = vmatprep.mubr.bf16.mxu0 %v7654_v23 }
  0xa1   : > { %2903 = vmatmul.mubr.bf16.gmra.mrb[56].mxu1 %v7576_v6  ;;  %v6799_v6 = vld [vmem:[%s9513_s1 + $0x1d0] sm:$0xff]  }
  0xa2   : > { %2910 = vmatprep.mubr.bf16.mxu1 %v7579_v10  ;;  %3914 = vmatpush1.bf16.msra.mxu1 %v6789_v55 }
  0xa3   : > { %3915 = vmatprep.subr.bf16.mxu1 %v7165_v1 }
  0xa6   : > { %3916 = vmatpush1.bf16.msra.mxu1 %v6794_v31  ;;  %v927_v31 = vrot.slane %v925_v26, 1 }
  0xa7   : > { %1964 = vmatmul.mubr.bf16.gmra.mrb[44].mxu0 %v7665_v24  ;;  %3917 = vmatprep.subr.bf16.mxu1 %v7165_v1 }
  0xa8   : > { %1971 = vmatprep.mubr.bf16.mxu0 %v7673_v34 }
  0xa9   : > { %2911 = vmatmul.mubr.bf16.gmra.mrb[60].mxu1 %v7593_v9  ;;  %v907_v9 = vor.u32 %v905_v17, %v903_v36  ;;  %v929_v36 = vshrl.u32 %v6772_v16, 16  ;;  %v6777_v17 = vld [vmem:[%s7261_s16 + $0x98] sm:$0xff]   ;;  %v6776_v16 = vld [vmem:[%s7261_s16 + $0x88] sm:$0xff]  }
  0xaa   : > { %2918 = vmatprep.mubr.bf16.mxu1 %v7597_v29  ;;  %3918 = vmatpush1.bf16.msra.mxu1 %v6799_v6 }
  0xab   : > { %3919 = vmatprep.subr.bf16.mxu1 %v7165_v1  ;;  %v7699_v13 = vsel %vm788_vm1, %v907_v9, %v911_v53  ;;  %v931_v39 = vor.u32 %v929_v36, %v927_v31  ;;  %v937_v9 = vshrl.u32 %v6775_v0, 16  ;;  %v941_v53 = vshll.u32 %v6777_v17, 16 }
  0xac   : > { %9575 = vst [vmem:[#allocation16_spill] sm:$0xff] %v7699_v13 }
  0xad   : > { %v943_v63 = vrot.slane %v941_v53, 1 }
  0xae   : > { %3920 = vmatpush1.bf16.msra.mxu1 %v6804_v57  ;;  %v7732_v57 = vld [vmem:[%s9513_s1 + $0x140] sm:$0xff]  }
  0xaf   : > { %1972 = vmatmul.mubr.bf16.gmra.mrb[48].mxu0 %v6763_v25  ;;  %3921 = vmatprep.subr.bf16.mxu1 %v7165_v1 }
  0xb0   : > { %1979 = vmatprep.mubr.bf16.mxu0 %v7687_v20  ;;  %6471 = vmatprep.subr.bf16.mxu0 %v7732_v57 }
  0xb1   : > { %2919 = vmatmul.mubr.bf16.gmra.mrb[64].mxu1 %v7608_v35  ;;  %v919_v35 = vrot.slane %v917_v5, 1  ;;  %v6780_v5 = vld [vmem:[%s7261_s16 + $0xa0] sm:$0xff]  }
  0xb2   : > { %2926 = vmatprep.mubr.bf16.mxu1 %v7616_v43  ;;  %v953_v36 = vshrl.u32 %v6780_v5, 16 }
  0xb3   : > { %v7707_v55 = vsel %vm788_vm1, %v915_v21, %v919_v35  ;;  %v923_v62 = vor.u32 %v921_v49, %v919_v35  ;;  %v6816_v35 = vld [vmem:[%s9513_s1 + $0x1e8] sm:$0xff]   ;;  %v949_v49 = vshll.u32 %v6780_v5, 16 }
  0xb4   : > { %9576 = vst [vmem:[#allocation17_spill] sm:$0xff] %v7707_v55 }
  0xb5   : > { %v7719_v6 = vsel %vm788_vm1, %v923_v62, %v927_v31  ;;  %v951_v62 = vrot.slane %v949_v49, 1  ;;  %v6782_v31 = vld [vmem:[%s7261_s16 + $0xa8] sm:$0xff]  }
  0xb6   : > { %9577 = vst [vmem:[#allocation18_spill] sm:$0xff] %v7719_v6 }
  0xb7   : > { %1980 = vmatmul.mubr.bf16.gmra.mrb[52].mxu0 %v6766_v44 }
  0xb8   : > { %1987 = vmatprep.mubr.bf16.mxu0 %v7699_v13 }
  0xb9   : > { %2927 = vmatmul.mubr.bf16.gmra.mrb[68].mxu1 %v7627_v46  ;;  %v6809_v46 = vld [vmem:[%s9513_s1 + $0x1e0] sm:$0xff]  }
  0xba   : > { %2934 = vmatprep.mubr.bf16.mxu1 %v7635_v60  ;;  %3922 = vmatpush1.bf16.msra.mxu1 %v6809_v46 }
  0xbb   : > { %3923 = vmatprep.subr.bf16.mxu1 %v7165_v1 }
  0xbe   : > { %3924 = vmatpush1.bf16.msra.mxu1 %v6816_v35  ;;  %v6787_v35 = vld [vmem:[%s7261_s16 + $0xb8] sm:$0xff]  }
  0xbf   : > { %1988 = vmatmul.mubr.bf16.gmra.mrb[56].mxu0 %v6768_v22  ;;  %3925 = vmatprep.subr.bf16.mxu1 %v7165_v1 }
  0xc0   : > { %1995 = vmatprep.mubr.bf16.mxu0 %v7707_v55 }
  0xc1   : > { %2935 = vmatmul.mubr.bf16.gmra.mrb[72].mxu1 %v7646_v3  ;;  %v933_v3 = vshll.u32 %v6775_v0, 16  ;;  %v6778_v0 = vld [vmem:[%s7261_s16 + $0x90] sm:$0xff]  }
  0xc2   : > { %2942 = vmatprep.mubr.bf16.mxu1 %v7654_v23 }
  0xc3   : > { %v935_v41 = vrot.slane %v933_v3, 1  ;;  %v957_v3 = vshll.u32 %v6782_v31, 16 }
  0xc5   : > { %v7727_v51 = vsel %vm788_vm1, %v931_v39, %v935_v41  ;;  %v955_v39 = vor.u32 %v953_v36, %v951_v62  ;;  %v6833_v36 = vld [vmem:[%s9513_s1 + $0x1f8] sm:$0xff]  }
  0xc6   : > { %9578 = vst [vmem:[#allocation19_spill] sm:$0xff] %v7727_v51 }
  0xc7   : > { %1996 = vmatmul.mubr.bf16.gmra.mrb[60].mxu0 %v6771_v33 }
  0xc8   : > { %2003 = vmatprep.mubr.bf16.mxu0 %v7719_v6 }
  0xc9   : > { %2943 = vmatmul.mubr.bf16.gmra.mrb[76].mxu1 %v7665_v24  ;;  %v939_v24 = vor.u32 %v937_v9, %v935_v41  ;;  %v959_v41 = vrot.slane %v957_v3, 1  ;;  %v6781_v9 = vld [vmem:[%s7261_s16 + $0x98] sm:$0xff]   ;;  %v6786_v3 = vld [vmem:[%s7261_s16 + $0xa8] sm:$0xff]  }
  0xca   : > { %2950 = vmatprep.mubr.bf16.mxu1 %v7673_v34 }
  0xcb   : > { %v7744_v21 = vsel %vm788_vm1, %v939_v24, %v943_v63  ;;  %v7762_v53 = vsel %vm788_vm1, %v955_v39, %v959_v41  ;;  %v961_v24 = vshrl.u32 %v6782_v31, 16 }
  0xcc   : > { %9579 = vst [vmem:[#allocation20_spill] sm:$0xff] %v7744_v21  ;;  %9581 = vst [vmem:[#allocation22_spill] sm:$0xff] %v7762_v53 }
  0xcf   : > { %2004 = vmatmul.mubr.bf16.gmra.mrb[64].mxu0 %v6773_v47 }
  0xd0   : > { %2011 = vmatprep.mubr.bf16.mxu0 %v7727_v51 }
  0xd1   : > { %2951 = vmatmul.mubr.bf16.gmra.mrb[80].mxu1 %v6763_v25  ;;  %v945_v25 = vshrl.u32 %v6777_v17, 16  ;;  %v6824_v17 = vld [vmem:[%s9513_s1 + $0x1f0] sm:$0xff]  }
  0xd2   : > { %2958 = vmatprep.mubr.bf16.mxu1 %v7687_v20  ;;  %3926 = vmatpush1.bf16.msra.mxu1 %v6824_v17 }
  0xd3   : > { %v947_v26 = vor.u32 %v945_v25, %v943_v63  ;;  %3927 = vmatprep.subr.bf16.mxu1 %v7165_v1  ;;  %v963_v63 = vor.u32 %v961_v24, %v959_v41  ;;  %v6783_v25 = vld [vmem:[%s7261_s16 + $0xa0] sm:$0xff]   ;;  %v977_v41 = vshrl.u32 %v6787_v35, 16  ;;  %v6792_v24 = vld [vmem:[%s7261_s16 + $0xc8] sm:$0xff]  }
  0xd5   : > { %v7751_v46 = vsel %vm788_vm1, %v947_v26, %v951_v62  ;;  %v973_v26 = vshll.u32 %v6787_v35, 16 }
  0xd6   : > { %9580 = vst [vmem:[#allocation21_spill] sm:$0xff] %v7751_v46  ;;  %3928 = vmatpush1.bf16.msra.mxu1 %v6833_v36 }
  0xd7   : > { %2012 = vmatmul.mubr.bf16.gmra.mrb[68].mxu0 %v6776_v16  ;;  %v975_v31 = vrot.slane %v973_v26, 1  ;;  %v6795_v26 = vld [vmem:[%s7261_s16 + $0xd0] sm:$0xff]  }
  0xd8   : > { %2019 = vmatprep.mubr.bf16.mxu0 %v7744_v21 }
  0xd9   : > { %2959 = vmatmul.mubr.bf16.gmra.mrb[84].mxu1 %v6766_v44  ;;  %v6785_v44 = vld [vmem:[%s7261_s16 + $0xb0] sm:$0xff]  }
  0xda   : > { %2966 = vmatprep.mubr.bf16.mxu1 %v7699_v13  ;;  %v969_v1 = vshrl.u32 %v6785_v44, 16 }
  0xdf   : > { %2020 = vmatmul.mubr.bf16.gmra.mrb[72].mxu0 %v6778_v0 }
  0xe0   : > { %2027 = vmatprep.mubr.bf16.mxu0 %v7751_v46 }
  0xe1   : > { %2967 = vmatmul.mubr.bf16.gmra.mrb[88].mxu1 %v6768_v22  ;;  %v965_v22 = vshll.u32 %v6785_v44, 16 }
  0xe2   : > { %2974 = vmatprep.mubr.bf16.mxu1 %v7707_v55 }
  0xe3   : > { %v967_v5 = vrot.slane %v965_v22, 1  ;;  %v7785_v22 = vld [vmem:[%s7261_s16 + $0xb0] sm:$0xff]  }
  0xe5   : > { %v7769_v49 = vsel %vm788_vm1, %v963_v63, %v967_v5  ;;  %v971_v62 = vor.u32 %v969_v1, %v967_v5  ;;  %v989_v1 = vshll.u32 %v6792_v24, 16 }
  0xe6   : > { %9582 = vst [vmem:[#allocation23_spill] sm:$0xff] %v7769_v49 }
  0xe7   : > { %2028 = vmatmul.mubr.bf16.gmra.mrb[76].mxu0 %v6781_v9  ;;  %v7779_v39 = vsel %vm788_vm1, %v971_v62, %v975_v31  ;;  %v7795_v62 = vld [vmem:[%s7261_s16 + $0xb8] sm:$0xff]  }
  0xe8   : > { %2035 = vmatprep.mubr.bf16.mxu0 %v7762_v53  ;;  %9583 = vst [vmem:[#allocation24_spill] sm:$0xff] %v7779_v39 }
  0xe9   : > { %2975 = vmatmul.mubr.bf16.gmra.mrb[92].mxu1 %v6771_v33  ;;  %v6790_v33 = vld [vmem:[%s7261_s16 + $0xc0] sm:$0xff]  }
  0xea   : > { %2982 = vmatprep.mubr.bf16.mxu1 %v7719_v6  ;;  %v981_v44 = vshll.u32 %v6790_v33, 16  ;;  %v985_v5 = vshrl.u32 %v6790_v33, 16 }
  0xec   : > { %v983_v17 = vrot.slane %v981_v44, 1  ;;  %v997_v44 = vshll.u32 %v6795_v26, 16 }
  0xee   : > { %v987_v35 = vor.u32 %v985_v5, %v983_v17  ;;  %v999_v5 = vrot.slane %v997_v44, 1  ;;  %v6800_v44 = vld [vmem:[%s7261_s16 + $0xe0] sm:$0xff]  }
  0xef   : > { %2036 = vmatmul.mubr.bf16.gmra.mrb[80].mxu0 %v6783_v25  ;;  %v1013_v2 = vshll.u32 %v6800_v44, 16  ;;  %v1017_v32 = vshrl.u32 %v6800_v44, 16  ;;  %v7870_v44 = vld [vmem:[%s7261_s16 + $0xd8] sm:$0xff]  }
  0xf0   : > { %2043 = vmatprep.mubr.bf16.mxu0 %v7769_v49 }
  0xf1   : > { %2983 = vmatmul.mubr.bf16.gmra.mrb[96].mxu1 %v6773_v47  ;;  %v979_v47 = vor.u32 %v977_v41, %v975_v31  ;;  %v993_v41 = vshrl.u32 %v6792_v24, 16 }
  0xf2   : > { %2990 = vmatprep.mubr.bf16.mxu1 %v7727_v51 }
  0xf3   : > { %v7788_v63 = vsel %vm788_vm1, %v979_v47, %v983_v17 }
  0xf4   : > { %9584 = vst [vmem:[#allocation25_spill] sm:$0xff] %v7788_v63 }
  0xf7   : > { %2044 = vmatmul.mubr.bf16.gmra.mrb[84].mxu0 %v6786_v3 }
  0xf8   : > { %2051 = vmatprep.mubr.bf16.mxu0 %v7779_v39 }
  0xf9   : > { %2991 = vmatmul.mubr.bf16.gmra.mrb[100].mxu1 %v6776_v16  ;;  %v991_v16 = vrot.slane %v989_v1, 1  ;;  %v6797_v1 = vld [vmem:[%s7261_s16 + $0xd8] sm:$0xff]  }
  0xfa   : > { %2998 = vmatprep.mubr.bf16.mxu1 %v7744_v21  ;;  %v1005_v61 = vshll.u32 %v6797_v1, 16  ;;  %v1009_v50 = vshrl.u32 %v6797_v1, 16 }
  0xfb   : > { %v7802_v33 = vsel %vm788_vm1, %v987_v35, %v991_v16  ;;  %v995_v17 = vor.u32 %v993_v41, %v991_v16  ;;  %v7813_v35 = vld [vmem:[%s7261_s16 + $0xc0] sm:$0xff]  }
  0xfc   : > { %9585 = vst [vmem:[#allocation26_spill] sm:$0xff] %v7802_v33  ;;  %v1007_v41 = vrot.slane %v1005_v61, 1 }
  0xfd   : > { %v7820_v15 = vsel %vm788_vm1, %v995_v17, %v999_v5  ;;  %v7831_v17 = vld [vmem:[%s7261_s16 + $0xc8] sm:$0xff]  }
  0xfe   : > { %9586 = vst [vmem:[#allocation27_spill] sm:$0xff] %v7820_v15  ;;  %v1011_v61 = vor.u32 %v1009_v50, %v1007_v41 }
  0xff   : > { %2052 = vmatmul.mubr.bf16.gmra.mrb[88].mxu0 %v7785_v22 }
 0x100   : > { %2059 = vmatprep.mubr.bf16.mxu0 %v7788_v63 }
 0x101   : > { %2999 = vmatmul.mubr.bf16.gmra.mrb[104].mxu1 %v6778_v0 }
 0x102   : > { %3006 = vmatprep.mubr.bf16.mxu1 %v7751_v46  ;;  %v1001_v46 = vshrl.u32 %v6795_v26, 16 }
 0x103   : > { %v7797_v31 = vpop.f32.mrb[0].mxu1 }
 0x104   : > { %v7799_v36 = vpop.f32.mrb[1].mxu1  ;;  %v1003_v16 = vor.u32 %v1001_v46, %v999_v5  ;;  %v6802_v5 = vld [vmem:[%s7261_s16 + $0xe8] sm:$0xff]  }
 0x105   : > { %v7804_v47 = vpop.f32.mrb[2].mxu1  ;;  %v1021_v6 = vshll.u32 %v6802_v5, 16 }
 0x106   : > { %v7806_v0 = vpop.f32.mrb[3].mxu1  ;;  %v7838_v21 = vsel %vm788_vm1, %v1003_v16, %v1007_v41  ;;  %v6805_v41 = vld [vmem:[%s7261_s16 + $0xf0] sm:$0xff]  }
 0x107   : > { %2060 = vmatmul.mubr.bf16.gmra.mrb[92].mxu0 %v7795_v62  ;;  %9587 = vst [vmem:[#allocation28_spill] sm:$0xff] %v7838_v21 }
 0x108   : > { %2067 = vmatprep.mubr.bf16.mxu0 %v7802_v33 }
 0x109   : > { %3007 = vmatmul.mubr.bf16.gmra.mrb[108].mxu1 %v6781_v9 }
 0x10a   : > { %3014 = vmatprep.mubr.bf16.mxu1 %v7762_v53 }
 0x10b   : > { %v7815_v24 = vpop.f32.mrb[4].mxu1 }
 0x10c   : > { %v7817_v54 = vpop.f32.mrb[5].mxu1 }
 0x10d   : > { %v7822_v48 = vpop.f32.mrb[6].mxu1 }
 0x10e   : > { %v7824_v9 = vpop.f32.mrb[7].mxu1 }
 0x10f   : > { %2068 = vmatmul.mubr.bf16.gmra.mrb[96].mxu0 %v7813_v35 }
 0x110   : > { %2075 = vmatprep.mubr.bf16.mxu0 %v7820_v15 }
 0x111   : > { %3015 = vmatmul.mubr.bf16.gmra.mrb[112].mxu1 %v6783_v25  ;;  %v1015_v25 = vrot.slane %v1013_v2, 1 }
 0x112   : > { %3022 = vmatprep.mubr.bf16.mxu1 %v7769_v49  ;;  %v7849_v49 = vld [vmem:[%s7261_s16 + $0xd0] sm:$0xff]  }
 0x113   : > { %v7833_v26 = vpop.f32.mrb[8].mxu1  ;;  %v7856_v11 = vsel %vm788_vm1, %v1011_v61, %v1015_v25  ;;  %v1019_v2 = vor.u32 %v1017_v32, %v1015_v25 }
 0x114   : > { %v7835_v53 = vpop.f32.mrb[9].mxu1  ;;  %9588 = vst [vmem:[#allocation29_spill] sm:$0xff] %v7856_v11 }
 0x115   : > { %v7840_v51 = vpop.f32.mrb[10].mxu1 }
 0x116   : > { %v7842_v46 = vpop.f32.mrb[11].mxu1 }
 0x117   : > { %2076 = vmatmul.mubr.bf16.gmra.mrb[100].mxu0 %v7831_v17 }
 0x118   : > { %2083 = vmatprep.mubr.bf16.mxu0 %v7838_v21 }
 0x119   : > { %3023 = vmatmul.mubr.bf16.gmra.mrb[116].mxu1 %v6786_v3  ;;  %v1023_v3 = vrot.slane %v1021_v6, 1  ;;  %v1025_v6 = vshrl.u32 %v6802_v5, 16  ;;  %v7893_v5 = vld [vmem:[%s7261_s16 + $0xe0] sm:$0xff]  }
 0x11a   : > { %3030 = vmatprep.mubr.bf16.mxu1 %v7779_v39 }
 0x11b   : > { %v7851_v16 = vpop.f32.mrb[12].mxu1  ;;  %v7879_v32 = vsel %vm788_vm1, %v1019_v2, %v1023_v3 }
 0x11c   : > { %v7853_v1 = vpop.f32.mrb[13].mxu1  ;;  %9592 = vst [vmem:[#allocation33_spill] sm:$0xff] %v7879_v32 }
 0x11d   : > { %v7858_v7 = vpop.f32.mrb[14].mxu1 }
 0x11e   : > { %v7860_v50 = vpop.f32.mrb[15].mxu1 }
 0x11f   : > { %2084 = vmatmul.mubr.bf16.gmra.mrb[104].mxu0 %v7849_v49 }
 0x120   : > { %2091 = vmatprep.mubr.bf16.mxu0 %v7856_v11 }
 0x121   : > { %3031 = vmatmul.mubr.bf16.gmra.mrb[120].mxu1 %v7785_v22  ;;  %v1029_v22 = vshll.u32 %v6805_v41, 16 }
 0x122   : > { %v7866_v39 = vpop.f32.mrb[0].mxu0  ;;  %3038 = vmatprep.mubr.bf16.mxu1 %v7788_v63  ;;  %v6807_v63 = vld [vmem:[%s7261_s16 + $0xf8] sm:$0xff]  }
 0x123   : > { %9589 = vst [vmem:[#allocation30_spill] sm:$0xff] %v7866_v39  ;;  %v1879_v61 = vpop.f32.mrb[1].mxu0 }
 0x124   : > { %v7872_v8 = vpop.f32.mrb[16].mxu1  ;;  %v7874_v55 = vpop.f32.mrb[2].mxu0  ;;  %v1027_v61 = vor.u32 %v1025_v6, %v1023_v3  ;;  %v1033_v3 = vshrl.u32 %v6805_v41, 16  ;;  %v1037_v6 = vshll.u32 %v6807_v63, 16 }
 0x125   : > { %9590 = vst [vmem:[#allocation31_spill] sm:$0xff] %v7872_v8  ;;  %9591 = vst [vmem:[#allocation32_spill] sm:$0xff] %v7874_v55  ;;  %v7876_v4 = vpop.f32.mrb[17].mxu1  ;;  %v1882_v52 = vpop.f32.mrb[3].mxu0  ;;  %v1031_v55 = vrot.slane %v1029_v22, 1 }
 0x126   : > { %v7881_v25 = vpop.f32.mrb[18].mxu1 }
 0x127   : > { %9593 = vst [vmem:[#allocation34_spill] sm:$0xff] %v7881_v25  ;;  %v7883_v39 = vpop.f32.mrb[19].mxu1  ;;  %2092 = vmatmul.mubr.bf16.gmra.mrb[108].mxu0 %v7870_v44 }
 0x128   : > { %9594 = vst [vmem:[#allocation35_spill] sm:$0xff] %v7883_v39  ;;  %2099 = vmatprep.mubr.bf16.mxu0 %v7879_v32 }
 0x129   : > { %3039 = vmatmul.mubr.bf16.gmra.mrb[124].mxu1 %v7795_v62  ;;  %v7902_v62 = vsel %vm788_vm1, %v1027_v61, %v1031_v55  ;;  %v7918_v61 = vld [vmem:[%s7261_s16 + $0xe8] sm:$0xff]  }
 0x12a   : > { %v7889_v8 = vpop.f32.mrb[4].mxu0  ;;  %3046 = vmatprep.mubr.bf16.mxu1 %v7802_v33  ;;  %9599 = vst [vmem:[#allocation40_spill] sm:$0xff] %v7902_v62  ;;  %v7912_v33 = vld [vmem:[%s7261_s16 + $0x100] sm:$0xff]  }
 0x12b   : > { %9595 = vst [vmem:[#allocation36_spill] sm:$0xff] %v7889_v8  ;;  %v1887_v52 = vpop.f32.mrb[5].mxu0 }
 0x12c   : > { %v7895_v2 = vpop.f32.mrb[20].mxu1  ;;  %v7897_v25 = vpop.f32.mrb[6].mxu0  ;;  %v1035_v52 = vor.u32 %v1033_v3, %v1031_v55  ;;  %v1045_v3 = vshll.u32 %v7912_v33, 16 }
 0x12d   : > { %9596 = vst [vmem:[#allocation37_spill] sm:$0xff] %v7895_v2  ;;  %9597 = vst [vmem:[#allocation38_spill] sm:$0xff] %v7897_v25  ;;  %v7899_v13 = vpop.f32.mrb[21].mxu1  ;;  %v1890_v38 = vpop.f32.mrb[7].mxu0  ;;  %v1039_v25 = vrot.slane %v1037_v6, 1 }
 0x12e   : > { %9598 = vst [vmem:[#allocation39_spill] sm:$0xff] %v7899_v13  ;;  %v7904_v22 = vpop.f32.mrb[22].mxu1 }
 0x12f   : > { %9600 = vst [vmem:[#allocation41_spill] sm:$0xff] %v7904_v22  ;;  %v7906_v8 = vpop.f32.mrb[23].mxu1  ;;  %2100 = vmatmul.mubr.bf16.gmra.mrb[112].mxu0 %v7893_v5  ;;  %v7927_v55 = vsel %vm788_vm1, %v1035_v52, %v1039_v25 }
 0x130   : > { %9601 = vst [vmem:[#allocation42_spill] sm:$0xff] %v7906_v8  ;;  %2107 = vmatprep.mubr.bf16.mxu0 %v7902_v62  ;;  %9606 = vst [vmem:[#allocation47_spill] sm:$0xff] %v7927_v55 }
 0x131   : > { %3047 = vmatmul.mubr.bf16.gmra.mrb[128].mxu1 %v7813_v35  ;;  %v1041_v35 = vshrl.u32 %v6807_v63, 16 }
 0x132   : > { %v7914_v38 = vpop.f32.mrb[8].mxu0  ;;  %3054 = vmatprep.mubr.bf16.mxu1 %v7820_v15 }
 0x133   : > { %9602 = vst [vmem:[#allocation43_spill] sm:$0xff] %v7914_v38  ;;  %v1895_v41 = vpop.f32.mrb[9].mxu0  ;;  %v7943_v38 = vld [vmem:[%s7261_s16 + $0xf0] sm:$0xff]  }
 0x134   : > { %v7920_v22 = vpop.f32.mrb[24].mxu1  ;;  %v7922_v2 = vpop.f32.mrb[10].mxu0 }
 0x135   : > { %9603 = vst [vmem:[#allocation44_spill] sm:$0xff] %v7920_v22  ;;  %9604 = vst [vmem:[#allocation45_spill] sm:$0xff] %v7922_v2  ;;  %v7924_v8 = vpop.f32.mrb[25].mxu1  ;;  %v1898_v13 = vpop.f32.mrb[11].mxu0  ;;  %v1043_v2 = vor.u32 %v1041_v35, %v1039_v25  ;;  %v6812_v25 = vld [vmem:[%s7261_s16] sm:$0xfe]  }
 0x136   : > { %9605 = vst [vmem:[#allocation46_spill] sm:$0xff] %v7924_v8  ;;  %v7930_v6 = vpop.f32.mrb[26].mxu1  ;;  %v7937_v13 = vrot.slane %v1045_v3, 1  ;;  %v6813_v35 = vld [vmem:[%s7261_s16 + $0x8] sm:$0xff]  }
 0x137   : > { %9607 = vst [vmem:[#allocation48_spill] sm:$0xff] %v7930_v6  ;;  %v7932_v41 = vpop.f32.mrb[27].mxu1  ;;  %2108 = vmatmul.mubr.bf16.gmra.mrb[116].mxu0 %v7918_v61 }
 0x138   : > { %9608 = vst [vmem:[#allocation49_spill] sm:$0xff] %v7932_v41  ;;  %2115 = vmatprep.mubr.bf16.mxu0 %v7927_v55 }
 0x139   : > { %3055 = vmatmul.mubr.bf16.gmra.mrb[132].mxu1 %v7831_v17  ;;  %v7953_v17 = vsel %vm788_vm1, %v1043_v2, %v7937_v13 }
 0x13a   : > { %v7939_v52 = vpop.f32.mrb[12].mxu0  ;;  %3062 = vmatprep.mubr.bf16.mxu1 %v7838_v21  ;;  %9613 = vst [vmem:[#allocation54_spill] sm:$0xff] %v7953_v17  ;;  %v7968_v21 = vld [vmem:[%s7261_s16 + $0xf8] sm:$0xff]  }
 0x13b   : > { %9609 = vst [vmem:[#allocation50_spill] sm:$0xff] %v7939_v52  ;;  %v1903_v63 = vpop.f32.mrb[13].mxu0 }
 0x13c   : > { %v7945_v15 = vpop.f32.mrb[28].mxu1  ;;  %v7947_v6 = vpop.f32.mrb[14].mxu0 }
 0x13d   : > { %9610 = vst [vmem:[#allocation51_spill] sm:$0xff] %v7945_v15  ;;  %9611 = vst [vmem:[#allocation52_spill] sm:$0xff] %v7947_v6  ;;  %v7949_v22 = vpop.f32.mrb[29].mxu1  ;;  %v1906_v41 = vpop.f32.mrb[15].mxu0  ;;  %v1410_v6 = vrot.slane %v6812_v25, 1  ;;  %v6818_v25 = vld [vmem:[%s7261_s16 + $0x18] sm:$0xff]  }
 0x13e   : > { %9612 = vst [vmem:[#allocation53_spill] sm:$0xff] %v7949_v22  ;;  %v7957_v3 = vpop.f32.mrb[30].mxu1  ;;  %v1411_v41 = vrot.slane %v6813_v35, 1 }
 0x13f   : > { %9614 = vst [vmem:[#allocation55_spill] sm:$0xff] %v7957_v3  ;;  %v7959_v63 = vpop.f32.mrb[31].mxu1  ;;  %2116 = vmatmul.mubr.bf16.gmra.mrb[120].mxu0 %v7943_v38 }
 0x140   : > { %9615 = vst [vmem:[#allocation56_spill] sm:$0xff] %v7959_v63  ;;  %2123 = vmatprep.mubr.bf16.mxu0 %v7953_v17  ;;  %v6814_v63 = vld [vmem:[%s7261_s16 + $0x10] sm:$0xff]  }
 0x141   : > { %3063 = vmatmul.mubr.bf16.gmra.mrb[136].mxu1 %v7849_v49  ;;  %v1412_v49 = vsel %vm1409_vm0, %v1410_v6, %v1411_v41 }
 0x142   : > { %v7964_v52 = vpop.f32.mrb[16].mxu0  ;;  %3070 = vmatprep.mubr.bf16.mxu1 %v7856_v11 }
 0x143   : > { %9616 = vst [vmem:[#allocation57_spill] sm:$0xff] %v7964_v52  ;;  %v1911_v2 = vpop.f32.mrb[17].mxu0 }
 0x144   : > { %v7970_v15 = vpop.f32.mrb[32].mxu1  ;;  %v7972_v3 = vpop.f32.mrb[18].mxu0  ;;  %v1413_v2 = vrot.slane %v6814_v63, 1 }
 0x145   : > { %9617 = vst [vmem:[#allocation58_spill] sm:$0xff] %v7970_v15  ;;  %9618 = vst [vmem:[#allocation59_spill] sm:$0xff] %v7972_v3  ;;  %v7975_v22 = vpop.f32.mrb[33].mxu1  ;;  %v1914_v8 = vpop.f32.mrb[19].mxu0  ;;  %v1415_v3 = vrot.slane %v6818_v25, 1 }
 0x146   : > { %9619 = vst [vmem:[#allocation60_spill] sm:$0xff] %v7975_v22  ;;  %v7979_v35 = vpop.f32.mrb[34].mxu1 }
 0x147   : > { %9620 = vst [vmem:[#allocation61_spill] sm:$0xff] %v7979_v35  ;;  %v7981_v52 = vpop.f32.mrb[35].mxu1  ;;  %2124 = vmatmul.mubr.bf16.gmra.mrb[124].mxu0 %v7968_v21  ;;  %v1414_v35 = vsel %vm1409_vm0, %v1411_v41, %v1413_v2  ;;  %v8000_v63 = vsel %vm1409_vm0, %v1413_v2, %v1415_v3 }
 0x148   : > { %9621 = vst [vmem:[#allocation62_spill] sm:$0xff] %v7981_v52  ;;  %6407 = vmatprep.mubr.bf16.mxu0 %v1412_v49  ;;  %v6819_v52 = vld [vmem:[%s7261_s16 + $0x20] sm:$0xff]   ;;  %v6821_v49 = vld [vmem:[%s7261_s16 + $0x28] sm:$0xff]  }
 0x149   : > { %3071 = vmatmul.mubr.bf16.gmra.mrb[140].mxu1 %v7870_v44  ;;  %v6817_v44 = vld [vmem:[%s9513_s1 + $0x148] sm:$0xff]   ;;  %v1417_v41 = vrot.slane %v6819_v52, 1  ;;  %v1419_v2 = vrot.slane %v6821_v49, 1  ;;  %v6825_v49 = vld [vmem:[%s7261_s16 + $0x38] sm:$0xff]  }
 0x14a   : > { %v7985_v11 = vpop.f32.mrb[20].mxu0  ;;  %3078 = vmatprep.mubr.bf16.mxu1 %v7879_v32 }
 0x14b   : > { %9622 = vst [vmem:[#allocation63_spill] sm:$0xff] %v7985_v11  ;;  %v1919_v8 = vpop.f32.mrb[21].mxu0  ;;  %v8021_v52 = vsel %vm1409_vm0, %v1415_v3, %v1417_v41  ;;  %v1423_v3 = vrot.slane %v6825_v49, 1 }
 0x14c   : > { %v7988_v15 = vpop.f32.mrb[36].mxu1  ;;  %v7990_v6 = vpop.f32.mrb[22].mxu0 }
 0x14d   : > { %9623 = vst [vmem:[#allocation64_spill] sm:$0xff] %v7988_v15  ;;  %9624 = vst [vmem:[#allocation65_spill] sm:$0xff] %v7990_v6  ;;  %v7994_v22 = vpop.f32.mrb[37].mxu1  ;;  %v1922_v37 = vpop.f32.mrb[23].mxu0  ;;  %v8025_v15 = vsel %vm1409_vm0, %v1417_v41, %v1419_v2  ;;  %v6831_v41 = vld [vmem:[%s7261_s16 + $0x108] sm:$0xff]  }
 0x14e   : > { %9625 = vst [vmem:[#allocation66_spill] sm:$0xff] %v7994_v22  ;;  %v8003_v25 = vpop.f32.mrb[38].mxu1  ;;  %v6820_v37 = vld [vmem:[%s9513_s1 + $0x150] sm:$0xff]  }
 0x14f   : > { %9626 = vst [vmem:[#allocation67_spill] sm:$0xff] %v8003_v25  ;;  %v8005_v8 = vpop.f32.mrb[39].mxu1  ;;  %6408 = vmatmul.mubr.bf16.vlgmr.msra.gmra.mrb[128].mxu0 %v1414_v35 }
 0x150   : > { %9627 = vst [vmem:[#allocation68_spill] sm:$0xff] %v8005_v8  ;;  %6472 = vmatpush3.bf16.msra.mxu0 %v7732_v57  ;;  %6411 = vmatprep.mubr.bf16.mxu0 %v8000_v63 }
 0x151   : > { %3079 = vmatmul.mubr.bf16.gmra.mrb[144].mxu1 %v7893_v5  ;;  %6473 = vmatprep.subr.bf16.mxu0 %v6817_v44  ;;  %v6822_v5 = vld [vmem:[%s7261_s16 + $0x30] sm:$0xff]  }
 0x152   : > { %v8013_v32 = vpop.f32.mrb[24].mxu0  ;;  %3086 = vmatprep.mubr.bf16.mxu1 %v7902_v62 }
 0x153   : > { %9628 = vst [vmem:[#allocation69_spill] sm:$0xff] %v8013_v32  ;;  %v1927_v6 = vpop.f32.mrb[25].mxu0 }
 0x154   : > { %v8016_v35 = vpop.f32.mrb[40].mxu1  ;;  %v8018_v57 = vpop.f32.mrb[26].mxu0  ;;  %6474 = vmatpush3.bf16.msra.mxu0 %v6817_v44  ;;  %v6823_v6 = vld [vmem:[%s9513_s1 + $0x158] sm:$0xff]   ;;  %v6827_v44 = vld [vmem:[%s9513_s1 + $0x160] sm:$0xff]  }
 0x155   : > { %9629 = vst [vmem:[#allocation70_spill] sm:$0xff] %v8016_v35  ;;  %9630 = vst [vmem:[#allocation71_spill] sm:$0xff] %v8018_v57  ;;  %v2874_v11 = vpop.f32.mrb[41].mxu1  ;;  %v1930_v25 = vpop.f32.mrb[27].mxu0  ;;  %6475 = vmatprep.subr.bf16.mxu0 %v6820_v37 }
 0x156   : > { %v8031_v35 = vpop.f32.mrb[42].mxu1  ;;  %v1421_v11 = vrot.slane %v6822_v5, 1 }
 0x157   : > { %9631 = vst [vmem:[#allocation72_spill] sm:$0xff] %v8031_v35  ;;  %v2877_v62 = vpop.f32.mrb[43].mxu1  ;;  %6412 = vmatmul.mubr.bf16.gmra.mrb[132].mxu0 %v8021_v52 }
 0x158   : > { %6476 = vmatpush3.bf16.msra.mxu0 %v6820_v37  ;;  %6415 = vmatprep.mubr.bf16.mxu0 %v8025_v15  ;;  %v8048_v5 = vsel %vm1409_vm0, %v1419_v2, %v1421_v11  ;;  %v8052_v32 = vsel %vm1409_vm0, %v1421_v11, %v1423_v3  ;;  %v1049_v2 = vshrl.u32 %v7912_v33, 16 }
 0x159   : > { %3087 = vmatmul.mubr.bf16.gmra.mrb[148].mxu1 %v7918_v61  ;;  %6477 = vmatprep.subr.bf16.mxu0 %v6823_v6  ;;  %v6826_v61 = vld [vmem:[%s7261_s16 + $0x40] sm:$0xff]  }
 0x15a   : > { %v8039_v25 = vpop.f32.mrb[28].mxu0  ;;  %3094 = vmatprep.mubr.bf16.mxu1 %v7927_v55  ;;  %v6829_v55 = vld [vmem:[%s7261_s16 + $0x48] sm:$0xff]  }
 0x15b   : > { %9632 = vst [vmem:[#allocation73_spill] sm:$0xff] %v8039_v25  ;;  %v1935_v62 = vpop.f32.mrb[29].mxu0  ;;  %v1427_v11 = vrot.slane %v6829_v55, 1  ;;  %v6830_v55 = vld [vmem:[%s7261_s16 + $0x50] sm:$0xff]  }
 0x15c   : > { %v8043_v35 = vpop.f32.mrb[44].mxu1  ;;  %v8045_v37 = vpop.f32.mrb[30].mxu0  ;;  %6478 = vmatpush3.bf16.msra.mxu0 %v6823_v6  ;;  %v6828_v62 = vld [vmem:[%s9513_s1 + $0x168] sm:$0xff]   ;;  %v1053_v6 = vshll.u32 %v6831_v41, 16 }
 0x15d   : > { %9633 = vst [vmem:[#allocation74_spill] sm:$0xff] %v8043_v35  ;;  %9634 = vst [vmem:[#allocation75_spill] sm:$0xff] %v8045_v37  ;;  %v2882_v49 = vpop.f32.mrb[45].mxu1  ;;  %v1938_v57 = vpop.f32.mrb[31].mxu0  ;;  %6479 = vmatprep.subr.bf16.mxu0 %v6827_v44 }
 0x15e   : > { %v8058_v25 = vpop.f32.mrb[46].mxu1  ;;  %v1425_v57 = vrot.slane %v6826_v61, 1  ;;  %v6834_v49 = vld [vmem:[%s9513_s1 + $0x170] sm:$0xff]   ;;  %v1055_v37 = vrot.slane %v1053_v6, 1 }
 0x15f   : > { %9635 = vst [vmem:[#allocation76_spill] sm:$0xff] %v8058_v25  ;;  %v2885_v35 = vpop.f32.mrb[47].mxu1  ;;  %6416 = vmatmul.mubr.bf16.gmra.mrb[136].mxu0 %v8048_v5  ;;  %v1051_v25 = vor.u32 %v1049_v2, %v7937_v13  ;;  %v6836_v61 = vld [vmem:[%s7261_s16 + $0x110] sm:$0xff]   ;;  %v6838_v13 = vld [vmem:[%s9513_s1 + $0x178] sm:$0xff]  }
 0x160   : > { %6419 = vmatprep.mubr.bf16.mxu0 %v8052_v32  ;;  %6480 = vmatpush3.bf16.msra.mxu0 %v6827_v44 }
 0x161   : > { %3095 = vmatmul.mubr.bf16.gmra.mrb[152].mxu1 %v7943_v38  ;;  %6481 = vmatprep.subr.bf16.mxu0 %v6828_v62  ;;  %v8077_v38 = vsel %vm1409_vm0, %v1423_v3, %v1425_v57  ;;  %v8091_v3 = vsel %vm788_vm1, %v1051_v25, %v1055_v37 }
 0x162   : > { %v8067_v35 = vpop.f32.mrb[32].mxu0  ;;  %3102 = vmatprep.mubr.bf16.mxu1 %v7953_v17  ;;  %v8111_v17 = vld [vmem:[%s7261_s16 + $0x100] sm:$0xff]  }
 0x163   : > { %9636 = vst [vmem:[#allocation77_spill] sm:$0xff] %v8067_v35  ;;  %v1943_v33 = vpop.f32.mrb[33].mxu0  ;;  %v8081_v35 = vsel %vm1409_vm0, %v1425_v57, %v1427_v11  ;;  %9641 = vst [vmem:[#allocation82_spill] sm:$0xff] %v8111_v17 }
 0x164   : > { %v8072_v8 = vpop.f32.mrb[48].mxu1  ;;  %v8074_v44 = vpop.f32.mrb[34].mxu0  ;;  %6482 = vmatpush3.bf16.msra.mxu0 %v6828_v62  ;;  %v6835_v33 = vld [vmem:[%s7261_s16 + $0x58] sm:$0xff]   ;;  %v1057_v62 = vshrl.u32 %v6831_v41, 16 }
 0x165   : > { %9637 = vst [vmem:[#allocation78_spill] sm:$0xff] %v8072_v8  ;;  %9638 = vst [vmem:[#allocation79_spill] sm:$0xff] %v8074_v44  ;;  %v2890_v22 = vpop.f32.mrb[49].mxu1  ;;  %v1946_v39 = vpop.f32.mrb[35].mxu0  ;;  %6483 = vmatprep.subr.bf16.mxu0 %v6834_v49  ;;  %v1431_v57 = vrot.slane %v6835_v33, 1 }
 0x166   : > { %v8087_v2 = vpop.f32.mrb[50].mxu1  ;;  %v1061_v22 = vshll.u32 %v6836_v61, 16  ;;  %v1429_v39 = vrot.slane %v6830_v55, 1  ;;  %v1059_v41 = vor.u32 %v1057_v62, %v1055_v37 }
 0x167   : > { %9639 = vst [vmem:[#allocation80_spill] sm:$0xff] %v8087_v2  ;;  %v2893_v6 = vpop.f32.mrb[51].mxu1  ;;  %6420 = vmatmul.mubr.bf16.gmra.mrb[140].mxu0 %v8077_v38 }
 0x168   : > { %6423 = vmatprep.mubr.bf16.mxu0 %v8081_v35  ;;  %6484 = vmatpush3.bf16.msra.mxu0 %v6834_v49  ;;  %v6839_v6 = vld [vmem:[%s9513_s1 + $0x200] sm:$0xff]   ;;  %v8101_v61 = vrot.slane %v1061_v22, 1  ;;  %v8114_v44 = vsel %vm1409_vm0, %v1429_v39, %v1431_v57 }
 0x169   : > { %3103 = vmatmul.mubr.bf16.gmra.mrb[156].mxu1 %v7968_v21  ;;  %6485 = vmatprep.subr.bf16.mxu0 %v6838_v13  ;;  %v8108_v21 = vsel %vm1409_vm0, %v1427_v11, %v1429_v39 }
 0x16a   : > { %v8098_v2 = vpop.f32.mrb[36].mxu0  ;;  %3110 = vmatprep.mubr.bf16.mxu1 %v8091_v3  ;;  %9640 = vst [vmem:[#allocation81_spill] sm:$0xff] %v8101_v61  ;;  %v8121_v22 = vsel %vm788_vm1, %v1059_v41, %v8101_v61  ;;  %v8138_v61 = vld [vmem:[%s7261_s16 + $0x108] sm:$0xff]  }
 0x16b   : > { %v1951_v25 = vpop.f32.mrb[37].mxu0  ;;  %9645 = vst [vmem:[#allocation85_spill] sm:$0xff] %v8138_v61 }
 0x16c   : > { %v8103_v8 = vpop.f32.mrb[52].mxu1  ;;  %v8105_v49 = vpop.f32.mrb[38].mxu0  ;;  %6486 = vmatpush3.bf16.msra.mxu0 %v6838_v13 }
 0x16d   : > { %v2898_v55 = vpop.f32.mrb[53].mxu1  ;;  %v1954_v33 = vpop.f32.mrb[39].mxu0  ;;  %6551 = vmatprep.subr.bf16.mxu0 %v6839_v6 }
 0x16e   : > { %v8116_v37 = vpop.f32.mrb[54].mxu1  ;;  %v9644_v55 = vrot.slane %v7272_v12, 1 }
 0x16f   : > { %9642 = vst [vmem:[#allocation83_spill] sm:$0xff] %v8116_v37  ;;  %v2901_v62 = vpop.f32.mrb[55].mxu1  ;;  %6424 = vmatmul.mubr.bf16.gmra.mrb[144].mxu0 %v8108_v21 }
 0x170   : > { %6427 = vmatprep.mubr.bf16.mxu0 %v8114_v44  ;;  %v8135_v33 = vsel %vm1409_vm0, %v1431_v57, %v9644_v55 }
 0x171   : > { %3111 = vmatmul.mubr.bf16.gmra.mrb[160].mxu1 %v8111_v17 }
 0x172   : > { %v8125_v11 = vpop.f32.mrb[40].mxu0  ;;  %3118 = vmatprep.mubr.bf16.mxu1 %v8121_v22 }
 0x173   : > { %v1959_v13 = vpop.f32.mrb[41].mxu0 }
 0x174   : > { %v8128_v39 = vpop.f32.mrb[56].mxu1  ;;  %v8130_v25 = vpop.f32.mrb[42].mxu0 }
 0x175   : > { %9643 = vst [vmem:[#allocation84_spill] sm:$0xff] %v8128_v39  ;;  %v2906_v41 = vpop.f32.mrb[57].mxu1  ;;  %v1962_v62 = vpop.f32.mrb[43].mxu0  ;;  %v6842_v39 = vld [vmem:[%s9513_s1 + $0x218] sm:$0xff]  }
 0x176   : > { %v8140_v37 = vpop.f32.mrb[58].mxu1 }
 0x177   : > { %9646 = vst [vmem:[#allocation86_spill] sm:$0xff] %v8140_v37  ;;  %v2909_v17 = vpop.f32.mrb[59].mxu1  ;;  %6428 = vmatmul.mubr.bf16.gmra.mrb[148].mxu0 %v8135_v33 }
 0x178   : > { %6487 = vmatprep.mubr.bf16.mxu0 %v8000_v63  ;;  %v6840_v17 = vld [vmem:[%s9513_s1 + $0x208] sm:$0xff]  }
 0x179   : > { %3119 = vmatmul.mubr.bf16.gmra.mrb[164].mxu1 %v8138_v61 }
 0x17a   : > { %v8145_v13 = vpop.f32.mrb[44].mxu0  ;;  %3929 = vmatprep.mubr.bf16.mxu1 %v7510_v27  ;;  %v7111_v27 = vld [vmem:[%s7261_s16 + $0x20] sm:$0xff]  }
 0x17b   : > { %v1967_v12 = vpop.f32.mrb[45].mxu0 }
 0x17c   : > { %v8148_v57 = vpop.f32.mrb[60].mxu1  ;;  %v8150_v55 = vpop.f32.mrb[46].mxu0  ;;  %v6841_v12 = vld [vmem:[%s9513_s1 + $0x210] sm:$0xff]  }
 0x17d   : > { %9647 = vst [vmem:[#allocation87_spill] sm:$0xff] %v8148_v57  ;;  %v2914_v41 = vpop.f32.mrb[61].mxu1  ;;  %v1970_v62 = vpop.f32.mrb[47].mxu0 }
 0x17e   : > { %v8155_v37 = vpop.f32.mrb[62].mxu1 }
 0x17f   : > { %9648 = vst [vmem:[#allocation88_spill] sm:$0xff] %v8155_v37  ;;  %v2917_v63 = vpop.f32.mrb[63].mxu1  ;;  %6488 = vmatmul.mubr.bf16.vlgmr.msra.gmra.mrb[152].mxu0 %v8021_v52 }
 0x180   : > { %6552 = vmatpush3.bf16.msra.mxu0 %v6839_v6  ;;  %6491 = vmatprep.mubr.bf16.mxu0 %v8025_v15 }
 0x181   : > { %3930 = vmatmul.mubr.bf16.vlgmr.msra.gmra.mrb[168].mxu1 %v7111_v27  ;;  %6553 = vmatprep.subr.bf16.mxu0 %v6840_v17 }
 0x182   : > { %v1973_v41 = vpop.f32.mrb[48].mxu0  ;;  %3937 = vmatprep.mubr.bf16.mxu1 %v7541_v45 }
 0x183   : > { %v8165_v62 = vadd.f32 %v7799_v36, %v1973_v41  ;;  %v1975_v63 = vpop.f32.mrb[49].mxu0  ;;  %v7112_v36 = vld [vmem:[%s7261_s16 + $0x28] sm:$0xff]  }
 0x184   : > { %v8167_v61 = vpop.f32.mrb[64].mxu1  ;;  %v1976_v52 = vpop.f32.mrb[50].mxu0  ;;  %6554 = vmatpush3.bf16.msra.mxu0 %v6840_v17 }
 0x185   : > { %9649 = vst [vmem:[#allocation89_spill] sm:$0xff] %v8165_v62  ;;  %v8170_v6 = vadd.f32 %v7806_v0, %v1976_v52  ;;  %v2922_v27 = vpop.f32.mrb[65].mxu1  ;;  %v1978_v37 = vpop.f32.mrb[51].mxu0  ;;  %6555 = vmatprep.subr.bf16.mxu0 %v6841_v12  ;;  %v6843_v0 = vld [vmem:[%s9513_s1 + $0x220] sm:$0xff]  }
 0x186   : > { %v8175_v45 = vpop.f32.mrb[66].mxu1 }
 0x187   : > { %9650 = vst [vmem:[#allocation90_spill] sm:$0xff] %v8170_v6  ;;  %v2925_v57 = vpop.f32.mrb[67].mxu1  ;;  %6492 = vmatmul.mubr.bf16.gmra.mrb[156].mxu0 %v8048_v5 }
 0x188   : > { %6495 = vmatprep.mubr.bf16.mxu0 %v8052_v32  ;;  %6556 = vmatpush3.bf16.msra.mxu0 %v6841_v12 }
 0x189   : > { %3938 = vmatmul.mubr.bf16.gmra.mrb[172].mxu1 %v7112_v36  ;;  %6557 = vmatprep.subr.bf16.mxu0 %v6842_v39  ;;  %v6844_v36 = vld [vmem:[%s9513_s1 + $0x228] sm:$0xff]  }
 0x18a   : > { %v1981_v37 = vpop.f32.mrb[52].mxu0  ;;  %3945 = vmatprep.mubr.bf16.mxu1 %v7563_v58 }
 0x18b   : > { %v8185_v17 = vadd.f32 %v7797_v31, %v1981_v37  ;;  %v1983_v57 = vpop.f32.mrb[53].mxu0  ;;  %v7113_v31 = vld [vmem:[%s7261_s16 + $0x30] sm:$0xff]  }
 0x18c   : > { %v8187_v41 = vpop.f32.mrb[68].mxu1  ;;  %v1984_v63 = vpop.f32.mrb[54].mxu0  ;;  %6558 = vmatpush3.bf16.msra.mxu0 %v6842_v39 }
 0x18d   : > { %9651 = vst [vmem:[#allocation91_spill] sm:$0xff] %v8185_v17  ;;  %v8190_v12 = vadd.f32 %v7804_v47, %v1984_v63  ;;  %v2930_v52 = vpop.f32.mrb[69].mxu1  ;;  %v1986_v27 = vpop.f32.mrb[55].mxu0  ;;  %6559 = vmatprep.subr.bf16.mxu0 %v6843_v0  ;;  %v6845_v47 = vld [vmem:[%s9513_s1 + $0x230] sm:$0xff]  }
 0x18e   : > { %v8195_v58 = vpop.f32.mrb[70].mxu1 }
 0x18f   : > { %9652 = vst [vmem:[#allocation92_spill] sm:$0xff] %v8190_v12  ;;  %v2933_v6 = vpop.f32.mrb[71].mxu1  ;;  %6496 = vmatmul.mubr.bf16.gmra.mrb[160].mxu0 %v8077_v38 }
 0x190   : > { %6499 = vmatprep.mubr.bf16.mxu0 %v8081_v35  ;;  %6560 = vmatpush3.bf16.msra.mxu0 %v6843_v0 }
 0x191   : > { %3946 = vmatmul.mubr.bf16.gmra.mrb[176].mxu1 %v7113_v31  ;;  %6561 = vmatprep.subr.bf16.mxu0 %v6844_v36  ;;  %v6846_v31 = vld [vmem:[%s9513_s1 + $0x238] sm:$0xff]  }
 0x192   : > { %v1989_v39 = vpop.f32.mrb[56].mxu0  ;;  %3953 = vmatprep.mubr.bf16.mxu1 %v7579_v10 }
 0x193   : > { %v8205_v37 = vadd.f32 %v7817_v54, %v1989_v39  ;;  %v1991_v6 = vpop.f32.mrb[57].mxu0  ;;  %v7114_v54 = vld [vmem:[%s7261_s16 + $0x38] sm:$0xff]  }
 0x194   : > { %v8207_v57 = vpop.f32.mrb[72].mxu1  ;;  %v1992_v63 = vpop.f32.mrb[58].mxu0  ;;  %6562 = vmatpush3.bf16.msra.mxu0 %v6844_v36 }
 0x195   : > { %9653 = vst [vmem:[#allocation93_spill] sm:$0xff] %v8205_v37  ;;  %v8210_v0 = vadd.f32 %v7824_v9, %v1992_v63  ;;  %v2938_v52 = vpop.f32.mrb[73].mxu1  ;;  %v1994_v27 = vpop.f32.mrb[59].mxu0  ;;  %6563 = vmatprep.subr.bf16.mxu0 %v6845_v47 }
 0x196   : > { %v8215_v10 = vpop.f32.mrb[74].mxu1 }
 0x197   : > { %9654 = vst [vmem:[#allocation94_spill] sm:$0xff] %v8210_v0  ;;  %v2941_v12 = vpop.f32.mrb[75].mxu1  ;;  %6500 = vmatmul.mubr.bf16.gmra.mrb[164].mxu0 %v8108_v21 }
 0x198   : > { %6503 = vmatprep.mubr.bf16.mxu0 %v8114_v44  ;;  %6564 = vmatpush3.bf16.msra.mxu0 %v6845_v47 }
 0x199   : > { %3954 = vmatmul.mubr.bf16.gmra.mrb[180].mxu1 %v7114_v54  ;;  %6565 = vmatprep.subr.bf16.mxu0 %v6846_v31 }
 0x19a   : > { %v1997_v9 = vpop.f32.mrb[60].mxu0  ;;  %3961 = vmatprep.mubr.bf16.mxu1 %v7597_v29  ;;  %v7115_v29 = vld [vmem:[%s7261_s16 + $0x40] sm:$0xff]  }
 0x19b   : > { %v8222_v36 = vadd.f32 %v7815_v24, %v1997_v9  ;;  %v1999_v39 = vpop.f32.mrb[61].mxu0 }
 0x19c   : > { %v8224_v6 = vpop.f32.mrb[76].mxu1  ;;  %v2000_v63 = vpop.f32.mrb[62].mxu0  ;;  %6566 = vmatpush3.bf16.msra.mxu0 %v6846_v31 }
 0x19d   : > { %9655 = vst [vmem:[#allocation95_spill] sm:$0xff] %v8222_v36  ;;  %v8227_v12 = vadd.f32 %v7822_v48, %v2000_v63  ;;  %v2946_v52 = vpop.f32.mrb[77].mxu1  ;;  %v2002_v47 = vpop.f32.mrb[63].mxu0 }
 0x19e   : > { %v8229_v27 = vpop.f32.mrb[78].mxu1 }
 0x19f   : > { %9656 = vst [vmem:[#allocation96_spill] sm:$0xff] %v8227_v12  ;;  %v2949_v54 = vpop.f32.mrb[79].mxu1  ;;  %6504 = vmatmul.mubr.bf16.gmra.mrb[168].mxu0 %v8135_v33 }
 0x1a0   : > { %6507 = vmatprep.mubr.bf16.mxu0 %v7290_v18 }
 0x1a1   : > { %3962 = vmatmul.mubr.bf16.gmra.mrb[184].mxu1 %v7115_v29 }
 0x1a2   : > { %v2005_v24 = vpop.f32.mrb[64].mxu0  ;;  %3969 = vmatprep.mubr.bf16.mxu1 %v7616_v43  ;;  %v7116_v43 = vld [vmem:[%s7261_s16 + $0x48] sm:$0xff]  }
 0x1a3   : > { %v8236_v31 = vadd.f32 %v7835_v53, %v2005_v24  ;;  %v2007_v48 = vpop.f32.mrb[65].mxu0 }
 0x1a4   : > { %v8238_v9 = vpop.f32.mrb[80].mxu1  ;;  %v2008_v39 = vpop.f32.mrb[66].mxu0 }
 0x1a5   : > { %9657 = vst [vmem:[#allocation97_spill] sm:$0xff] %v8236_v31  ;;  %v8241_v63 = vadd.f32 %v7842_v46, %v2008_v39  ;;  %v2954_v52 = vpop.f32.mrb[81].mxu1  ;;  %v2010_v47 = vpop.f32.mrb[67].mxu0 }
 0x1a6   : > { %v8243_v54 = vpop.f32.mrb[82].mxu1 }
 0x1a7   : > { %9658 = vst [vmem:[#allocation98_spill] sm:$0xff] %v8241_v63  ;;  %9659 = vst [vmem:[#allocation99_spill] sm:$0xff] %v8243_v54  ;;  %v2957_v0 = vpop.f32.mrb[83].mxu1  ;;  %6508 = vmatmul.mubr.bf16.gmra.mrb[172].mxu0 %v7321_v28 }
 0x1a8   : > { %6511 = vmatprep.mubr.bf16.mxu0 %v7326_v30 }
 0x1a9   : > { %3970 = vmatmul.mubr.bf16.gmra.mrb[188].mxu1 %v7116_v43 }
 0x1aa   : > { %v2013_v53 = vpop.f32.mrb[68].mxu0  ;;  %3977 = vmatprep.mubr.bf16.mxu1 %v7635_v60  ;;  %v7117_v60 = vld [vmem:[%s7261_s16 + $0x50] sm:$0xff]  }
 0x1ab   : > { %v8250_v29 = vadd.f32 %v7833_v26, %v2013_v53  ;;  %v2015_v46 = vpop.f32.mrb[69].mxu0 }
 0x1ac   : > { %v8252_v24 = vpop.f32.mrb[84].mxu1  ;;  %v2016_v48 = vpop.f32.mrb[70].mxu0 }
 0x1ad   : > { %9660 = vst [vmem:[#allocation100_spill] sm:$0xff] %v8250_v29  ;;  %v8255_v39 = vadd.f32 %v7840_v51, %v2016_v48  ;;  %v2962_v0 = vpop.f32.mrb[85].mxu1  ;;  %v2018_v52 = vpop.f32.mrb[71].mxu0 }
 0x1ae   : > { %v8257_v47 = vpop.f32.mrb[86].mxu1 }
 0x1af   : > { %9661 = vst [vmem:[#allocation101_spill] sm:$0xff] %v8255_v39  ;;  %9662 = vst [vmem:[#allocation102_spill] sm:$0xff] %v8257_v47  ;;  %v2965_v63 = vpop.f32.mrb[87].mxu1  ;;  %6512 = vmatmul.mubr.bf16.gmra.mrb[176].mxu0 %v7349_v40 }
 0x1b0   : > { %6515 = vmatprep.mubr.bf16.mxu0 %v7354_v42 }
 0x1b1   : > { %3978 = vmatmul.mubr.bf16.gmra.mrb[192].mxu1 %v7117_v60 }
 0x1b2   : > { %v2021_v26 = vpop.f32.mrb[72].mxu0  ;;  %3985 = vmatprep.mubr.bf16.mxu1 %v7654_v23  ;;  %v7118_v23 = vld [vmem:[%s7261_s16 + $0x58] sm:$0xff]  }
 0x1b3   : > { %v8264_v43 = vadd.f32 %v7853_v1, %v2021_v26  ;;  %v2023_v51 = vpop.f32.mrb[73].mxu0 }
 0x1b4   : > { %v8266_v53 = vpop.f32.mrb[88].mxu1  ;;  %v2024_v46 = vpop.f32.mrb[74].mxu0 }
 0x1b5   : > { %9663 = vst [vmem:[#allocation103_spill] sm:$0xff] %v8264_v43  ;;  %9664 = vst [vmem:[#allocation104_spill] sm:$0xff] %v8266_v53  ;;  %v8269_v48 = vadd.f32 %v7860_v50, %v2024_v46  ;;  %v2970_v63 = vpop.f32.mrb[89].mxu1  ;;  %v2026_v0 = vpop.f32.mrb[75].mxu0 }
 0x1b6   : > { %v8271_v52 = vpop.f32.mrb[90].mxu1 }
 0x1b7   : > { %9665 = vst [vmem:[#allocation105_spill] sm:$0xff] %v8269_v48  ;;  %9666 = vst [vmem:[#allocation106_spill] sm:$0xff] %v8271_v52  ;;  %v2973_v39 = vpop.f32.mrb[91].mxu1  ;;  %6516 = vmatmul.mubr.bf16.gmra.mrb[180].mxu0 %v7375_v56  ;;  %v9704_v52 = vld [vmem:[#allocation11_spill] sm:$0xff] }
 0x1b8   : > { %6519 = vmatprep.mubr.bf16.mxu0 %v7381_v59 }
 0x1b9   : > { %3986 = vmatmul.mubr.bf16.gmra.mrb[196].mxu1 %v7118_v23 }
 0x1ba   : > { %v2029_v1 = vpop.f32.mrb[76].mxu0  ;;  %3993 = vmatprep.mubr.bf16.mxu1 %v7673_v34  ;;  %v7119_v34 = vld [vmem:[%s7261_s16 + $0x60] sm:$0xff]  }
 0x1bb   : > { %v8278_v60 = vadd.f32 %v7851_v16, %v2029_v1  ;;  %v2031_v50 = vpop.f32.mrb[77].mxu0 }
 0x1bc   : > { %v8280_v26 = vpop.f32.mrb[92].mxu1  ;;  %v2032_v51 = vpop.f32.mrb[78].mxu0 }
 0x1bd   : > { %9667 = vst [vmem:[#allocation107_spill] sm:$0xff] %v8278_v60  ;;  %9668 = vst [vmem:[#allocation108_spill] sm:$0xff] %v8280_v26  ;;  %v8283_v46 = vadd.f32 %v7858_v7, %v2032_v51  ;;  %v2978_v39 = vpop.f32.mrb[93].mxu1  ;;  %v2034_v63 = vpop.f32.mrb[79].mxu0  ;;  %v9673_v51 = vld [vmem:[#allocation35_spill] sm:$0xff]  ;;  %v9676_v60 = vld [vmem:[#allocation4_spill] sm:$0xff] }
 0x1be   : > { %v8285_v0 = vpop.f32.mrb[94].mxu1 }
 0x1bf   : > { %9669 = vst [vmem:[#allocation109_spill] sm:$0xff] %v8283_v46  ;;  %9670 = vst [vmem:[#allocation110_spill] sm:$0xff] %v8285_v0  ;;  %v2981_v48 = vpop.f32.mrb[95].mxu1  ;;  %6520 = vmatmul.mubr.bf16.gmra.mrb[184].mxu0 %v7403_v14  ;;  %v9712_v0 = vld [vmem:[#allocation12_spill] sm:$0xff] }
 0x1c0   : > { %6523 = vmatprep.mubr.bf16.mxu0 %v7408_v19 }
 0x1c1   : > { %3994 = vmatmul.mubr.bf16.gmra.mrb[200].mxu1 %v7119_v34  ;;  %v9677_v34 = vld [vmem:[#allocation5_spill] sm:$0xff] }
 0x1c2   : > { %v2037_v16 = vpop.f32.mrb[80].mxu0  ;;  %4001 = vmatprep.mubr.bf16.mxu1 %v7687_v20  ;;  %v7120_v20 = vld [vmem:[%s7261_s16 + $0x68] sm:$0xff]  }
 0x1c3   : > { %v8292_v23 = vadd.f32 %v7876_v4, %v2037_v16  ;;  %v2039_v7 = vpop.f32.mrb[81].mxu0  ;;  %v9678_v16 = vld [vmem:[#allocation16_spill] sm:$0xff] }
 0x1c4   : > { %v8294_v1 = vpop.f32.mrb[96].mxu1  ;;  %v2040_v50 = vpop.f32.mrb[82].mxu0  ;;  %v9679_v7 = vld [vmem:[#allocation31_spill] sm:$0xff] }
 0x1c5   : > { %9671 = vst [vmem:[#allocation111_spill] sm:$0xff] %v8292_v23  ;;  %9672 = vst [vmem:[#allocation112_spill] sm:$0xff] %v8294_v1  ;;  %v8297_v39 = vadd.f32 %v9673_v51, %v2040_v50  ;;  %v2986_v48 = vpop.f32.mrb[97].mxu1  ;;  %v2042_v63 = vpop.f32.mrb[83].mxu0  ;;  %v9694_v1 = vld [vmem:[#allocation8_spill] sm:$0xff] }
 0x1c6   : > { %v8299_v46 = vpop.f32.mrb[98].mxu1  ;;  %v9682_v63 = vld [vmem:[#allocation34_spill] sm:$0xff] }
 0x1c7   : > { %9674 = vst [vmem:[#allocation35_spill] sm:$0xff] %v8297_v39  ;;  %9675 = vst [vmem:[#allocation113_spill] sm:$0xff] %v8299_v46  ;;  %v2989_v43 = vpop.f32.mrb[99].mxu1  ;;  %6524 = vmatmul.mubr.bf16.gmra.mrb[188].mxu0 %v9676_v60  ;;  %v9685_v46 = vld [vmem:[#allocation6_spill] sm:$0xff] }
 0x1c8   : > { %6527 = vmatprep.mubr.bf16.mxu0 %v9677_v34 }
 0x1c9   : > { %4002 = vmatmul.mubr.bf16.gmra.mrb[204].mxu1 %v7120_v20  ;;  %v9686_v20 = vld [vmem:[#allocation7_spill] sm:$0xff] }
 0x1ca   : > { %v2045_v4 = vpop.f32.mrb[84].mxu0  ;;  %4009 = vmatprep.mubr.bf16.mxu1 %v9678_v16  ;;  %v7121_v16 = vld [vmem:[%s7261_s16 + $0x70] sm:$0xff]  }
 0x1cb   : > { %v8306_v23 = vadd.f32 %v9679_v7, %v2045_v4  ;;  %v2047_v50 = vpop.f32.mrb[85].mxu0  ;;  %v9687_v7 = vld [vmem:[#allocation17_spill] sm:$0xff] }
 0x1cc   : > { %v8308_v51 = vpop.f32.mrb[100].mxu1  ;;  %v2048_v48 = vpop.f32.mrb[86].mxu0  ;;  %v9688_v50 = vld [vmem:[#allocation39_spill] sm:$0xff] }
 0x1cd   : > { %9680 = vst [vmem:[#allocation4_spill] sm:$0xff] %v8306_v23  ;;  %9681 = vst [vmem:[#allocation5_spill] sm:$0xff] %v8308_v51  ;;  %v8311_v39 = vadd.f32 %v9682_v63, %v2048_v48  ;;  %v2994_v43 = vpop.f32.mrb[101].mxu1  ;;  %v2050_v31 = vpop.f32.mrb[87].mxu0 }
 0x1ce   : > { %v8313_v29 = vpop.f32.mrb[102].mxu1  ;;  %v9691_v43 = vld [vmem:[#allocation42_spill] sm:$0xff] }
 0x1cf   : > { %9683 = vst [vmem:[#allocation16_spill] sm:$0xff] %v8311_v39  ;;  %9684 = vst [vmem:[#allocation31_spill] sm:$0xff] %v8313_v29  ;;  %v2997_v12 = vpop.f32.mrb[103].mxu1  ;;  %6528 = vmatmul.mubr.bf16.gmra.mrb[192].mxu0 %v9685_v46 }
 0x1d0   : > { %6531 = vmatprep.mubr.bf16.mxu0 %v9686_v20 }
 0x1d1   : > { %4010 = vmatmul.mubr.bf16.gmra.mrb[208].mxu1 %v7121_v16  ;;  %v9695_v16 = vld [vmem:[#allocation9_spill] sm:$0xff] }
 0x1d2   : > { %v2053_v4 = vpop.f32.mrb[88].mxu0  ;;  %4017 = vmatprep.mubr.bf16.mxu1 %v9687_v7  ;;  %v7122_v7 = vld [vmem:[%s7261_s16 + $0x78] sm:$0xff]  }
 0x1d3   : > { %v8320_v23 = vadd.f32 %v9688_v50, %v2053_v4  ;;  %v2055_v48 = vpop.f32.mrb[89].mxu0  ;;  %v9696_v50 = vld [vmem:[#allocation18_spill] sm:$0xff] }
 0x1d4   : > { %v8322_v63 = vpop.f32.mrb[104].mxu1  ;;  %v2056_v31 = vpop.f32.mrb[90].mxu0  ;;  %v9697_v48 = vld [vmem:[#allocation37_spill] sm:$0xff] }
 0x1d5   : > { %9689 = vst [vmem:[#allocation34_spill] sm:$0xff] %v8320_v23  ;;  %9690 = vst [vmem:[#allocation6_spill] sm:$0xff] %v8322_v63  ;;  %v8325_v39 = vadd.f32 %v9691_v43, %v2056_v31  ;;  %v3002_v12 = vpop.f32.mrb[105].mxu1  ;;  %v2058_v37 = vpop.f32.mrb[91].mxu0 }
 0x1d6   : > { %v8327_v29 = vpop.f32.mrb[106].mxu1  ;;  %v9700_v12 = vld [vmem:[#allocation41_spill] sm:$0xff] }
 0x1d7   : > { %9692 = vst [vmem:[#allocation7_spill] sm:$0xff] %v8325_v39  ;;  %9693 = vst [vmem:[#allocation17_spill] sm:$0xff] %v8327_v29  ;;  %v3005_v36 = vpop.f32.mrb[107].mxu1  ;;  %6532 = vmatmul.mubr.bf16.gmra.mrb[196].mxu0 %v9694_v1 }
 0x1d8   : > { %6535 = vmatprep.mubr.bf16.mxu0 %v9695_v16 }
 0x1d9   : > { %4018 = vmatmul.mubr.bf16.gmra.mrb[212].mxu1 %v7122_v7  ;;  %v9703_v7 = vld [vmem:[#allocation10_spill] sm:$0xff] }
 0x1da   : > { %v2061_v4 = vpop.f32.mrb[92].mxu0  ;;  %4025 = vmatprep.mubr.bf16.mxu1 %v9696_v50  ;;  %v7123_v50 = vld [vmem:[%s7261_s16 + $0x80] sm:$0xff]  }
 0x1db   : > { %v8334_v23 = vadd.f32 %v9697_v48, %v2061_v4  ;;  %v2063_v31 = vpop.f32.mrb[93].mxu0  ;;  %v9705_v48 = vld [vmem:[#allocation19_spill] sm:$0xff] }
 0x1dc   : > { %v8336_v43 = vpop.f32.mrb[108].mxu1  ;;  %v2064_v37 = vpop.f32.mrb[94].mxu0  ;;  %v9706_v31 = vld [vmem:[#allocation46_spill] sm:$0xff] }
 0x1dd   : > { %9698 = vst [vmem:[#allocation39_spill] sm:$0xff] %v8334_v23  ;;  %9699 = vst [vmem:[#allocation42_spill] sm:$0xff] %v8336_v43  ;;  %v8339_v39 = vadd.f32 %v9700_v12, %v2064_v37  ;;  %v3010_v36 = vpop.f32.mrb[109].mxu1  ;;  %v2066_v29 = vpop.f32.mrb[95].mxu0  ;;  %v6847_v43 = vld [vmem:[%s7261_s16 + $0x108] sm:$0xff]  }
 0x1de   : > { %v8341_v63 = vpop.f32.mrb[110].mxu1  ;;  %v9709_v36 = vld [vmem:[#allocation49_spill] sm:$0xff] }
 0x1df   : > { %9701 = vst [vmem:[#allocation8_spill] sm:$0xff] %v8339_v39  ;;  %9702 = vst [vmem:[#allocation9_spill] sm:$0xff] %v8341_v63  ;;  %v3013_v51 = vpop.f32.mrb[111].mxu1  ;;  %6536 = vmatmul.mubr.bf16.gmra.mrb[200].mxu0 %v9703_v7 }
 0x1e0   : > { %6539 = vmatprep.mubr.bf16.mxu0 %v9704_v52 }
 0x1e1   : > { %4026 = vmatmul.mubr.bf16.gmra.mrb[216].mxu1 %v7123_v50 }
 0x1e2   : > { %v2069_v4 = vpop.f32.mrb[96].mxu0  ;;  %4033 = vmatprep.mubr.bf16.mxu1 %v9705_v48  ;;  %v9713_v48 = vld [vmem:[#allocation14_spill] sm:$0xff] }
 0x1e3   : > { %v8348_v23 = vadd.f32 %v9706_v31, %v2069_v4  ;;  %v2071_v37 = vpop.f32.mrb[97].mxu0  ;;  %v7124_v4 = vld [vmem:[%s7261_s16 + $0x88] sm:$0xff]   ;;  %v1475_v31 = vrot.slane %v6847_v43, 1 }
 0x1e4   : > { %v8350_v12 = vpop.f32.mrb[112].mxu1  ;;  %v2072_v29 = vpop.f32.mrb[98].mxu0 }
 0x1e5   : > { %9707 = vst [vmem:[#allocation18_spill] sm:$0xff] %v8348_v23  ;;  %9708 = vst [vmem:[#allocation37_spill] sm:$0xff] %v8350_v12  ;;  %v8353_v39 = vadd.f32 %v9709_v36, %v2072_v29  ;;  %v3018_v51 = vpop.f32.mrb[113].mxu1  ;;  %v2074_v63 = vpop.f32.mrb[99].mxu0  ;;  %v9714_v23 = vld [vmem:[#allocation20_spill] sm:$0xff] }
 0x1e6   : > { %v8356_v62 = vpop.f32.mrb[114].mxu1  ;;  %v9715_v29 = vld [vmem:[#allocation44_spill] sm:$0xff] }
 0x1e7   : > { %9710 = vst [vmem:[#allocation41_spill] sm:$0xff] %v8353_v39  ;;  %9711 = vst [vmem:[#allocation10_spill] sm:$0xff] %v8356_v62  ;;  %v3021_v50 = vpop.f32.mrb[115].mxu1  ;;  %6540 = vmatmul.mubr.bf16.gmra.mrb[204].mxu0 %v9712_v0  ;;  %v8368_v62 = vld [vmem:[%s7261_s16 + $0x110] sm:$0xff]  }
 0x1e8   : > { %6543 = vmatprep.mubr.bf16.mxu0 %v9713_v48  ;;  %v9718_v50 = vld [vmem:[#allocation48_spill] sm:$0xff] }
 0x1e9   : > { %4034 = vmatmul.mubr.bf16.gmra.mrb[220].mxu1 %v7124_v4  ;;  %v9720_v4 = vld [vmem:[#allocation13_spill] sm:$0xff] }
 0x1ea   : > { %v2077_v37 = vpop.f32.mrb[100].mxu0  ;;  %4041 = vmatprep.mubr.bf16.mxu1 %v9714_v23  ;;  %v9721_v43 = vrot.slane %v9720_v4, 1 }
 0x1eb   : > { %v8363_v36 = vadd.f32 %v9715_v29, %v2077_v37  ;;  %v2079_v51 = vpop.f32.mrb[101].mxu0  ;;  %v9723_v29 = vld [vmem:[#allocation15_spill] sm:$0xff] }
 0x1ec   : > { %v8365_v63 = vpop.f32.mrb[116].mxu1  ;;  %v2080_v39 = vpop.f32.mrb[102].mxu0  ;;  %v8376_v26 = vsel %vm1409_vm0, %v9721_v43, %v1475_v31  ;;  %v9562_v51 = vrot.slane %v8368_v62, 1 }
 0x1ed   : > { %9716 = vst [vmem:[#allocation11_spill] sm:$0xff] %v8363_v36  ;;  %9717 = vst [vmem:[#allocation19_spill] sm:$0xff] %v8365_v63  ;;  %v8371_v12 = vadd.f32 %v9718_v50, %v2080_v39  ;;  %v3026_v17 = vpop.f32.mrb[117].mxu1  ;;  %v2082_v53 = vpop.f32.mrb[103].mxu0  ;;  %v7125_v36 = vld [vmem:[%s7261_s16 + $0x90] sm:$0xff]  }
 0x1ee   : > { %v8378_v23 = vpop.f32.mrb[118].mxu1  ;;  %v9724_v17 = vld [vmem:[#allocation21_spill] sm:$0xff] }
 0x1ef   : > { %9719 = vst [vmem:[#allocation46_spill] sm:$0xff] %v8371_v12  ;;  %9722 = vst [vmem:[#allocation49_spill] sm:$0xff] %v8378_v23  ;;  %v3029_v37 = vpop.f32.mrb[119].mxu1  ;;  %6544 = vmatmul.mubr.bf16.gmra.mrb[208].mxu0 %v9723_v29  ;;  %v9725_v53 = vld [vmem:[#allocation53_spill] sm:$0xff]  ;;  %v9727_v23 = vld [vmem:[#allocation56_spill] sm:$0xff] }
 0x1f0   : > { %6547 = vmatprep.mubr.bf16.mxu0 %v8376_v26  ;;  %v8393_v37 = vsel %vm1409_vm0, %v1475_v31, %v9562_v51  ;;  %v9731_v31 = vld [vmem:[#allocation51_spill] sm:$0xff] }
 0x1f1   : > { %4042 = vmatmul.mubr.bf16.gmra.mrb[224].mxu1 %v7125_v36 }
 0x1f2   : > { %v2085_v39 = vpop.f32.mrb[104].mxu0  ;;  %4049 = vmatprep.mubr.bf16.mxu1 %v9724_v17 }
 0x1f3   : > { %v8386_v50 = vadd.f32 %v9725_v53, %v2085_v39  ;;  %v2087_v4 = vpop.f32.mrb[105].mxu0  ;;  %v7126_v39 = vld [vmem:[%s7261_s16 + $0x98] sm:$0xff]  }
 0x1f4   : > { %v8388_v43 = vpop.f32.mrb[120].mxu1  ;;  %v2088_v12 = vpop.f32.mrb[106].mxu0  ;;  %v9730_v4 = vld [vmem:[#allocation22_spill] sm:$0xff] }
 0x1f5   : > { %9726 = vst [vmem:[#allocation12_spill] sm:$0xff] %v8386_v50  ;;  %v8396_v63 = vadd.f32 %v9727_v23, %v2088_v12  ;;  %v3034_v54 = vpop.f32.mrb[121].mxu1  ;;  %v2090_v36 = vpop.f32.mrb[107].mxu0 }
 0x1f6   : > { %v8398_v47 = vpop.f32.mrb[122].mxu1  ;;  %v9733_v36 = vld [vmem:[#allocation55_spill] sm:$0xff] }
 0x1f7   : > { %9728 = vst [vmem:[#allocation14_spill] sm:$0xff] %v8396_v63  ;;  %9729 = vst [vmem:[#allocation20_spill] sm:$0xff] %v8398_v47  ;;  %v3037_v17 = vpop.f32.mrb[123].mxu1  ;;  %6548 = vmatmul.mubr.bf16.gmra.mrb[212].mxu0 %v8393_v37 }
 0x1f8   : > { %6567 = vmatprep.mubr.bf16.mxu0 %v8025_v15 }
 0x1f9   : > { %4050 = vmatmul.mubr.bf16.gmra.mrb[228].mxu1 %v7126_v39  ;;  %v7127_v39 = vld [vmem:[%s7261_s16 + $0xa0] sm:$0xff]  }
 0x1fa   : > { %v2093_v53 = vpop.f32.mrb[108].mxu0  ;;  %4057 = vmatprep.mubr.bf16.mxu1 %v9730_v4  ;;  %v9735_v4 = vld [vmem:[#allocation23_spill] sm:$0xff] }
 0x1fb   : > { %v8405_v51 = vadd.f32 %v9731_v31, %v2093_v53  ;;  %v2095_v12 = vpop.f32.mrb[109].mxu0  ;;  %v9736_v31 = vld [vmem:[#allocation60_spill] sm:$0xff] }
 0x1fc   : > { %v8407_v23 = vpop.f32.mrb[124].mxu1  ;;  %v2096_v54 = vpop.f32.mrb[110].mxu0 }
 0x1fd   : > { %9732 = vst [vmem:[#allocation44_spill] sm:$0xff] %v8405_v51  ;;  %v8410_v63 = vadd.f32 %v9733_v36, %v2096_v54  ;;  %v3042_v17 = vpop.f32.mrb[125].mxu1  ;;  %v2098_v50 = vpop.f32.mrb[111].mxu0 }
 0x1fe   : > { %v8412_v47 = vpop.f32.mrb[126].mxu1  ;;  %v9739_v17 = vld [vmem:[#allocation62_spill] sm:$0xff] }
 0x1ff   : > { %9734 = vst [vmem:[#allocation48_spill] sm:$0xff] %v8410_v63  ;;  %v3045_v15 = vpop.f32.mrb[127].mxu1  ;;  %6568 = vmatmul.mubr.bf16.vlgmr.msra.gmra.mrb[216].mxu0 %v8048_v5 }
 0x200   : > { %6571 = vmatprep.mubr.bf16.mxu0 %v8052_v32 }
 0x201   : > { %4058 = vmatmul.mubr.bf16.gmra.mrb[232].mxu1 %v7127_v39  ;;  %v7128_v39 = vld [vmem:[%s7261_s16 + $0xa8] sm:$0xff]  }
 0x202   : > { %v2101_v53 = vpop.f32.mrb[112].mxu0  ;;  %4065 = vmatprep.mubr.bf16.mxu1 %v9735_v4  ;;  %v9742_v4 = vld [vmem:[#allocation24_spill] sm:$0xff] }
 0x203   : > { %v8419_v12 = vadd.f32 %v9736_v31, %v2101_v53  ;;  %v2103_v54 = vpop.f32.mrb[113].mxu0  ;;  %v9743_v31 = vld [vmem:[#allocation58_spill] sm:$0xff] }
 0x204   : > { %v8421_v36 = vpop.f32.mrb[128].mxu1  ;;  %v2104_v50 = vpop.f32.mrb[114].mxu0 }
 0x205   : > { %9737 = vst [vmem:[#allocation13_spill] sm:$0xff] %v8419_v12  ;;  %9738 = vst [vmem:[#allocation15_spill] sm:$0xff] %v8421_v36  ;;  %v8424_v63 = vadd.f32 %v9739_v17, %v2104_v50  ;;  %v3050_v15 = vpop.f32.mrb[129].mxu1  ;;  %v2106_v5 = vpop.f32.mrb[115].mxu0 }
 0x206   : > { %v8426_v51 = vpop.f32.mrb[130].mxu1  ;;  %v9746_v5 = vld [vmem:[#allocation61_spill] sm:$0xff] }
 0x207   : > { %9740 = vst [vmem:[#allocation21_spill] sm:$0xff] %v8424_v63  ;;  %9741 = vst [vmem:[#allocation53_spill] sm:$0xff] %v8426_v51  ;;  %v3053_v32 = vpop.f32.mrb[131].mxu1  ;;  %6572 = vmatmul.mubr.bf16.gmra.mrb[220].mxu0 %v8077_v38 }
 0x208   : > { %6575 = vmatprep.mubr.bf16.mxu0 %v8081_v35 }
 0x209   : > { %4066 = vmatmul.mubr.bf16.gmra.mrb[236].mxu1 %v7128_v39  ;;  %v7129_v39 = vld [vmem:[%s7261_s16 + $0xb0] sm:$0xff]  }
 0x20a   : > { %v2109_v53 = vpop.f32.mrb[116].mxu0  ;;  %4073 = vmatprep.mubr.bf16.mxu1 %v9742_v4  ;;  %v9749_v4 = vld [vmem:[#allocation25_spill] sm:$0xff] }
 0x20b   : > { %v8433_v54 = vadd.f32 %v9743_v31, %v2109_v53  ;;  %v2111_v50 = vpop.f32.mrb[117].mxu0  ;;  %v9750_v31 = vld [vmem:[#allocation66_spill] sm:$0xff] }
 0x20c   : > { %v8435_v17 = vpop.f32.mrb[132].mxu1  ;;  %v2112_v15 = vpop.f32.mrb[118].mxu0 }
 0x20d   : > { %9744 = vst [vmem:[#allocation56_spill] sm:$0xff] %v8433_v54  ;;  %9745 = vst [vmem:[#allocation22_spill] sm:$0xff] %v8435_v17  ;;  %v8438_v63 = vadd.f32 %v9746_v5, %v2112_v15  ;;  %v3058_v32 = vpop.f32.mrb[133].mxu1  ;;  %v2114_v38 = vpop.f32.mrb[119].mxu0 }
 0x20e   : > { %v8440_v12 = vpop.f32.mrb[134].mxu1  ;;  %v9753_v38 = vld [vmem:[#allocation68_spill] sm:$0xff] }
 0x20f   : > { %9747 = vst [vmem:[#allocation51_spill] sm:$0xff] %v8438_v63  ;;  %9748 = vst [vmem:[#allocation55_spill] sm:$0xff] %v8440_v12  ;;  %v3061_v35 = vpop.f32.mrb[135].mxu1  ;;  %6576 = vmatmul.mubr.bf16.gmra.mrb[224].mxu0 %v8108_v21 }
 0x210   : > { %6579 = vmatprep.mubr.bf16.mxu0 %v8114_v44 }
 0x211   : > { %4074 = vmatmul.mubr.bf16.gmra.mrb[240].mxu1 %v7129_v39  ;;  %v7130_v39 = vld [vmem:[%s7261_s16 + $0xb8] sm:$0xff]  }
 0x212   : > { %v2117_v53 = vpop.f32.mrb[120].mxu0  ;;  %4081 = vmatprep.mubr.bf16.mxu1 %v9749_v4  ;;  %v9756_v4 = vld [vmem:[#allocation26_spill] sm:$0xff] }
 0x213   : > { %v8447_v50 = vadd.f32 %v9750_v31, %v2117_v53  ;;  %v2119_v15 = vpop.f32.mrb[121].mxu0  ;;  %v9757_v31 = vld [vmem:[#allocation64_spill] sm:$0xff] }
 0x214   : > { %v8449_v5 = vpop.f32.mrb[136].mxu1  ;;  %v2120_v32 = vpop.f32.mrb[122].mxu0 }
 0x215   : > { %9751 = vst [vmem:[#allocation23_spill] sm:$0xff] %v8447_v50  ;;  %9752 = vst [vmem:[#allocation60_spill] sm:$0xff] %v8449_v5  ;;  %v8452_v63 = vadd.f32 %v9753_v38, %v2120_v32  ;;  %v3066_v35 = vpop.f32.mrb[137].mxu1  ;;  %v2122_v21 = vpop.f32.mrb[123].mxu0 }
 0x216   : > { %v8454_v54 = vpop.f32.mrb[138].mxu1  ;;  %v9760_v21 = vld [vmem:[#allocation67_spill] sm:$0xff] }
 0x217   : > { %9754 = vst [vmem:[#allocation62_spill] sm:$0xff] %v8452_v63  ;;  %9755 = vst [vmem:[#allocation24_spill] sm:$0xff] %v8454_v54  ;;  %v3069_v44 = vpop.f32.mrb[139].mxu1  ;;  %6580 = vmatmul.mubr.bf16.gmra.mrb[228].mxu0 %v8135_v33 }
 0x218   : > { %6583 = vmatprep.mubr.bf16.mxu0 %v7290_v18 }
 0x219   : > { %4082 = vmatmul.mubr.bf16.gmra.mrb[244].mxu1 %v7130_v39  ;;  %v7131_v39 = vld [vmem:[%s7261_s16 + $0xc0] sm:$0xff]  }
 0x21a   : > { %v2125_v53 = vpop.f32.mrb[124].mxu0  ;;  %4089 = vmatprep.mubr.bf16.mxu1 %v9756_v4  ;;  %v9763_v4 = vld [vmem:[#allocation27_spill] sm:$0xff] }
 0x21b   : > { %v8461_v15 = vadd.f32 %v9757_v31, %v2125_v53  ;;  %v2127_v32 = vpop.f32.mrb[125].mxu0  ;;  %v9764_v31 = vld [vmem:[#allocation36_spill] sm:$0xff] }
 0x21c   : > { %v8463_v38 = vpop.f32.mrb[140].mxu1  ;;  %v2128_v35 = vpop.f32.mrb[126].mxu0 }
 0x21d   : > { %9758 = vst [vmem:[#allocation58_spill] sm:$0xff] %v8461_v15  ;;  %9759 = vst [vmem:[#allocation61_spill] sm:$0xff] %v8463_v38  ;;  %v8466_v63 = vadd.f32 %v9760_v21, %v2128_v35  ;;  %v3074_v44 = vpop.f32.mrb[141].mxu1  ;;  %v2130_v33 = vpop.f32.mrb[127].mxu0  ;;  %v9765_v21 = vld [vmem:[#allocation30_spill] sm:$0xff] }
 0x21e   : > { %v8468_v50 = vpop.f32.mrb[142].mxu1 }
 0x21f   : > { %9761 = vst [vmem:[#allocation25_spill] sm:$0xff] %v8466_v63  ;;  %9762 = vst [vmem:[#allocation66_spill] sm:$0xff] %v8468_v50  ;;  %v3077_v18 = vpop.f32.mrb[143].mxu1  ;;  %6584 = vmatmul.mubr.bf16.gmra.mrb[232].mxu0 %v7321_v28  ;;  %v9767_v63 = vld [vmem:[#allocation38_spill] sm:$0xff] }
 0x220   : > { %6587 = vmatprep.mubr.bf16.mxu0 %v7326_v30 }
 0x221   : > { %4090 = vmatmul.mubr.bf16.gmra.mrb[248].mxu1 %v7131_v39  ;;  %v9768_v39 = vld [vmem:[#allocation32_spill] sm:$0xff] }
 0x222   : > { %v6409_v53 = vpop.f32.mrb[128].mxu0  ;;  %4097 = vmatprep.mubr.bf16.mxu1 %v9763_v4 }
 0x223   : > { %v8475_v32 = vadd.f32 %v6409_v53, %v9764_v31  ;;  %v2166_v35 = vpop.f32.mrb[129].mxu0  ;;  %v7132_v53 = vld [vmem:[%s7261_s16 + $0xc8] sm:$0xff]  }
 0x224   : > { %v8478_v44 = vadd.f32 %v2166_v35, %v9765_v21  ;;  %v8480_v33 = vpop.f32.mrb[144].mxu1  ;;  %v6410_v18 = vpop.f32.mrb[130].mxu0  ;;  %v9770_v35 = vld [vmem:[#allocation28_spill] sm:$0xff] }
 0x225   : > { %9766 = vst [vmem:[#allocation68_spill] sm:$0xff] %v8480_v33  ;;  %v8483_v28 = vadd.f32 %v6410_v18, %v9767_v63  ;;  %v3082_v30 = vpop.f32.mrb[145].mxu1  ;;  %v2169_v15 = vpop.f32.mrb[131].mxu0  ;;  %v9771_v63 = vld [vmem:[#allocation50_spill] sm:$0xff] }
 0x226   : > { %v8486_v54 = vadd.f32 %v2169_v15, %v9768_v39  ;;  %v8488_v50 = vpop.f32.mrb[146].mxu1  ;;  %v9772_v30 = vld [vmem:[#allocation43_spill] sm:$0xff] }
 0x227   : > { %9769 = vst [vmem:[#allocation26_spill] sm:$0xff] %v8488_v50  ;;  %v3085_v4 = vpop.f32.mrb[147].mxu1  ;;  %6588 = vmatmul.mubr.bf16.gmra.mrb[236].mxu0 %v7349_v40  ;;  %v9774_v50 = vld [vmem:[#allocation52_spill] sm:$0xff] }
 0x228   : > { %6591 = vmatprep.mubr.bf16.mxu0 %v7354_v42 }
 0x229   : > { %4098 = vmatmul.mubr.bf16.gmra.mrb[252].mxu1 %v7132_v53  ;;  %v9775_v53 = vld [vmem:[#allocation45_spill] sm:$0xff] }
 0x22a   : > { %v6413_v31 = vpop.f32.mrb[132].mxu0  ;;  %4105 = vmatprep.mubr.bf16.mxu1 %v9770_v35 }
 0x22b   : > { %v8495_v21 = vadd.f32 %v6413_v31, %v9771_v63  ;;  %v2182_v18 = vpop.f32.mrb[133].mxu0  ;;  %v7133_v31 = vld [vmem:[%s7261_s16 + $0xd0] sm:$0xff]  }
 0x22c   : > { %v8498_v15 = vadd.f32 %v2182_v18, %v9772_v30  ;;  %v8500_v39 = vpop.f32.mrb[148].mxu1  ;;  %v6414_v4 = vpop.f32.mrb[134].mxu0  ;;  %v9777_v18 = vld [vmem:[#allocation29_spill] sm:$0xff] }
 0x22d   : > { %9773 = vst [vmem:[#allocation64_spill] sm:$0xff] %v8500_v39  ;;  %v8503_v40 = vadd.f32 %v6414_v4, %v9774_v50  ;;  %v3090_v42 = vpop.f32.mrb[149].mxu1  ;;  %v2185_v33 = vpop.f32.mrb[135].mxu0  ;;  %v9778_v50 = vld [vmem:[#allocation63_spill] sm:$0xff] }
 0x22e   : > { %v8506_v5 = vadd.f32 %v2185_v33, %v9775_v53  ;;  %v8508_v38 = vpop.f32.mrb[150].mxu1  ;;  %v9779_v42 = vld [vmem:[#allocation57_spill] sm:$0xff] }
 0x22f   : > { %9776 = vst [vmem:[#allocation67_spill] sm:$0xff] %v8508_v38  ;;  %v3093_v35 = vpop.f32.mrb[151].mxu1  ;;  %6592 = vmatmul.mubr.bf16.gmra.mrb[240].mxu0 %v7375_v56  ;;  %v9781_v38 = vld [vmem:[#allocation65_spill] sm:$0xff] }
 0x230   : > { %6595 = vmatprep.mubr.bf16.mxu0 %v7381_v59 }
 0x231   : > { %4106 = vmatmul.mubr.bf16.gmra.mrb[0].mxu1 %v7133_v31  ;;  %v9782_v31 = vld [vmem:[#allocation59_spill] sm:$0xff] }
 0x232   : > { %v6417_v63 = vpop.f32.mrb[136].mxu0  ;;  %4113 = vmatprep.mubr.bf16.mxu1 %v9777_v18 }
 0x233   : > { %v8515_v30 = vadd.f32 %v6417_v63, %v9778_v50  ;;  %v2198_v4 = vpop.f32.mrb[137].mxu0  ;;  %v7134_v63 = vld [vmem:[%s7261_s16 + $0xd8] sm:$0xff]  }
 0x234   : > { %v8518_v33 = vadd.f32 %v2198_v4, %v9779_v42  ;;  %v8520_v53 = vpop.f32.mrb[152].mxu1  ;;  %v6418_v35 = vpop.f32.mrb[138].mxu0  ;;  %v9784_v4 = vld [vmem:[#allocation33_spill] sm:$0xff] }
 0x235   : > { %9780 = vst [vmem:[#allocation27_spill] sm:$0xff] %v8520_v53  ;;  %v8523_v56 = vadd.f32 %v6418_v35, %v9781_v38  ;;  %v3098_v59 = vpop.f32.mrb[153].mxu1  ;;  %v2201_v39 = vpop.f32.mrb[139].mxu0  ;;  %v9785_v38 = vld [vmem:[#allocation73_spill] sm:$0xff] }
 0x236   : > { %v8526_v51 = vadd.f32 %v2201_v39, %v9782_v31  ;;  %v8528_v12 = vpop.f32.mrb[154].mxu1  ;;  %v9786_v59 = vld [vmem:[#allocation69_spill] sm:$0xff] }
 0x237   : > { %9783 = vst [vmem:[#allocation36_spill] sm:$0xff] %v8528_v12  ;;  %v3101_v18 = vpop.f32.mrb[155].mxu1  ;;  %6596 = vmatmul.mubr.bf16.gmra.mrb[244].mxu0 %v7403_v14  ;;  %v9788_v12 = vld [vmem:[#allocation75_spill] sm:$0xff] }
 0x238   : > { %6599 = vmatprep.mubr.bf16.mxu0 %v7408_v19 }
 0x239   : > { %4114 = vmatmul.mubr.bf16.gmra.mrb[4].mxu1 %v7134_v63  ;;  %v9789_v63 = vld [vmem:[#allocation71_spill] sm:$0xff] }
 0x23a   : > { %v6421_v50 = vpop.f32.mrb[140].mxu0  ;;  %4121 = vmatprep.mubr.bf16.mxu1 %v9784_v4 }
 0x23b   : > { %v8535_v42 = vadd.f32 %v6421_v50, %v9785_v38  ;;  %v2214_v35 = vpop.f32.mrb[141].mxu0  ;;  %v7135_v50 = vld [vmem:[%s7261_s16 + $0xe0] sm:$0xff]  }
 0x23c   : > { %v8538_v39 = vadd.f32 %v2214_v35, %v9786_v59  ;;  %v8540_v31 = vpop.f32.mrb[156].mxu1  ;;  %v6422_v18 = vpop.f32.mrb[142].mxu0  ;;  %v9791_v35 = vld [vmem:[#allocation40_spill] sm:$0xff] }
 0x23d   : > { %9787 = vst [vmem:[#allocation30_spill] sm:$0xff] %v8540_v31  ;;  %v8543_v14 = vadd.f32 %v6422_v18, %v9788_v12  ;;  %v3106_v19 = vpop.f32.mrb[157].mxu1  ;;  %v2217_v53 = vpop.f32.mrb[143].mxu0  ;;  %v9792_v18 = vld [vmem:[#allocation77_spill] sm:$0xff] }
 0x23e   : > { %v8546_v36 = vadd.f32 %v2217_v53, %v9789_v63  ;;  %v8548_v17 = vpop.f32.mrb[158].mxu1 }
 0x23f   : > { %9790 = vst [vmem:[#allocation38_spill] sm:$0xff] %v8548_v17  ;;  %v3109_v4 = vpop.f32.mrb[159].mxu1  ;;  %6600 = vmatmul.mubr.bf16.gmra.mrb[248].mxu0 %v9676_v60 }
 0x240   : > { %6603 = vmatprep.mubr.bf16.mxu0 %v9677_v34 }
 0x241   : > { %4122 = vmatmul.mubr.bf16.gmra.mrb[8].mxu1 %v7135_v50  ;;  %v9794_v50 = vld [vmem:[#allocation79_spill] sm:$0xff] }
 0x242   : > { %v6425_v38 = vpop.f32.mrb[144].mxu0  ;;  %4129 = vmatprep.mubr.bf16.mxu1 %v9791_v35 }
 0x243   : > { %v8555_v12 = vadd.f32 %v6425_v38, %v8098_v2  ;;  %v2230_v59 = vpop.f32.mrb[145].mxu0  ;;  %v7136_v2 = vld [vmem:[%s7261_s16 + $0xe8] sm:$0xff]  }
 0x244   : > { %v8558_v53 = vadd.f32 %v2230_v59, %v9792_v18  ;;  %v8560_v19 = vpop.f32.mrb[160].mxu1  ;;  %v6426_v63 = vpop.f32.mrb[146].mxu0  ;;  %v9796_v59 = vld [vmem:[#allocation47_spill] sm:$0xff] }
 0x245   : > { %9793 = vst [vmem:[#allocation32_spill] sm:$0xff] %v8560_v19  ;;  %v8563_v60 = vadd.f32 %v6426_v63, %v8105_v49  ;;  %v3114_v34 = vpop.f32.mrb[161].mxu1  ;;  %v2233_v4 = vpop.f32.mrb[147].mxu0 }
 0x246   : > { %v8566_v17 = vadd.f32 %v2233_v4, %v9794_v50  ;;  %v8568_v31 = vpop.f32.mrb[162].mxu1 }
 0x247   : > { %9795 = vst [vmem:[#allocation28_spill] sm:$0xff] %v8568_v31  ;;  %v3117_v35 = vpop.f32.mrb[163].mxu1  ;;  %6604 = vmatmul.mubr.bf16.gmra.mrb[252].mxu0 %v9685_v46 }
 0x248   : > { %6607 = vmatprep.mubr.bf16.mxu0 %v9686_v20 }
 0x249   : > { %4130 = vmatmul.mubr.bf16.gmra.mrb[12].mxu1 %v7136_v2 }
 0x24a   : > { %v6429_v38 = vpop.f32.mrb[148].mxu0  ;;  %4137 = vmatprep.mubr.bf16.mxu1 %v9796_v59 }
 0x24b   : > { %v8575_v49 = vadd.f32 %v6429_v38, %v8145_v13  ;;  %v2246_v18 = vpop.f32.mrb[149].mxu0  ;;  %v9798_v38 = vld [vmem:[#allocation54_spill] sm:$0xff] }
 0x24c   : > { %v8578_v63 = vadd.f32 %v2246_v18, %v8125_v11  ;;  %v8580_v34 = vpop.f32.mrb[164].mxu1  ;;  %v6430_v4 = vpop.f32.mrb[150].mxu0  ;;  %v7137_v11 = vld [vmem:[%s7261_s16 + $0xf0] sm:$0xff]  }
 0x24d   : > { %v8583_v46 = vadd.f32 %v6430_v4, %v8150_v55  ;;  %v3122_v20 = vpop.f32.mrb[165].mxu1  ;;  %v2249_v50 = vpop.f32.mrb[151].mxu0  ;;  %v9799_v18 = vld [vmem:[#allocation74_spill] sm:$0xff] }
 0x24e   : > { %v8586_v35 = vadd.f32 %v2249_v50, %v8130_v25  ;;  %v8588_v2 = vpop.f32.mrb[166].mxu1  ;;  %v9800_v20 = vld [vmem:[#allocation70_spill] sm:$0xff] }
 0x24f   : > { %9797 = vst [vmem:[#allocation50_spill] sm:$0xff] %v8588_v2  ;;  %v3125_v59 = vpop.f32.mrb[167].mxu1  ;;  %6608 = vmatmul.mubr.bf16.gmra.mrb[0].mxu0 %v9694_v1  ;;  %v9801_v1 = vld [vmem:[#allocation76_spill] sm:$0xff] }
 0x250   : > { %6611 = vmatprep.mubr.bf16.mxu0 %v9695_v16 }
 0x251   : > { %4138 = vmatmul.mubr.bf16.gmra.mrb[16].mxu1 %v7137_v11 }
 0x252   : > { %v6489_v13 = vpop.f32.mrb[152].mxu0  ;;  %4145 = vmatprep.mubr.bf16.mxu1 %v9798_v38  ;;  %v9802_v38 = vld [vmem:[#allocation72_spill] sm:$0xff] }
 0x253   : > { %v3170_v55 = vadd.f32 %v6489_v13, %v9799_v18  ;;  %v3161_v4 = vpop.f32.mrb[153].mxu0 }
 0x254   : > { %v3162_v31 = vadd.f32 %v3161_v4, %v9800_v20  ;;  %v8596_v25 = vpop.f32.mrb[168].mxu1  ;;  %v6490_v50 = vpop.f32.mrb[154].mxu0 }
 0x255   : > { %v8599_v59 = vadd.f32 %v3170_v55, %v8475_v32  ;;  %v3173_v2 = vadd.f32 %v6490_v50, %v9801_v1  ;;  %v3933_v16 = vpop.f32.mrb[169].mxu1  ;;  %v3164_v11 = vpop.f32.mrb[155].mxu0  ;;  %v7138_v55 = vld [vmem:[%s7261_s16 + $0xf8] sm:$0xff]  }
 0x256   : > { %v8603_v19 = vadd.f32 %v3162_v31, %v8478_v44  ;;  %v3165_v13 = vadd.f32 %v3164_v11, %v9802_v38  ;;  %v8606_v18 = vpop.f32.mrb[170].mxu1  ;;  %v6849_v1 = vld [vmem:[%s7261_s16 + $0x118] sm:$0xff]  }
 0x257   : > { %v8609_v4 = vadd.f32 %v3173_v2, %v8483_v28  ;;  %v3936_v20 = vpop.f32.mrb[171].mxu1  ;;  %6612 = vmatmul.mubr.bf16.gmra.mrb[4].mxu0 %v9703_v7  ;;  %v9803_v28 = vld [vmem:[#allocation78_spill] sm:$0xff]  ;;  %v9804_v11 = vld [vmem:[#allocation83_spill] sm:$0xff] }
 0x258   : > { %v8613_v32 = vadd.f32 %v3165_v13, %v8486_v54  ;;  %6615 = vmatprep.mubr.bf16.mxu0 %v9704_v52 }
 0x259   : > { %4146 = vmatmul.mubr.bf16.gmra.mrb[20].mxu1 %v7138_v55 }
 0x25a   : > { %v6493_v50 = vpop.f32.mrb[156].mxu0  ;;  %4153 = vmatprep.mubr.bf16.mxu1 %v8091_v3  ;;  %v9806_v3 = vld [vmem:[#allocation80_spill] sm:$0xff] }
 0x25b   : > { %v3186_v44 = vadd.f32 %v6493_v50, %v8103_v8  ;;  %v3177_v31 = vpop.f32.mrb[157].mxu0 }
 0x25c   : > { %v3178_v2 = vadd.f32 %v3177_v31, %v9803_v28  ;;  %v8621_v16 = vpop.f32.mrb[172].mxu1  ;;  %v6494_v7 = vpop.f32.mrb[158].mxu0  ;;  %v1069_v28 = vshll.u32 %v6849_v1, 16 }
 0x25d   : > { %v8624_v54 = vadd.f32 %v3186_v44, %v8495_v21  ;;  %v3189_v52 = vadd.f32 %v6494_v7, %v9804_v11  ;;  %v3941_v38 = vpop.f32.mrb[173].mxu1  ;;  %v3180_v13 = vpop.f32.mrb[159].mxu0  ;;  %v7139_v21 = vld [vmem:[%s7261_s16 + $0x110] sm:$0xff]   ;;  %v9810_v11 = vld [vmem:[#allocation87_spill] sm:$0xff] }
 0x25e   : > { %v8628_v20 = vadd.f32 %v3178_v2, %v8498_v15  ;;  %v3181_v8 = vadd.f32 %v3180_v13, %v9806_v3  ;;  %v8631_v55 = vpop.f32.mrb[174].mxu1  ;;  %v1065_v44 = vshrl.u32 %v7139_v21, 16  ;;  %v9809_v15 = vld [vmem:[#allocation82_spill] sm:$0xff]  ;;  %v9811_v38 = vld [vmem:[#allocation81_spill] sm:$0xff] }
 0x25f   : > { %v8634_v50 = vadd.f32 %v3189_v52, %v8503_v40  ;;  %v3944_v31 = vpop.f32.mrb[175].mxu1  ;;  %6616 = vmatmul.mubr.bf16.gmra.mrb[8].mxu0 %v9712_v0  ;;  %v1071_v0 = vrot.slane %v1069_v28, 1  ;;  %v6853_v3 = vld [vmem:[%s7261_s16 + $0x120] ss:$0 sps:$4 sm:$0x11]  }
 0x260   : > { %9805 = vst [vmem:[#allocation43_spill] sm:$0xff] %v8628_v20  ;;  %v8639_v7 = vadd.f32 %v3181_v8, %v8506_v5  ;;  %6619 = vmatprep.mubr.bf16.mxu0 %v9713_v48  ;;  %v1067_v13 = vor.u32 %v1065_v44, %v9811_v38  ;;  %v9812_v31 = vld [vmem:[#allocation84_spill] sm:$0xff] }
 0x261   : > { %9807 = vst [vmem:[#allocation52_spill] sm:$0xff] %v8634_v50  ;;  %4154 = vmatmul.mubr.bf16.gmra.mrb[24].mxu1 %v9809_v15  ;;  %v9813_v8 = vld [vmem:[#allocation88_spill] sm:$0xff] }
 0x262   : > { %9808 = vst [vmem:[#allocation45_spill] sm:$0xff] %v8639_v7  ;;  %v6497_v2 = vpop.f32.mrb[160].mxu0  ;;  %4161 = vmatprep.mubr.bf16.mxu1 %v8121_v22  ;;  %v6851_v22 = vld [vmem:[%s7261_s16 + $0x118] sm:$0xff]  }
 0x263   : > { %v3202_v40 = vadd.f32 %v6497_v2, %v9810_v11  ;;  %v3193_v52 = vpop.f32.mrb[161].mxu0  ;;  %v9814_v11 = vld [vmem:[#allocation86_spill] sm:$0xff] }
 0x264   : > { %v3194_v21 = vadd.f32 %v3193_v52, %v9812_v31  ;;  %v8648_v50 = vpop.f32.mrb[176].mxu1  ;;  %v6498_v5 = vpop.f32.mrb[162].mxu0 }
 0x265   : > { %v8651_v48 = vadd.f32 %v3202_v40, %v8515_v30  ;;  %v3205_v15 = vadd.f32 %v6498_v5, %v9813_v8  ;;  %v3949_v7 = vpop.f32.mrb[177].mxu1  ;;  %v3196_v20 = vpop.f32.mrb[163].mxu0  ;;  %v1072_v30 = vsel %vm788_vm1, %v1067_v13, %v1071_v0  ;;  %v1073_v40 = vshrl.u32 %v6849_v1, 16 }
 0x266   : > { %v8656_v2 = vadd.f32 %v3194_v21, %v8518_v33  ;;  %v3197_v44 = vadd.f32 %v3196_v20, %v9814_v11  ;;  %v8659_v28 = vpop.f32.mrb[178].mxu1  ;;  %v1077_v7 = vshll.u32 %v6853_v3, 16  ;;  %v9815_v33 = vld [vmem:[#allocation85_spill] sm:$0xff]  ;;  %v1479_v20 = vrot.slane %v6851_v22, 1 }
 0x267   : > { %v8662_v52 = vadd.f32 %v3205_v15, %v8523_v56  ;;  %v3952_v38 = vpop.f32.mrb[179].mxu1  ;;  %6620 = vmatmul.mubr.bf16.gmra.mrb[12].mxu0 %v9723_v29  ;;  %v1075_v29 = vor.u32 %v1073_v40, %v1071_v0 }
 0x268   : > { %v8667_v31 = vadd.f32 %v3197_v44, %v8526_v51  ;;  %6623 = vmatprep.mubr.bf16.mxu0 %v8376_v26  ;;  %v1079_v8 = vrot.slane %v1077_v7, 1  ;;  %v6852_v51 = vld [vmem:[%s7261_s16 + $0x120] ss:$0 sps:$4 sm:$0x11]   ;;  %v6850_v44 = vld [vmem:[%s7261_s16 + $0x110] sm:$0xff]   ;;  %v9816_v38 = vrot.slane %v8368_v62, 1 }
 0x269   : > { %4162 = vmatmul.mubr.bf16.gmra.mrb[28].mxu1 %v9815_v33  ;;  %v1481_v62 = vrot.slane %v6852_v51, 1 }
 0x26a   : > { %v6501_v21 = vpop.f32.mrb[164].mxu0  ;;  %4169 = vmatprep.mubr.bf16.mxu1 %v1072_v30 }
 0x26b   : > { %v3218_v56 = vadd.f32 %v6501_v21, %v8187_v41  ;;  %v3209_v5 = vpop.f32.mrb[165].mxu0  ;;  %v1480_v41 = vsel %vm1409_vm0, %v9816_v38, %v1479_v20 }
 0x26c   : > { %v3210_v13 = vadd.f32 %v3209_v5, %v8167_v61  ;;  %v8673_v1 = vpop.f32.mrb[180].mxu1  ;;  %v6502_v3 = vpop.f32.mrb[166].mxu0 }
 0x26d   : > { %v8677_v15 = vadd.f32 %v3218_v56, %v8535_v42  ;;  %v3221_v26 = vadd.f32 %v6502_v3, %v8195_v58  ;;  %v3957_v11 = vpop.f32.mrb[181].mxu1  ;;  %v3212_v22 = vpop.f32.mrb[167].mxu0  ;;  %v1080_v58 = vsel %vm788_vm1, %v1075_v29, %v1079_v8 }
 0x26e   : > { %v8685_v0 = vadd.f32 %v3210_v13, %v8538_v39  ;;  %v3213_v61 = vadd.f32 %v3212_v22, %v8175_v45  ;;  %v8688_v30 = vpop.f32.mrb[182].mxu1  ;;  %v6854_v13 = vld [vmem:[%s7261_s16 + $0x118] sm:$0xff]  }
 0x26f   : > { %v8691_v40 = vadd.f32 %v3221_v26, %v8543_v14  ;;  %v3960_v42 = vpop.f32.mrb[183].mxu1  ;;  %6624 = vmatmul.mubr.bf16.gmra.mrb[16].mxu0 %v8393_v37  ;;  %v1482_v37 = vsel %vm1409_vm0, %v1479_v20, %v1481_v62 }
 0x270   : > { %v8696_v7 = vadd.f32 %v3213_v61, %v8546_v36  ;;  %6627 = vmatprep.mubr.bf16.mxu0 %v1480_v41  ;;  %v9818_v42 = vld [vmem:[#allocation99_spill] sm:$0xff] }
 0x271   : > { %4170 = vmatmul.mubr.bf16.gmra.mrb[32].mxu1 %v6850_v44 }
 0x272   : > { %v6505_v39 = vpop.f32.mrb[168].mxu0  ;;  %4177 = vmatprep.mubr.bf16.mxu1 %v1080_v58 }
 0x273   : > { %v3234_v45 = vadd.f32 %v6505_v39, %v8224_v6  ;;  %v3225_v33 = vpop.f32.mrb[169].mxu0 }
 0x274   : > { %v3226_v14 = vadd.f32 %v3225_v33, %v8207_v57  ;;  %v8700_v21 = vpop.f32.mrb[184].mxu1  ;;  %v6506_v56 = vpop.f32.mrb[170].mxu0 }
 0x275   : > { %v8704_v5 = vadd.f32 %v3234_v45, %v8555_v12  ;;  %v3237_v36 = vadd.f32 %v6506_v56, %v8229_v27  ;;  %v3965_v29 = vpop.f32.mrb[185].mxu1  ;;  %v3228_v8 = vpop.f32.mrb[171].mxu0  ;;  %v9820_v45 = vld [vmem:[#allocation108_spill] sm:$0xff] }
 0x276   : > { %v8709_v3 = vadd.f32 %v3226_v14, %v8558_v53  ;;  %v3229_v6 = vadd.f32 %v3228_v8, %v8215_v10  ;;  %v8712_v51 = vpop.f32.mrb[186].mxu1  ;;  %v9821_v56 = vld [vmem:[#allocation104_spill] sm:$0xff]  ;;  %v9822_v29 = vld [vmem:[#allocation91_spill] sm:$0xff] }
 0x277   : > { %v8715_v57 = vadd.f32 %v3237_v36, %v8563_v60  ;;  %v3968_v26 = vpop.f32.mrb[187].mxu1  ;;  %6628 = vmatmul.mubr.bf16.gmra.mrb[20].mxu0 %v1482_v37  ;;  %v9817_v60 = vld [vmem:[#allocation102_spill] sm:$0xff] }
 0x278   : > { %v8718_v12 = vadd.f32 %v3229_v6, %v8566_v17 }
 0x279   : > { %4178 = vmatmul.mubr.bf16.gmra.mrb[36].mxu1 %v6854_v13  ;;  %v9824_v13 = vld [vmem:[#allocation110_spill] sm:$0xff] }
 0x27a   : > { %v6509_v27 = vpop.f32.mrb[172].mxu0 }
 0x27b   : > { %v3250_v20 = vadd.f32 %v6509_v27, %v8252_v24  ;;  %v3241_v11 = vpop.f32.mrb[173].mxu0  ;;  %v9825_v27 = vld [vmem:[#allocation89_spill] sm:$0xff] }
 0x27c   : > { %v3242_v53 = vadd.f32 %v3241_v11, %v8238_v9  ;;  %v8722_v22 = vpop.f32.mrb[188].mxu1  ;;  %v6510_v10 = vpop.f32.mrb[174].mxu0 }
 0x27d   : > { %v8725_v44 = vadd.f32 %v3250_v20, %v8575_v49  ;;  %v3253_v38 = vadd.f32 %v6510_v10, %v9817_v60  ;;  %v3973_v41 = vpop.f32.mrb[189].mxu1  ;;  %v3244_v61 = vpop.f32.mrb[175].mxu0  ;;  %v9828_v10 = vld [vmem:[#allocation92_spill] sm:$0xff] }
 0x27e   : > { %v8729_v17 = vadd.f32 %v3242_v53, %v8578_v63  ;;  %v3245_v58 = vadd.f32 %v3244_v61, %v9818_v42  ;;  %v8732_v62 = vpop.f32.mrb[190].mxu1  ;;  %v9830_v41 = vld [vmem:[#allocation90_spill] sm:$0xff] }
 0x27f   : > { %v8735_v24 = vadd.f32 %v3253_v38, %v8583_v46  ;;  %v3976_v9 = vpop.f32.mrb[191].mxu1 }
 0x280   : > { %v8738_v39 = vadd.f32 %v3245_v58, %v8586_v35  ;;  %v9827_v35 = vld [vmem:[#allocation106_spill] sm:$0xff]  ;;  %v9832_v58 = vld [vmem:[#allocation5_spill] sm:$0xff] }
 0x282   : > { %9819 = vst [vmem:[#allocation29_spill] sm:$0xff] %v8738_v39  ;;  %v6513_v49 = vpop.f32.mrb[176].mxu0 }
 0x283   : > { %v3266_v33 = vadd.f32 %v6513_v49, %v9820_v45  ;;  %v3257_v14 = vpop.f32.mrb[177].mxu0  ;;  %v9833_v45 = vld [vmem:[#allocation112_spill] sm:$0xff] }
 0x284   : > { %v3258_v37 = vadd.f32 %v3257_v14, %v9821_v56  ;;  %v8742_v36 = vpop.f32.mrb[192].mxu1  ;;  %v6514_v63 = vpop.f32.mrb[178].mxu0 }
 0x285   : > { %v8745_v8 = vadd.f32 %v3266_v33, %v9822_v29  ;;  %v3269_v6 = vadd.f32 %v6514_v63, %v9824_v13  ;;  %v3981_v46 = vpop.f32.mrb[193].mxu1  ;;  %v3260_v26 = vpop.f32.mrb[179].mxu0  ;;  %v9836_v29 = vld [vmem:[#allocation31_spill] sm:$0xff] }
 0x286   : > { %v8749_v20 = vadd.f32 %v3258_v37, %v9825_v27  ;;  %v3261_v11 = vadd.f32 %v3260_v26, %v9827_v35  ;;  %v8752_v53 = vpop.f32.mrb[194].mxu1  ;;  %v9834_v37 = vld [vmem:[#allocation95_spill] sm:$0xff]  ;;  %v9837_v26 = vld [vmem:[#allocation93_spill] sm:$0xff] }
 0x287   : > { %9823 = vst [vmem:[#allocation63_spill] sm:$0xff] %v8745_v8  ;;  %v8755_v60 = vadd.f32 %v3269_v6, %v9828_v10  ;;  %v3984_v38 = vpop.f32.mrb[195].mxu1  ;;  %v9839_v35 = vld [vmem:[#allocation113_spill] sm:$0xff] }
 0x288   : > { %9826 = vst [vmem:[#allocation57_spill] sm:$0xff] %v8749_v20  ;;  %v8758_v61 = vadd.f32 %v3261_v11, %v9830_v41  ;;  %v9840_v38 = vld [vmem:[#allocation96_spill] sm:$0xff] }
 0x289   : > { %9829 = vst [vmem:[#allocation65_spill] sm:$0xff] %v8755_v60 }
 0x28a   : > { %9831 = vst [vmem:[#allocation59_spill] sm:$0xff] %v8758_v61  ;;  %v6517_v42 = vpop.f32.mrb[180].mxu0 }
 0x28b   : > { %v3282_v9 = vadd.f32 %v6517_v42, %v9832_v58  ;;  %v3273_v49 = vpop.f32.mrb[181].mxu0  ;;  %v9842_v58 = vld [vmem:[#allocation94_spill] sm:$0xff] }
 0x28c   : > { %v3274_v33 = vadd.f32 %v3273_v49, %v9833_v45  ;;  %v8762_v14 = vpop.f32.mrb[196].mxu1  ;;  %v6518_v56 = vpop.f32.mrb[182].mxu0  ;;  %v9844_v45 = vld [vmem:[#allocation42_spill] sm:$0xff] }
 0x28d   : > { %v8765_v63 = vadd.f32 %v3282_v9, %v9834_v37  ;;  %v3285_v13 = vadd.f32 %v6518_v56, %v9836_v29  ;;  %v3989_v6 = vpop.f32.mrb[197].mxu1  ;;  %v3276_v46 = vpop.f32.mrb[183].mxu0  ;;  %v9845_v29 = vld [vmem:[#allocation6_spill] sm:$0xff] }
 0x28e   : > { %v8769_v27 = vadd.f32 %v3274_v33, %v9837_v26  ;;  %v3277_v11 = vadd.f32 %v3276_v46, %v9839_v35  ;;  %v8772_v10 = vpop.f32.mrb[198].mxu1  ;;  %v9846_v26 = vld [vmem:[#allocation100_spill] sm:$0xff]  ;;  %v9848_v35 = vld [vmem:[#allocation9_spill] sm:$0xff] }
 0x28f   : > { %9835 = vst [vmem:[#allocation33_spill] sm:$0xff] %v8765_v63  ;;  %v8775_v41 = vadd.f32 %v3285_v13, %v9840_v38  ;;  %v3992_v42 = vpop.f32.mrb[199].mxu1 }
 0x290   : > { %9838 = vst [vmem:[#allocation73_spill] sm:$0xff] %v8769_v27  ;;  %v8778_v49 = vadd.f32 %v3277_v11, %v9842_v58  ;;  %v9849_v42 = vld [vmem:[#allocation97_spill] sm:$0xff] }
 0x291   : > { %9841 = vst [vmem:[#allocation69_spill] sm:$0xff] %v8775_v41  ;;  %v9851_v11 = vld [vmem:[#allocation17_spill] sm:$0xff] }
 0x292   : > { %9843 = vst [vmem:[#allocation75_spill] sm:$0xff] %v8778_v49  ;;  %v6521_v9 = vpop.f32.mrb[184].mxu0 }
 0x293   : > { %v3298_v37 = vadd.f32 %v6521_v9, %v9844_v45  ;;  %v3289_v56 = vpop.f32.mrb[185].mxu0  ;;  %v9852_v9 = vld [vmem:[#allocation101_spill] sm:$0xff] }
 0x294   : > { %v3290_v6 = vadd.f32 %v3289_v56, %v9845_v29  ;;  %v8782_v63 = vpop.f32.mrb[200].mxu1  ;;  %v6522_v33 = vpop.f32.mrb[186].mxu0  ;;  %v9854_v29 = vld [vmem:[#allocation98_spill] sm:$0xff] }
 0x295   : > { %v8785_v46 = vadd.f32 %v3298_v37, %v9846_v26  ;;  %v3301_v27 = vadd.f32 %v6522_v33, %v9848_v35  ;;  %v3997_v13 = vpop.f32.mrb[201].mxu1  ;;  %v3292_v38 = vpop.f32.mrb[187].mxu0  ;;  %v9856_v26 = vld [vmem:[#allocation19_spill] sm:$0xff]  ;;  %v9857_v35 = vld [vmem:[#allocation37_spill] sm:$0xff] }
 0x296   : > { %v8789_v41 = vadd.f32 %v3290_v6, %v9849_v42  ;;  %v3293_v58 = vadd.f32 %v3292_v38, %v9851_v11  ;;  %v8792_v49 = vpop.f32.mrb[202].mxu1  ;;  %v9858_v42 = vld [vmem:[#allocation107_spill] sm:$0xff]  ;;  %v9860_v11 = vld [vmem:[#allocation49_spill] sm:$0xff] }
 0x297   : > { %9847 = vst [vmem:[#allocation71_spill] sm:$0xff] %v8785_v46  ;;  %v8795_v45 = vadd.f32 %v3301_v27, %v9852_v9  ;;  %v4000_v56 = vpop.f32.mrb[203].mxu1 }
 0x298   : > { %9850 = vst [vmem:[#allocation40_spill] sm:$0xff] %v8789_v41  ;;  %v8798_v61 = vadd.f32 %v3293_v58, %v9854_v29  ;;  %v9861_v56 = vld [vmem:[#allocation103_spill] sm:$0xff]  ;;  %v9863_v58 = vld [vmem:[#allocation10_spill] sm:$0xff] }
 0x299   : > { %9853 = vst [vmem:[#allocation77_spill] sm:$0xff] %v8795_v45 }
 0x29a   : > { %9855 = vst [vmem:[#allocation79_spill] sm:$0xff] %v8798_v61  ;;  %v6525_v37 = vpop.f32.mrb[188].mxu0 }
 0x29b   : > { %v3314_v46 = vadd.f32 %v6525_v37, %v9856_v26  ;;  %v3305_v33 = vpop.f32.mrb[189].mxu0  ;;  %v9864_v37 = vld [vmem:[#allocation109_spill] sm:$0xff] }
 0x29c   : > { %v3306_v13 = vadd.f32 %v3305_v33, %v9857_v35  ;;  %v8802_v60 = vpop.f32.mrb[204].mxu1  ;;  %v6526_v6 = vpop.f32.mrb[190].mxu0  ;;  %v9866_v35 = vld [vmem:[#allocation105_spill] sm:$0xff] }
 0x29d   : > { %v8805_v38 = vadd.f32 %v3314_v46, %v9858_v42  ;;  %v3317_v41 = vadd.f32 %v6526_v6, %v9860_v11  ;;  %v4005_v27 = vpop.f32.mrb[205].mxu1  ;;  %v3308_v9 = vpop.f32.mrb[191].mxu0 }
 0x29e   : > { %v8809_v45 = vadd.f32 %v3306_v13, %v9861_v56  ;;  %v3309_v29 = vadd.f32 %v3308_v9, %v9863_v58  ;;  %v8812_v61 = vpop.f32.mrb[206].mxu1  ;;  %v9868_v56 = vld [vmem:[#allocation4_spill] sm:$0xff] }
 0x29f   : > { %9859 = vst [vmem:[#allocation47_spill] sm:$0xff] %v8805_v38  ;;  %v8815_v26 = vadd.f32 %v3317_v41, %v9864_v37  ;;  %v4008_v33 = vpop.f32.mrb[207].mxu1 }
 0x2a0   : > { %9862 = vst [vmem:[#allocation54_spill] sm:$0xff] %v8809_v45  ;;  %v8818_v20 = vadd.f32 %v3309_v29, %v9866_v35  ;;  %v9870_v33 = vld [vmem:[#allocation111_spill] sm:$0xff]  ;;  %v9872_v29 = vld [vmem:[#allocation20_spill] sm:$0xff] }
 0x2a1   : > { %9865 = vst [vmem:[#allocation74_spill] sm:$0xff] %v8815_v26 }
 0x2a2   : > { %9867 = vst [vmem:[#allocation70_spill] sm:$0xff] %v8818_v20  ;;  %v6529_v46 = vpop.f32.mrb[192].mxu0 }
 0x2a3   : > { %v3330_v42 = vadd.f32 %v6529_v46, %v8407_v23  ;;  %v3321_v6 = vpop.f32.mrb[193].mxu0  ;;  %v9874_v23 = vld [vmem:[#allocation16_spill] sm:$0xff] }
 0x2a4   : > { %v3322_v11 = vadd.f32 %v3321_v6, %v8388_v43  ;;  %v8822_v27 = vpop.f32.mrb[208].mxu1  ;;  %v6530_v13 = vpop.f32.mrb[194].mxu0  ;;  %v9876_v6 = vld [vmem:[#allocation35_spill] sm:$0xff] }
 0x2a5   : > { %v8825_v9 = vadd.f32 %v3330_v42, %v9868_v56  ;;  %v3333_v58 = vadd.f32 %v6530_v13, %v8412_v47  ;;  %v4013_v41 = vpop.f32.mrb[209].mxu1  ;;  %v3324_v37 = vpop.f32.mrb[195].mxu0  ;;  %v9878_v56 = vld [vmem:[#allocation22_spill] sm:$0xff]  ;;  %v9879_v13 = vld [vmem:[#allocation15_spill] sm:$0xff] }
 0x2a6   : > { %v8829_v26 = vadd.f32 %v3322_v11, %v9870_v33  ;;  %v3325_v35 = vadd.f32 %v3324_v37, %v9872_v29  ;;  %v8832_v20 = vpop.f32.mrb[210].mxu1  ;;  %v9880_v33 = vld [vmem:[#allocation39_spill] sm:$0xff] }
 0x2a7   : > { %9869 = vst [vmem:[#allocation76_spill] sm:$0xff] %v8825_v9  ;;  %9873 = vst [vmem:[#allocation78_spill] sm:$0xff] %v8832_v20  ;;  %v8835_v46 = vadd.f32 %v3333_v58, %v9874_v23  ;;  %v4016_v43 = vpop.f32.mrb[211].mxu1  ;;  %v9882_v29 = vld [vmem:[#allocation55_spill] sm:$0xff] }
 0x2a8   : > { %9871 = vst [vmem:[#allocation72_spill] sm:$0xff] %v8829_v26  ;;  %v8838_v45 = vadd.f32 %v3325_v35, %v9876_v6  ;;  %v9883_v43 = vld [vmem:[#allocation34_spill] sm:$0xff]  ;;  %v9885_v35 = vld [vmem:[#allocation53_spill] sm:$0xff] }
 0x2a9   : > { %9875 = vst [vmem:[#allocation83_spill] sm:$0xff] %v8835_v46 }
 0x2aa   : > { %9877 = vst [vmem:[#allocation80_spill] sm:$0xff] %v8838_v45  ;;  %v6533_v42 = vpop.f32.mrb[196].mxu0 }
 0x2ab   : > { %v3346_v9 = vadd.f32 %v6533_v42, %v9878_v56  ;;  %v3337_v47 = vpop.f32.mrb[197].mxu0  ;;  %v9886_v42 = vld [vmem:[#allocation8_spill] sm:$0xff] }
 0x2ac   : > { %v3338_v41 = vadd.f32 %v3337_v47, %v9879_v13  ;;  %v8842_v38 = vpop.f32.mrb[212].mxu1  ;;  %v6534_v11 = vpop.f32.mrb[198].mxu0  ;;  %v9888_v13 = vld [vmem:[#allocation7_spill] sm:$0xff] }
 0x2ad   : > { %v8845_v37 = vadd.f32 %v3346_v9, %v9880_v33  ;;  %v3349_v26 = vadd.f32 %v6534_v11, %v9882_v29  ;;  %v4021_v58 = vpop.f32.mrb[213].mxu1  ;;  %v3340_v23 = vpop.f32.mrb[199].mxu0  ;;  %v9890_v33 = vld [vmem:[#allocation61_spill] sm:$0xff]  ;;  %v9891_v29 = vld [vmem:[#allocation60_spill] sm:$0xff] }
 0x2ae   : > { %v8849_v46 = vadd.f32 %v3338_v41, %v9883_v43  ;;  %v3341_v6 = vadd.f32 %v3340_v23, %v9885_v35  ;;  %v8852_v45 = vpop.f32.mrb[214].mxu1  ;;  %v9893_v43 = vld [vmem:[#allocation11_spill] sm:$0xff]  ;;  %v9895_v35 = vld [vmem:[#allocation66_spill] sm:$0xff] }
 0x2af   : > { %9881 = vst [vmem:[#allocation82_spill] sm:$0xff] %v8845_v37  ;;  %v8855_v56 = vadd.f32 %v3349_v26, %v9886_v42  ;;  %v4024_v47 = vpop.f32.mrb[215].mxu1 }
 0x2b0   : > { %9884 = vst [vmem:[#allocation87_spill] sm:$0xff] %v8849_v46  ;;  %v8858_v8 = vadd.f32 %v3341_v6, %v9888_v13  ;;  %v9896_v47 = vld [vmem:[#allocation18_spill] sm:$0xff]  ;;  %v9898_v6 = vld [vmem:[#allocation24_spill] sm:$0xff] }
 0x2b1   : > { %9887 = vst [vmem:[#allocation81_spill] sm:$0xff] %v8855_v56 }
 0x2b2   : > { %9889 = vst [vmem:[#allocation84_spill] sm:$0xff] %v8858_v8  ;;  %v6537_v9 = vpop.f32.mrb[200].mxu0 }
 0x2b3   : > { %v3362_v37 = vadd.f32 %v6537_v9, %v9890_v33  ;;  %v3353_v11 = vpop.f32.mrb[201].mxu0  ;;  %v9900_v9 = vld [vmem:[#allocation46_spill] sm:$0xff] }
 0x2b4   : > { %v3354_v58 = vadd.f32 %v3353_v11, %v9891_v29  ;;  %v8862_v39 = vpop.f32.mrb[216].mxu1  ;;  %v6538_v41 = vpop.f32.mrb[202].mxu0  ;;  %v9902_v29 = vld [vmem:[#allocation41_spill] sm:$0xff] }
 0x2b5   : > { %9892 = vst [vmem:[#allocation88_spill] sm:$0xff] %v8862_v39  ;;  %v8865_v23 = vadd.f32 %v3362_v37, %v9893_v43  ;;  %v3365_v46 = vadd.f32 %v6538_v41, %v9895_v35  ;;  %v4029_v26 = vpop.f32.mrb[217].mxu1  ;;  %v3356_v42 = vpop.f32.mrb[203].mxu0  ;;  %v9904_v43 = vld [vmem:[#allocation64_spill] sm:$0xff] }
 0x2b6   : > { %v8869_v56 = vadd.f32 %v3354_v58, %v9896_v47  ;;  %v3357_v13 = vadd.f32 %v3356_v42, %v9898_v6  ;;  %v8872_v8 = vpop.f32.mrb[218].mxu1  ;;  %v9905_v35 = vld [vmem:[#allocation68_spill] sm:$0xff]  ;;  %v9909_v6 = vld [vmem:[#allocation67_spill] sm:$0xff] }
 0x2b7   : > { %9894 = vst [vmem:[#allocation86_spill] sm:$0xff] %v8865_v23  ;;  %9899 = vst [vmem:[#allocation102_spill] sm:$0xff] %v8872_v8  ;;  %v8875_v33 = vadd.f32 %v3365_v46, %v9900_v9  ;;  %v4032_v11 = vpop.f32.mrb[219].mxu1  ;;  %v9907_v47 = vld [vmem:[#allocation44_spill] sm:$0xff] }
 0x2b8   : > { %9897 = vst [vmem:[#allocation85_spill] sm:$0xff] %v8869_v56  ;;  %v8878_v39 = vadd.f32 %v3357_v13, %v9902_v29  ;;  %v9910_v11 = vld [vmem:[#allocation12_spill] sm:$0xff]  ;;  %v9912_v13 = vld [vmem:[#allocation26_spill] sm:$0xff] }
 0x2b9   : > { %9901 = vst [vmem:[#allocation99_spill] sm:$0xff] %v8875_v33 }
 0x2ba   : > { %9903 = vst [vmem:[#allocation108_spill] sm:$0xff] %v8878_v39  ;;  %v6541_v37 = vpop.f32.mrb[204].mxu0 }
 0x2bb   : > { %v3378_v23 = vadd.f32 %v6541_v37, %v9904_v43  ;;  %v3369_v41 = vpop.f32.mrb[205].mxu0  ;;  %v9913_v37 = vld [vmem:[#allocation48_spill] sm:$0xff] }
 0x2bc   : > { %v3370_v26 = vadd.f32 %v3369_v41, %v9905_v35  ;;  %v8882_v20 = vpop.f32.mrb[220].mxu1  ;;  %v6542_v58 = vpop.f32.mrb[206].mxu0  ;;  %v9915_v35 = vld [vmem:[#allocation14_spill] sm:$0xff] }
 0x2bd   : > { %9906 = vst [vmem:[#allocation104_spill] sm:$0xff] %v8882_v20  ;;  %v8885_v42 = vadd.f32 %v3378_v23, %v9907_v47  ;;  %v3381_v56 = vadd.f32 %v6542_v58, %v9909_v6  ;;  %v4037_v46 = vpop.f32.mrb[221].mxu1  ;;  %v3372_v9 = vpop.f32.mrb[207].mxu0  ;;  %v9917_v47 = vld [vmem:[#allocation30_spill] sm:$0xff]  ;;  %v9918_v6 = vld [vmem:[#allocation27_spill] sm:$0xff] }
 0x2be   : > { %v8889_v33 = vadd.f32 %v3370_v26, %v9910_v11  ;;  %v3373_v29 = vadd.f32 %v3372_v9, %v9912_v13  ;;  %v8892_v39 = vpop.f32.mrb[222].mxu1  ;;  %v9920_v11 = vld [vmem:[#allocation56_spill] sm:$0xff]  ;;  %v9922_v13 = vld [vmem:[#allocation38_spill] sm:$0xff] }
 0x2bf   : > { %9908 = vst [vmem:[#allocation91_spill] sm:$0xff] %v8885_v42  ;;  %v8895_v43 = vadd.f32 %v3381_v56, %v9913_v37  ;;  %v4040_v41 = vpop.f32.mrb[223].mxu1 }
 0x2c0   : > { %9911 = vst [vmem:[#allocation110_spill] sm:$0xff] %v8889_v33  ;;  %v8898_v8 = vadd.f32 %v3373_v29, %v9915_v35  ;;  %v9923_v41 = vld [vmem:[#allocation13_spill] sm:$0xff]  ;;  %v9925_v29 = vld [vmem:[#allocation36_spill] sm:$0xff] }
 0x2c1   : > { %9914 = vst [vmem:[#allocation89_spill] sm:$0xff] %v8895_v43 }
 0x2c2   : > { %9916 = vst [vmem:[#allocation106_spill] sm:$0xff] %v8898_v8  ;;  %v6545_v23 = vpop.f32.mrb[208].mxu0 }
 0x2c3   : > { %v3394_v42 = vadd.f32 %v6545_v23, %v9917_v47  ;;  %v3385_v58 = vpop.f32.mrb[209].mxu0  ;;  %v9927_v23 = vld [vmem:[#allocation51_spill] sm:$0xff] }
 0x2c4   : > { %v3386_v46 = vadd.f32 %v3385_v58, %v9918_v6  ;;  %v8902_v20 = vpop.f32.mrb[224].mxu1  ;;  %v6546_v26 = vpop.f32.mrb[210].mxu0  ;;  %v9929_v6 = vld [vmem:[#allocation21_spill] sm:$0xff] }
 0x2c5   : > { %9919 = vst [vmem:[#allocation92_spill] sm:$0xff] %v8902_v20  ;;  %v8905_v9 = vadd.f32 %v3394_v42, %v9920_v11  ;;  %v3397_v33 = vadd.f32 %v6546_v26, %v9922_v13  ;;  %v4045_v56 = vpop.f32.mrb[225].mxu1  ;;  %v3388_v37 = vpop.f32.mrb[211].mxu0  ;;  %v9931_v13 = vld [vmem:[#allocation32_spill] sm:$0xff] }
 0x2c6   : > { %v8909_v43 = vadd.f32 %v3386_v46, %v9923_v41  ;;  %v3389_v35 = vadd.f32 %v3388_v37, %v9925_v29  ;;  %v8912_v8 = vpop.f32.mrb[226].mxu1  ;;  %v9932_v41 = vld [vmem:[#allocation58_spill] sm:$0xff] }
 0x2c7   : > { %9921 = vst [vmem:[#allocation90_spill] sm:$0xff] %v8905_v9  ;;  %9926 = vst [vmem:[#allocation112_spill] sm:$0xff] %v8912_v8  ;;  %v8915_v47 = vadd.f32 %v3397_v33, %v9927_v23  ;;  %v4048_v58 = vpop.f32.mrb[227].mxu1  ;;  %v9933_v29 = vld [vmem:[#allocation50_spill] sm:$0xff] }
 0x2c8   : > { %9924 = vst [vmem:[#allocation5_spill] sm:$0xff] %v8909_v43  ;;  %v8918_v20 = vadd.f32 %v3389_v35, %v9929_v6  ;;  %v9934_v58 = vld [vmem:[#allocation23_spill] sm:$0xff]  ;;  %v9936_v35 = vld [vmem:[#allocation28_spill] sm:$0xff] }
 0x2c9   : > { %9928 = vst [vmem:[#allocation95_spill] sm:$0xff] %v8915_v47 }
 0x2ca   : > { %9930 = vst [vmem:[#allocation31_spill] sm:$0xff] %v8918_v20  ;;  %v6549_v42 = vpop.f32.mrb[212].mxu0 }
 0x2cb   : > { %v3410_v11 = vadd.f32 %v6549_v42, %v8580_v34  ;;  %v3401_v26 = vpop.f32.mrb[213].mxu0  ;;  %v9937_v34 = vld [vmem:[#allocation25_spill] sm:$0xff] }
 0x2cc   : > { %v3402_v56 = vadd.f32 %v3401_v26, %v9931_v13  ;;  %v8922_v9 = vpop.f32.mrb[228].mxu1  ;;  %v6550_v46 = vpop.f32.mrb[214].mxu0  ;;  %v9939_v13 = vld [vmem:[#allocation62_spill] sm:$0xff] }
 0x2cd   : > { %v8925_v37 = vadd.f32 %v3410_v11, %v9932_v41  ;;  %v3413_v43 = vadd.f32 %v6550_v46, %v9933_v29  ;;  %v4053_v33 = vpop.f32.mrb[229].mxu1  ;;  %v3404_v23 = vpop.f32.mrb[215].mxu0 }
 0x2ce   : > { %v8929_v47 = vadd.f32 %v3402_v56, %v9934_v58  ;;  %v3405_v6 = vadd.f32 %v3404_v23, %v9936_v35  ;;  %v8932_v20 = vpop.f32.mrb[230].mxu1  ;;  %v8944_v56 = vld [vmem:[%s9514_s2] ss:$0 sm:$0xff] }
 0x2cf   : > { %v8935_v42 = vadd.f32 %v3413_v43, %v9937_v34  ;;  %v4056_v26 = vpop.f32.mrb[231].mxu1 }
 0x2d0   : > { %9935 = vst [vmem:[#allocation93_spill] sm:$0xff] %v8929_v47  ;;  %v8938_v8 = vadd.f32 %v3405_v6, %v9939_v13 }
 0x2d1   : > { %9938 = vst [vmem:[#allocation113_spill] sm:$0xff] %v8935_v42 }
 0x2d2   : > { %9940 = vst [vmem:[#allocation96_spill] sm:$0xff] %v8938_v8  ;;  %v6569_v11 = vpop.f32.mrb[216].mxu0 }
 0x2d3   : > { %v4229_v41 = vadd.f32 %v6569_v11, %v8621_v16  ;;  %v4220_v46 = vpop.f32.mrb[217].mxu0 }
 0x2d4   : > { %v8946_v29 = vpop.f32.mrb[232].mxu1  ;;  %v4221_v33 = vadd.f32 %v4220_v46, %v8596_v25  ;;  %v6570_v23 = vpop.f32.mrb[218].mxu0 }
 0x2d5   : > { %v4477_v43 = vadd.f32 %v4229_v41, %v8599_v59  ;;  %v4061_v58 = vpop.f32.mrb[233].mxu1  ;;  %v4232_v35 = vadd.f32 %v6570_v23, %v8631_v55  ;;  %v4223_v6 = vpop.f32.mrb[219].mxu0 }
 0x2d6   : > { %v4475_v34 = vadd.f32 %v4221_v33, %v8603_v19  ;;  %v8952_v16 = vpop.f32.mrb[234].mxu1  ;;  %v4224_v26 = vadd.f32 %v4223_v6, %v8606_v18 }
 0x2d7   : > { %v8956_v13 = vadd.f32 %v8944_v56, %v4477_v43  ;;  %v4478_v11 = vadd.f32 %v4232_v35, %v8609_v4  ;;  %v4064_v8 = vpop.f32.mrb[235].mxu1 }
 0x2d8   : > { %v8960_v25 = vadd.f32 %v8944_v56, %v4475_v34  ;;  %v4476_v59 = vadd.f32 %v4224_v26, %v8613_v32 }
 0x2d9   : > { %v5887_v55 = vmul.f32 -1.442695, %v8956_v13  ;;  %v8965_v41 = vadd.f32 %v8944_v56, %v4478_v11  ;;  %v9941_v11 = vld [vmem:[#allocation43_spill] sm:$0xff] }
 0x2da   : > { %v5885_v19 = vmul.f32 -1.442695, %v8960_v25  ;;  %v8969_v18 = vadd.f32 %v8944_v56, %v4476_v59  ;;  %v6573_v46 = vpop.f32.mrb[220].mxu0 }
 0x2db   : > { %6855 = vpow2.f32 %v5887_v55  ;;  %v5888_v4 = vmul.f32 -1.442695, %v8965_v41  ;;  %v4245_v8 = vadd.f32 %v6573_v46, %v8673_v1  ;;  %v4236_v33 = vpop.f32.mrb[221].mxu0  ;;  %v9942_v46 = vld [vmem:[#allocation52_spill] sm:$0xff] }
 0x2dc   : > { %6857 = vpow2.f32 %v5885_v19  ;;  %v5886_v32 = vmul.f32 -1.442695, %v8969_v18  ;;  %v8974_v23 = vpop.f32.mrb[236].mxu1  ;;  %v4237_v43 = vadd.f32 %v4236_v33, %v8648_v50  ;;  %v6574_v58 = vpop.f32.mrb[222].mxu0 }
 0x2dd   : > { %6859 = vpow2.f32 %v5888_v4  ;;  %v4481_v35 = vadd.f32 %v4245_v8, %v8624_v54  ;;  %v4069_v6 = vpop.f32.mrb[237].mxu1  ;;  %v4248_v34 = vadd.f32 %v6574_v58, %v8688_v30  ;;  %v4239_v26 = vpop.f32.mrb[223].mxu0  ;;  %v9943_v54 = vld [vmem:[#allocation45_spill] sm:$0xff] }
 0x2de   : > { %6861 = vpow2.f32 %v5886_v32  ;;  %v4479_v59 = vadd.f32 %v4237_v43, %v9941_v11  ;;  %v8980_v1 = vpop.f32.mrb[238].mxu1  ;;  %v4240_v55 = vadd.f32 %v4239_v26, %v8659_v28 }
 0x2df   : > { %v8984_v19 = vadd.f32 %v8944_v56, %v4481_v35  ;;  %v4482_v50 = vadd.f32 %v4248_v34, %v9942_v46  ;;  %v4072_v33 = vpop.f32.mrb[239].mxu1 }
 0x2e0   : > { %v8988_v4 = vadd.f32 %v8944_v56, %v4479_v59  ;;  %v4480_v8 = vadd.f32 %v4240_v55, %v9943_v54 }
 0x2e1   : > { %v5891_v30 = vmul.f32 -1.442695, %v8984_v19  ;;  %v8993_v32 = vadd.f32 %v8944_v56, %v4482_v50 }
 0x2e2   : > { %v5889_v43 = vmul.f32 -1.442695, %v8988_v4  ;;  %v8997_v28 = vadd.f32 %v8944_v56, %v4480_v8  ;;  %v6577_v58 = vpop.f32.mrb[224].mxu0 }
 0x2e3   : > { %6863 = vpow2.f32 %v5891_v30  ;;  %v5892_v35 = vmul.f32 -1.442695, %v8993_v32  ;;  %v4261_v6 = vadd.f32 %v6577_v58, %v8722_v22  ;;  %v4252_v34 = vpop.f32.mrb[225].mxu0 }
 0x2e4   : > { %6865 = vpow2.f32 %v5889_v43  ;;  %v5890_v26 = vmul.f32 -1.442695, %v8997_v28  ;;  %v9002_v11 = vpop.f32.mrb[240].mxu1  ;;  %v4253_v59 = vadd.f32 %v4252_v34, %v8700_v21  ;;  %v6578_v55 = vpop.f32.mrb[226].mxu0 }
 0x2e5   : > { %v6856_v46 = vpop.eup %6855  ;;  %6867 = vpow2.f32 %v5892_v35  ;;  %v4485_v50 = vadd.f32 %v4261_v6, %v8651_v48  ;;  %v4077_v33 = vpop.f32.mrb[241].mxu1  ;;  %v4264_v54 = vadd.f32 %v6578_v55, %v8732_v62 }
 0x2e6   : > { %v4255_v8 = vpop.f32.mrb[227].mxu0  ;;  %v6858_v30 = vpop.eup %6857  ;;  %v4932_v42 = vadd.f32 1.0, %v6856_v46  ;;  %6869 = vpow2.f32 %v5890_v26  ;;  %v4483_v22 = vadd.f32 %v4253_v59, %v8656_v2 }
 0x2e7   : > { %v9008_v43 = vpop.f32.mrb[242].mxu1  ;;  %v4256_v58 = vadd.f32 %v4255_v8, %v8712_v51  ;;  %v6860_v47 = vpop.eup %6859  ;;  %v4930_v21 = vadd.f32 1.0, %v6858_v30  ;;  %v9012_v34 = vadd.f32 %v8944_v56, %v4485_v50  ;;  %v4486_v48 = vadd.f32 %v4264_v54, %v8662_v52 }
 0x2e8   : > { %v4080_v35 = vpop.f32.mrb[243].mxu1  ;;  %v6862_v6 = vpop.eup %6861  ;;  %6871 = vrcp.f32 %v4932_v42  ;;  %v4933_v62 = vadd.f32 1.0, %v6860_v47  ;;  %v9016_v55 = vadd.f32 %v8944_v56, %v4483_v22 }
 0x2e9   : > { %v4484_v2 = vadd.f32 %v4256_v58, %v8667_v31  ;;  %6873 = vrcp.f32 %v4930_v21  ;;  %v4931_v26 = vadd.f32 1.0, %v6862_v6  ;;  %v5895_v51 = vmul.f32 -1.442695, %v9012_v34 }
 0x2ea   : > { %v9021_v59 = vadd.f32 %v8944_v56, %v4486_v48  ;;  %6875 = vrcp.f32 %v4933_v62  ;;  %v5893_v46 = vmul.f32 -1.442695, %v9016_v55  ;;  %v6581_v42 = vpop.f32.mrb[228].mxu0 }
 0x2eb   : > { %v9025_v52 = vadd.f32 %v8944_v56, %v4484_v2  ;;  %6877 = vrcp.f32 %v4931_v26  ;;  %v4277_v50 = vadd.f32 %v6581_v42, %v8762_v14  ;;  %v4268_v31 = vpop.f32.mrb[229].mxu0 }
 0x2ec   : > { %v5896_v47 = vmul.f32 -1.442695, %v9021_v59  ;;  %6879 = vpow2.f32 %v5895_v51  ;;  %v9030_v54 = vpop.f32.mrb[244].mxu1  ;;  %v4269_v8 = vadd.f32 %v4268_v31, %v8742_v36  ;;  %v6582_v30 = vpop.f32.mrb[230].mxu0 }
 0x2ed   : > { %v5894_v33 = vmul.f32 -1.442695, %v9025_v52  ;;  %v6864_v22 = vpop.eup %6863  ;;  %6881 = vpow2.f32 %v5893_v46  ;;  %v4489_v58 = vadd.f32 %v4277_v50, %v8677_v15  ;;  %v4085_v21 = vpop.f32.mrb[245].mxu1  ;;  %v4280_v48 = vadd.f32 %v6582_v30, %v8772_v10 }
 0x2ee   : > { %v4271_v35 = vpop.f32.mrb[231].mxu0  ;;  %v6866_v6 = vpop.eup %6865  ;;  %v4936_v62 = vadd.f32 1.0, %v6864_v22  ;;  %6883 = vpow2.f32 %v5896_v47  ;;  %v4487_v14 = vadd.f32 %v4269_v8, %v8685_v0 }
 0x2ef   : > { %v9036_v2 = vpop.f32.mrb[246].mxu1  ;;  %v4272_v26 = vadd.f32 %v4271_v35, %v8752_v53  ;;  %v6868_v51 = vpop.eup %6867  ;;  %v4934_v36 = vadd.f32 1.0, %v6866_v6  ;;  %6885 = vpow2.f32 %v5894_v33  ;;  %v9040_v46 = vadd.f32 %v8944_v56, %v4489_v58 }
 0x2f0   : > { %v4490_v15 = vadd.f32 %v4280_v48, %v8691_v40  ;;  %v4088_v42 = vpop.f32.mrb[247].mxu1  ;;  %v6870_v10 = vpop.eup %6869  ;;  %6887 = vrcp.f32 %v4936_v62  ;;  %v4937_v50 = vadd.f32 1.0, %v6868_v51  ;;  %v9044_v47 = vadd.f32 %v8944_v56, %v4487_v14 }
 0x2f1   : > { %v4488_v0 = vadd.f32 %v4272_v26, %v8696_v7  ;;  %6889 = vrcp.f32 %v4934_v36  ;;  %v4935_v53 = vadd.f32 1.0, %v6870_v10  ;;  %v5899_v31 = vmul.f32 -1.442695, %v9040_v46 }
 0x2f2   : > { %v9049_v33 = vadd.f32 %v8944_v56, %v4490_v15  ;;  %v6872_v8 = vpop.eup %6871  ;;  %6891 = vrcp.f32 %v4937_v50  ;;  %v5897_v40 = vmul.f32 -1.442695, %v9044_v47  ;;  %v6585_v22 = vpop.f32.mrb[232].mxu0 }
 0x2f3   : > { %v9053_v30 = vadd.f32 %v8944_v56, %v4488_v0  ;;  %v6874_v58 = vpop.eup %6873  ;;  %v5124_v21 = vmul.f32 %v6872_v8, %v8956_v13  ;;  %6893 = vrcp.f32 %v4935_v53  ;;  %v4293_v48 = vadd.f32 %v6585_v22, %v8802_v60  ;;  %v4284_v35 = vpop.f32.mrb[233].mxu0 }
 0x2f4   : > { %v5900_v7 = vmul.f32 -1.442695, %v9049_v33  ;;  %v6876_v6 = vpop.eup %6875  ;;  %v5122_v62 = vmul.f32 %v6874_v58, %v8960_v25  ;;  %6895 = vpow2.f32 %v5899_v31  ;;  %v9061_v26 = vpop.f32.mrb[248].mxu1  ;;  %v4285_v51 = vadd.f32 %v4284_v35, %v8782_v63 }
 0x2f5   : > { %v5898_v14 = vmul.f32 -1.442695, %v9053_v30  ;;  %v6586_v36 = vpop.f32.mrb[234].mxu0  ;;  %v6878_v15 = vpop.eup %6877  ;;  %v5125_v13 = vmul.f32 %v6876_v6, %v8965_v41  ;;  %6897 = vpow2.f32 %v5897_v40  ;;  %v4493_v42 = vadd.f32 %v4293_v48, %v8704_v5 }
 0x2f6   : > { %v4093_v10 = vpop.f32.mrb[249].mxu1  ;;  %v4296_v60 = vadd.f32 %v6586_v36, %v8812_v61  ;;  %v4287_v50 = vpop.f32.mrb[235].mxu0  ;;  %v5123_v25 = vmul.f32 %v6878_v15, %v8969_v18  ;;  %6899 = vpow2.f32 %v5900_v7  ;;  %v4491_v63 = vadd.f32 %v4285_v51, %v8709_v3 }
 0x2f7   : > { %v6880_v0 = vpop.eup %6879  ;;  %v9074_v41 = vpop.f32.mrb[250].mxu1  ;;  %v4288_v5 = vadd.f32 %v4287_v50, %v8792_v49  ;;  %v6088_v31 = vpack.c.bf16 %v5125_v13, %v5124_v21  ;;  %6901 = vpow2.f32 %v5898_v14  ;;  %v9078_v8 = vadd.f32 %v8944_v56, %v4493_v42 }
 0x2f8   : > { %v6882_v53 = vpop.eup %6881  ;;  %v4940_v61 = vadd.f32 1.0, %v6880_v0  ;;  %v4096_v40 = vpop.f32.mrb[251].mxu1  ;;  %v6083_v58 = vpack.c.bf16 %v5123_v25, %v5122_v62  ;;  %v9081_v7 = vadd.f32 %v8944_v56, %v4491_v63  ;;  %v4494_v3 = vadd.f32 %v4296_v60, %v8715_v57 }
 0x2f9   : > { %v6884_v22 = vpop.eup %6883  ;;  %v4938_v18 = vadd.f32 1.0, %v6882_v53  ;;  %6240 = vst [vmem:[%s9070_s7 + $0x8] sm:$0xff] %v6088_v31   ;;  %v5903_v21 = vmul.f32 -1.442695, %v9078_v8  ;;  %v4492_v35 = vadd.f32 %v4288_v5, %v8718_v12 }
 0x2fa   : > { %v6886_v48 = vpop.eup %6885  ;;  %6903 = vrcp.f32 %v4940_v61  ;;  %v4941_v49 = vadd.f32 1.0, %v6884_v22  ;;  %6084 = vst [vmem:[%s9070_s7] sm:$0xff] %v6083_v58   ;;  %v5901_v62 = vmul.f32 -1.442695, %v9081_v7  ;;  %v9090_v51 = vadd.f32 %v8944_v56, %v4494_v3  ;;  %v6589_v36 = vpop.f32.mrb[236].mxu0 }
 0x2fb   : > { %v6888_v6 = vpop.eup %6887  ;;  %6905 = vrcp.f32 %v4938_v18  ;;  %v4939_v14 = vadd.f32 1.0, %v6886_v48  ;;  %v9094_v13 = vadd.f32 %v8944_v56, %v4492_v35  ;;  %v4309_v42 = vadd.f32 %v6589_v36, %v8842_v38  ;;  %v4300_v12 = vpop.f32.mrb[237].mxu0 }
 0x2fc   : > { %v6890_v15 = vpop.eup %6889  ;;  %v5128_v57 = vmul.f32 %v6888_v6, %v8984_v19  ;;  %6907 = vrcp.f32 %v4941_v49  ;;  %v5904_v50 = vmul.f32 -1.442695, %v9090_v51  ;;  %v9099_v0 = vpop.f32.mrb[252].mxu1  ;;  %v4301_v25 = vadd.f32 %v4300_v12, %v8822_v27 }
 0x2fd   : > { %v6892_v10 = vpop.eup %6891  ;;  %v5126_v60 = vmul.f32 %v6890_v15, %v8988_v4  ;;  %6909 = vrcp.f32 %v4939_v14  ;;  %v6590_v63 = vpop.f32.mrb[238].mxu0  ;;  %v5902_v53 = vmul.f32 -1.442695, %v9094_v13  ;;  %v4497_v38 = vadd.f32 %v4309_v42, %v8725_v44  ;;  %v9944_v15 = vld [vmem:[#allocation78_spill] sm:$0xff] }
 0x2fe   : > { %v6894_v5 = vpop.eup %6893  ;;  %v5129_v19 = vmul.f32 %v6892_v10, %v8993_v32  ;;  %6911 = vpow2.f32 %v5903_v21  ;;  %v4101_v31 = vpop.f32.mrb[253].mxu1  ;;  %v4495_v22 = vadd.f32 %v4301_v25, %v8729_v17  ;;  %v4312_v27 = vadd.f32 %v6590_v63, %v8852_v45 }
 0x2ff   : > { %v4303_v61 = vpop.f32.mrb[239].mxu0  ;;  %v6896_v40 = vpop.eup %6895  ;;  %v5127_v4 = vmul.f32 %v6894_v5, %v8997_v28  ;;  %6913 = vpow2.f32 %v5901_v62  ;;  %v9111_v44 = vadd.f32 %v8944_v56, %v4497_v38  ;;  %v9947_v38 = vld [vmem:[#allocation88_spill] sm:$0xff] }
 0x300   : > { %v9108_v58 = vpop.f32.mrb[254].mxu1  ;;  %v6898_v18 = vpop.eup %6897  ;;  %v6098_v32 = vpack.c.bf16 %v5129_v19, %v5128_v57  ;;  %v4944_v3 = vadd.f32 1.0, %v6896_v40  ;;  %6915 = vpow2.f32 %v5904_v50  ;;  %v9114_v35 = vadd.f32 %v8944_v56, %v4495_v22 }
 0x301   : > { %v4104_v48 = vpop.f32.mrb[255].mxu1  ;;  %v6900_v49 = vpop.eup %6899  ;;  %v6093_v21 = vpack.c.bf16 %v5127_v4, %v5126_v60  ;;  %v4942_v28 = vadd.f32 1.0, %v6898_v18  ;;  %6917 = vpow2.f32 %v5902_v53  ;;  %v5907_v6 = vmul.f32 -1.442695, %v9111_v44  ;;  %v9945_v60 = vld [vmem:[#allocation104_spill] sm:$0xff] }
 0x302   : > { %v6902_v17 = vpop.eup %6901  ;;  %6242 = vst [vmem:[%s9070_s7 + $0x18] sm:$0xff] %v6098_v32   ;;  %6919 = vrcp.f32 %v4944_v3  ;;  %v4945_v45 = vadd.f32 1.0, %v6900_v49  ;;  %v4498_v14 = vadd.f32 %v4312_v27, %v8735_v24  ;;  %v5905_v36 = vmul.f32 -1.442695, %v9114_v35  ;;  %v6593_v42 = vpop.f32.mrb[240].mxu0  ;;  %v9946_v24 = vld [vmem:[#allocation29_spill] sm:$0xff] }
 0x303   : > { %6241 = vst [vmem:[%s9070_s7 + $0x10] sm:$0xff] %v6093_v21   ;;  %6921 = vrcp.f32 %v4942_v28  ;;  %v4943_v62 = vadd.f32 1.0, %v6902_v17  ;;  %v4304_v57 = vadd.f32 %v4303_v61, %v9944_v15  ;;  %v4325_v50 = vadd.f32 %v6593_v42, %v9945_v60  ;;  %v4316_v25 = vpop.f32.mrb[241].mxu0  ;;  %v9948_v27 = vld [vmem:[#allocation63_spill] sm:$0xff]  ;;  %v9949_v21 = vld [vmem:[#allocation57_spill] sm:$0xff] }
 0x304   : > { %v6904_v12 = vpop.eup %6903  ;;  %6923 = vrcp.f32 %v4945_v45  ;;  %v9123_v10 = vadd.f32 %v8944_v56, %v4498_v14  ;;  %v9128_v53 = vpop.f32.mrb[0].mxu1  ;;  %v4317_v31 = vadd.f32 %v4316_v25, %v9947_v38  ;;  %v9950_v25 = vld [vmem:[#allocation65_spill] sm:$0xff] }
 0x305   : > { %v6906_v63 = vpop.eup %6905  ;;  %v5132_v5 = vmul.f32 %v6904_v12, %v9012_v34  ;;  %6925 = vrcp.f32 %v4943_v62  ;;  %v4496_v19 = vadd.f32 %v4304_v57, %v9946_v24  ;;  %v6594_v61 = vpop.f32.mrb[242].mxu0  ;;  %v4501_v18 = vadd.f32 %v4325_v50, %v9948_v27 }
 0x306   : > { %v6908_v40 = vpop.eup %6907  ;;  %v5130_v4 = vmul.f32 %v6906_v63, %v9016_v55  ;;  %6927 = vpow2.f32 %v5907_v6  ;;  %v5908_v22 = vmul.f32 -1.442695, %v9123_v10  ;;  %v4109_v32 = vpop.f32.mrb[1].mxu1  ;;  %v4499_v28 = vadd.f32 %v4317_v31, %v9949_v21 }
 0x307   : > { %v4319_v3 = vpop.f32.mrb[243].mxu0  ;;  %v6910_v48 = vpop.eup %6909  ;;  %v5133_v34 = vmul.f32 %v6908_v40, %v9021_v59  ;;  %6929 = vpow2.f32 %v5905_v36  ;;  %v9136_v49 = vadd.f32 %v8944_v56, %v4496_v19  ;;  %v9143_v6 = vadd.f32 %v8944_v56, %v4501_v18  ;;  %v9951_v19 = vld [vmem:[#allocation102_spill] sm:$0xff] }
 0x308   : > { %v9139_v17 = vpop.f32.mrb[2].mxu1  ;;  %v6912_v45 = vpop.eup %6911  ;;  %v5131_v55 = vmul.f32 %v6910_v48, %v9025_v52  ;;  %6931 = vpow2.f32 %v5908_v22  ;;  %v4328_v14 = vadd.f32 %v6594_v61, %v8892_v39  ;;  %v9148_v42 = vadd.f32 %v8944_v56, %v4499_v28  ;;  %v9952_v48 = vld [vmem:[#allocation59_spill] sm:$0xff] }
 0x309   : > { %v4112_v62 = vpop.f32.mrb[3].mxu1  ;;  %v6914_v59 = vpop.eup %6913  ;;  %v6108_v36 = vpack.c.bf16 %v5133_v34, %v5132_v5  ;;  %v4948_v15 = vadd.f32 1.0, %v6912_v45  ;;  %v5906_v57 = vmul.f32 -1.442695, %v9136_v49  ;;  %v5911_v50 = vmul.f32 -1.442695, %v9143_v6 }
 0x30a   : > { %v6916_v12 = vpop.eup %6915  ;;  %v6103_v60 = vpack.c.bf16 %v5131_v55, %v5130_v4  ;;  %v4946_v52 = vadd.f32 1.0, %v6914_v59  ;;  %v4502_v63 = vadd.f32 %v4328_v14, %v9950_v25  ;;  %v5909_v5 = vmul.f32 -1.442695, %v9148_v42  ;;  %v6597_v31 = vpop.f32.mrb[244].mxu0  ;;  %v9954_v59 = vld [vmem:[#allocation33_spill] sm:$0xff] }
 0x30b   : > { %v6918_v24 = vpop.eup %6917  ;;  %6244 = vst [vmem:[%s9070_s7 + $0x28] sm:$0xff] %v6108_v36   ;;  %6933 = vrcp.f32 %v4948_v15  ;;  %v4949_v39 = vadd.f32 1.0, %v6916_v12  ;;  %v4320_v38 = vadd.f32 %v4319_v3, %v9951_v19  ;;  %v4341_v22 = vadd.f32 %v6597_v31, %v8922_v9  ;;  %v4332_v27 = vpop.f32.mrb[245].mxu0  ;;  %v9953_v3 = vld [vmem:[#allocation92_spill] sm:$0xff] }
 0x30c   : > { %v6920_v61 = vpop.eup %6919  ;;  %6243 = vst [vmem:[%s9070_s7 + $0x20] sm:$0xff] %v6103_v60   ;;  %6935 = vrcp.f32 %v4946_v52  ;;  %v4947_v40 = vadd.f32 1.0, %v6918_v24  ;;  %v9157_v4 = vadd.f32 %v8944_v56, %v4502_v63  ;;  %v9162_v21 = vpop.f32.mrb[4].mxu1  ;;  %v4333_v28 = vadd.f32 %v4332_v27, %v9953_v3  ;;  %v9955_v52 = vld [vmem:[#allocation73_spill] sm:$0xff] }
 0x30d   : > { %v6922_v18 = vpop.eup %6921  ;;  %v5136_v32 = vmul.f32 %v6920_v61, %v9040_v46  ;;  %6937 = vrcp.f32 %v4949_v39  ;;  %v4500_v34 = vadd.f32 %v4320_v38, %v9952_v48  ;;  %v6598_v45 = vpop.f32.mrb[246].mxu0  ;;  %v4505_v9 = vadd.f32 %v4341_v22, %v9954_v59 }
 0x30e   : > { %v6924_v55 = vpop.eup %6923  ;;  %v5134_v14 = vmul.f32 %v6922_v18, %v9044_v47  ;;  %6939 = vrcp.f32 %v4947_v40  ;;  %v5912_v62 = vmul.f32 -1.442695, %v9157_v4  ;;  %v4117_v36 = vpop.f32.mrb[5].mxu1  ;;  %v4503_v25 = vadd.f32 %v4333_v28, %v9955_v52 }
 0x30f   : > { %v4335_v15 = vpop.f32.mrb[247].mxu0  ;;  %v6926_v12 = vpop.eup %6925  ;;  %v5137_v46 = vmul.f32 %v6924_v55, %v9049_v33  ;;  %6941 = vpow2.f32 %v5906_v57  ;;  %v9170_v60 = vadd.f32 %v8944_v56, %v4500_v34  ;;  %v9177_v39 = vadd.f32 %v8944_v56, %v4505_v9 }
 0x310   : > { %v9173_v63 = vpop.f32.mrb[6].mxu1  ;;  %v6928_v24 = vpop.eup %6927  ;;  %v5135_v47 = vmul.f32 %v6926_v12, %v9053_v30  ;;  %6943 = vpow2.f32 %v5911_v50  ;;  %v4344_v19 = vadd.f32 %v6598_v45, %v8932_v20  ;;  %v9184_v18 = vadd.f32 %v8944_v56, %v4503_v25  ;;  %v9956_v20 = vld [vmem:[#allocation69_spill] sm:$0xff] }
 0x311   : > { %v4120_v38 = vpop.f32.mrb[7].mxu1  ;;  %v6930_v33 = vpop.eup %6929  ;;  %v6118_v57 = vpack.c.bf16 %v5137_v46, %v5136_v32  ;;  %v4952_v31 = vadd.f32 1.0, %v6928_v24  ;;  %6945 = vpow2.f32 %v5909_v5  ;;  %v5910_v61 = vmul.f32 -1.442695, %v9170_v60  ;;  %v9957_v5 = vld [vmem:[#allocation112_spill] sm:$0xff] }
 0x312   : > { %v6932_v40 = vpop.eup %6931  ;;  %v6113_v22 = vpack.c.bf16 %v5135_v47, %v5134_v14  ;;  %v4950_v27 = vadd.f32 1.0, %v6930_v33  ;;  %6947 = vpow2.f32 %v5912_v62  ;;  %v5915_v30 = vmul.f32 -1.442695, %v9177_v39  ;;  %v6601_v34 = vpop.f32.mrb[248].mxu0  ;;  %v9960_v33 = vld [vmem:[#allocation40_spill] sm:$0xff] }
 0x313   : > { %6246 = vst [vmem:[%s9070_s7 + $0x38] sm:$0xff] %v6118_v57   ;;  %6949 = vrcp.f32 %v4952_v31  ;;  %v4953_v50 = vadd.f32 1.0, %v6932_v40  ;;  %v4506_v48 = vadd.f32 %v4344_v19, %v9956_v20  ;;  %v4336_v32 = vadd.f32 %v4335_v15, %v9957_v5  ;;  %v4348_v28 = vpop.f32.mrb[249].mxu0  ;;  %v9958_v15 = vld [vmem:[#allocation75_spill] sm:$0xff] }
 0x314   : > { %6245 = vst [vmem:[%s9070_s7 + $0x30] sm:$0xff] %v6113_v22   ;;  %6951 = vrcp.f32 %v4950_v27  ;;  %v4357_v3 = vadd.f32 %v6601_v34, %v8974_v23  ;;  %v5913_v55 = vmul.f32 -1.442695, %v9184_v18  ;;  %v9194_v62 = vpop.f32.mrb[8].mxu1  ;;  %v4349_v59 = vadd.f32 %v4348_v28, %v8946_v29  ;;  %v6602_v9 = vpop.f32.mrb[250].mxu0  ;;  %v9959_v23 = vld [vmem:[#allocation71_spill] sm:$0xff] }
 0x315   : > { %v6934_v45 = vpop.eup %6933  ;;  %6953 = vrcp.f32 %v4953_v50  ;;  %v9192_v14 = vadd.f32 %v8944_v56, %v4506_v48  ;;  %v4504_v46 = vadd.f32 %v4336_v32, %v9958_v15  ;;  %v4125_v25 = vpop.f32.mrb[9].mxu1  ;;  %v4360_v50 = vadd.f32 %v6602_v9, %v8980_v1 }
 0x316   : > { %v6936_v36 = vpop.eup %6935  ;;  %v5140_v12 = vmul.f32 %v6934_v45, %v9078_v8  ;;  %6955 = vpow2.f32 %v5910_v61  ;;  %v4509_v52 = vadd.f32 %v4357_v3, %v9959_v23  ;;  %v4351_v24 = vpop.f32.mrb[251].mxu0  ;;  %v4507_v57 = vadd.f32 %v4349_v59, %v9960_v33  ;;  %v9961_v45 = vld [vmem:[#allocation77_spill] sm:$0xff] }
 0x317   : > { %v6938_v47 = vpop.eup %6937  ;;  %v5138_v19 = vmul.f32 %v6936_v36, %v9081_v7  ;;  %6957 = vpow2.f32 %v5915_v30  ;;  %v5916_v38 = vmul.f32 -1.442695, %v9192_v14  ;;  %v9203_v29 = vpop.f32.mrb[10].mxu1  ;;  %v9207_v61 = vadd.f32 %v8944_v56, %v4504_v46 }
 0x318   : > { %v6940_v31 = vpop.eup %6939  ;;  %v5141_v8 = vmul.f32 %v6938_v47, %v9090_v51  ;;  %6959 = vpow2.f32 %v5913_v55  ;;  %v9210_v40 = vadd.f32 %v8944_v56, %v4509_v52  ;;  %v4128_v22 = vpop.f32.mrb[11].mxu1  ;;  %v9214_v30 = vadd.f32 %v8944_v56, %v4507_v57 }
 0x319   : > { %v6942_v27 = vpop.eup %6941  ;;  %v5139_v7 = vmul.f32 %v6940_v31, %v9094_v13  ;;  %6961 = vpow2.f32 %v5916_v38  ;;  %v5914_v34 = vmul.f32 -1.442695, %v9207_v61  ;;  %v4510_v55 = vadd.f32 %v4360_v50, %v9961_v45 }
 0x31a   : > { %v6944_v20 = vpop.eup %6943  ;;  %v6128_v51 = vpack.c.bf16 %v5141_v8, %v5140_v12  ;;  %v4951_v48 = vadd.f32 1.0, %v6942_v27  ;;  %v5919_v28 = vmul.f32 -1.442695, %v9210_v40  ;;  %v6605_v13 = vpop.f32.mrb[252].mxu0  ;;  %v4352_v1 = vadd.f32 %v4351_v24, %v8952_v16  ;;  %v9962_v16 = vld [vmem:[#allocation79_spill] sm:$0xff] }
 0x31b   : > { %v6946_v5 = vpop.eup %6945  ;;  %v6123_v32 = vpack.c.bf16 %v5139_v7, %v5138_v19  ;;  %v4956_v3 = vadd.f32 1.0, %v6944_v20  ;;  %v4373_v9 = vadd.f32 %v6605_v13, %v9030_v54  ;;  %v4364_v12 = vpop.f32.mrb[253].mxu0  ;;  %v5917_v23 = vmul.f32 -1.442695, %v9214_v30  ;;  %v9963_v54 = vld [vmem:[#allocation47_spill] sm:$0xff] }
 0x31c   : > { %v6948_v59 = vpop.eup %6947  ;;  %6248 = vst [vmem:[%s9070_s7 + $0x48] sm:$0xff] %v6128_v51   ;;  %6963 = vrcp.f32 %v4951_v48  ;;  %v4954_v36 = vadd.f32 1.0, %v6946_v5  ;;  %v9225_v52 = vpop.f32.mrb[12].mxu1  ;;  %v4365_v25 = vadd.f32 %v4364_v12, %v9002_v11  ;;  %v9229_v38 = vadd.f32 %v8944_v56, %v4510_v55  ;;  %v9964_v11 = vld [vmem:[#allocation54_spill] sm:$0xff] }
 0x31d   : > { %v6950_v15 = vpop.eup %6949  ;;  %6247 = vst [vmem:[%s9070_s7 + $0x40] sm:$0xff] %v6123_v32   ;;  %6965 = vrcp.f32 %v4956_v3  ;;  %v4957_v46 = vadd.f32 1.0, %v6948_v59  ;;  %v6606_v47 = vpop.f32.mrb[254].mxu0  ;;  %v4508_v24 = vadd.f32 %v4352_v1, %v9962_v16  ;;  %v4513_v33 = vadd.f32 %v4373_v9, %v9963_v54 }
 0x31e   : > { %v6952_v19 = vpop.eup %6951  ;;  %6967 = vrcp.f32 %v4954_v36  ;;  %v4133_v57 = vpop.f32.mrb[13].mxu1  ;;  %v5144_v22 = vmul.f32 %v6950_v15, %v9111_v44  ;;  %v4511_v7 = vadd.f32 %v4365_v25, %v9964_v11  ;;  %v4376_v45 = vadd.f32 %v6606_v47, %v9036_v2  ;;  %v9965_v15 = vld [vmem:[#allocation74_spill] sm:$0xff] }
 0x31f   : > { %v4367_v31 = vpop.f32.mrb[255].mxu0  ;;  %v6954_v8 = vpop.eup %6953  ;;  %v9235_v27 = vmul.f32 %v6952_v19, %v9114_v35  ;;  %6969 = vrcp.f32 %v4957_v46  ;;  %v9242_v48 = vadd.f32 %v8944_v56, %v4508_v24  ;;  %v9245_v5 = vadd.f32 %v8944_v56, %v4513_v33  ;;  %v9966_v57 = vld [vmem:[#allocation70_spill] sm:$0xff] }
 0x320   : > { %v9238_v50 = vpop.f32.mrb[14].mxu1  ;;  %v6956_v20 = vpop.eup %6955  ;;  %v5145_v51 = vmul.f32 %v6954_v8, %v9123_v10  ;;  %6971 = vpow2.f32 %v5914_v34  ;;  %v9248_v3 = vadd.f32 %v8944_v56, %v4511_v7  ;;  %v5920_v34 = vmul.f32 -1.442695, %v9229_v38 }
 0x321   : > { %v4136_v32 = vpop.f32.mrb[15].mxu1  ;;  %v6958_v44 = vpop.eup %6957  ;;  %v4955_v35 = vadd.f32 1.0, %v6956_v20  ;;  %6973 = vpow2.f32 %v5919_v28  ;;  %v5918_v1 = vmul.f32 -1.442695, %v9242_v48  ;;  %v5923_v9 = vmul.f32 -1.442695, %v9245_v5 }
 0x322   : > { %v6960_v55 = vpop.eup %6959  ;;  %v6138_v13 = vpack.c.bf16 %v5145_v51, %v5144_v22  ;;  %v4960_v10 = vadd.f32 1.0, %v6958_v44  ;;  %6975 = vpow2.f32 %v5917_v23  ;;  %v6609_v12 = vpop.f32.mrb[0].mxu0  ;;  %v4514_v46 = vadd.f32 %v4376_v45, %v9965_v15  ;;  %v9968_v51 = vld [vmem:[#allocation72_spill] sm:$0xff] }
 0x323   : > { %v6962_v59 = vpop.eup %6961  ;;  %6977 = vrcp.f32 %v4955_v35  ;;  %v4958_v36 = vadd.f32 1.0, %v6960_v55  ;;  %v4368_v2 = vadd.f32 %v4367_v31, %v9008_v43  ;;  %v4380_v25 = vpop.f32.mrb[1].mxu0  ;;  %v5921_v23 = vmul.f32 -1.442695, %v9248_v3 }
 0x324   : > { %6250 = vst [vmem:[%s9070_s7 + $0x58] sm:$0xff] %v6138_v13   ;;  %6979 = vrcp.f32 %v4960_v10  ;;  %v4961_v28 = vadd.f32 1.0, %v6962_v59  ;;  %v4389_v47 = vadd.f32 %v6609_v12, %v9099_v0  ;;  %v9259_v19 = vpop.f32.mrb[16].mxu1  ;;  %v4381_v16 = vadd.f32 %v4380_v25, %v9061_v26  ;;  %v6610_v24 = vpop.f32.mrb[2].mxu0  ;;  %v9967_v0 = vld [vmem:[#allocation76_spill] sm:$0xff] }
 0x325   : > { %6981 = vrcp.f32 %v4958_v36  ;;  %v9263_v33 = vadd.f32 %v8944_v56, %v4514_v46  ;;  %v4512_v8 = vadd.f32 %v4368_v2, %v9966_v57  ;;  %v4141_v22 = vpop.f32.mrb[17].mxu1  ;;  %v4392_v43 = vadd.f32 %v6610_v24, %v9108_v58  ;;  %v4383_v31 = vpop.f32.mrb[3].mxu0 }
 0x326   : > { %v6964_v54 = vpop.eup %6963  ;;  %6983 = vrcp.f32 %v4961_v28  ;;  %v4517_v20 = vadd.f32 %v4389_v47, %v9967_v0  ;;  %v4515_v26 = vadd.f32 %v4381_v16, %v9968_v51  ;;  %v9270_v32 = vpop.f32.mrb[18].mxu1 }
 0x327   : > { %v6966_v11 = vpop.eup %6965  ;;  %v5143_v7 = vmul.f32 %v6964_v54, %v9136_v49  ;;  %6985 = vpow2.f32 %v5920_v34  ;;  %v5924_v45 = vmul.f32 -1.442695, %v9263_v33  ;;  %v9275_v58 = vadd.f32 %v8944_v56, %v4512_v8  ;;  %v4144_v55 = vpop.f32.mrb[19].mxu1 }
 0x328   : > { %v6968_v44 = vpop.eup %6967  ;;  %v5148_v35 = vmul.f32 %v6966_v11, %v9143_v6  ;;  %6987 = vpow2.f32 %v5918_v1  ;;  %v9280_v34 = vadd.f32 %v8944_v56, %v4517_v20  ;;  %v9285_v1 = vadd.f32 %v8944_v56, %v4515_v26 }
 0x329   : > { %v6970_v13 = vpop.eup %6969  ;;  %v6133_v49 = vpack.c.bf16 %v5143_v7, %v9235_v27  ;;  %v5146_v10 = vmul.f32 %v6968_v44, %v9148_v42  ;;  %6989 = vpow2.f32 %v5923_v9  ;;  %v5922_v36 = vmul.f32 -1.442695, %v9275_v58  ;;  %v9969_v42 = vld [vmem:[#allocation83_spill] sm:$0xff] }
 0x32a   : > { %v6972_v59 = vpop.eup %6971  ;;  %v5149_v6 = vmul.f32 %v6970_v13, %v9157_v4  ;;  %6991 = vpow2.f32 %v5921_v23  ;;  %v5927_v27 = vmul.f32 -1.442695, %v9280_v34  ;;  %v4518_v9 = vadd.f32 %v4392_v43, %v9969_v42  ;;  %v6613_v15 = vpop.f32.mrb[4].mxu0 }
 0x32b   : > { %v6974_v12 = vpop.eup %6973  ;;  %6249 = vst [vmem:[%s9070_s7 + $0x50] sm:$0xff] %v6133_v49   ;;  %v4959_v28 = vadd.f32 1.0, %v6972_v59  ;;  %6993 = vpow2.f32 %v5924_v45  ;;  %v5925_v4 = vmul.f32 -1.442695, %v9285_v1  ;;  %v4396_v23 = vpop.f32.mrb[5].mxu0  ;;  %v4384_v54 = vadd.f32 %v4383_v31, %v9074_v41  ;;  %v9970_v31 = vld [vmem:[#allocation80_spill] sm:$0xff] }
 0x32c   : > { %v6976_v46 = vpop.eup %6975  ;;  %v6148_v2 = vpack.c.bf16 %v5149_v6, %v5148_v35  ;;  %v4964_v25 = vadd.f32 1.0, %v6974_v12  ;;  %6995 = vpow2.f32 %v5922_v36  ;;  %v9292_v24 = vadd.f32 %v8944_v56, %v4518_v9  ;;  %v9295_v57 = vpop.f32.mrb[20].mxu1  ;;  %v9972_v6 = vld [vmem:[#allocation87_spill] sm:$0xff] }
 0x32d   : > { %v6978_v47 = vpop.eup %6977  ;;  %6997 = vrcp.f32 %v4959_v28  ;;  %v4962_v16 = vadd.f32 1.0, %v6976_v46  ;;  %v6614_v8 = vpop.f32.mrb[6].mxu0  ;;  %v4405_v11 = vadd.f32 %v6613_v15, %v9162_v21  ;;  %v4397_v7 = vadd.f32 %v4396_v23, %v9128_v53  ;;  %v9971_v53 = vld [vmem:[#allocation82_spill] sm:$0xff]  ;;  %v9973_v23 = vld [vmem:[#allocation81_spill] sm:$0xff] }
 0x32e   : > { %v6980_v22 = vpop.eup %6979  ;;  %6252 = vst [vmem:[%s9070_s7 + $0x68] sm:$0xff] %v6148_v2   ;;  %v5147_v43 = vmul.f32 %v6978_v47, %v9170_v60  ;;  %6999 = vrcp.f32 %v4964_v25  ;;  %v4149_v0 = vpop.f32.mrb[21].mxu1  ;;  %v5928_v41 = vmul.f32 -1.442695, %v9292_v24  ;;  %v4516_v44 = vadd.f32 %v4384_v54, %v9970_v31 }
 0x32f   : > { %v4399_v20 = vpop.f32.mrb[7].mxu0  ;;  %v6982_v51 = vpop.eup %6981  ;;  %v5152_v26 = vmul.f32 %v6980_v22, %v9177_v39  ;;  %7001 = vrcp.f32 %v4962_v16  ;;  %v4521_v21 = vadd.f32 %v4405_v11, %v9971_v53  ;;  %v4519_v36 = vadd.f32 %v4397_v7, %v9972_v6 }
 0x330   : > { %v9304_v35 = vpop.f32.mrb[22].mxu1  ;;  %v6984_v45 = vpop.eup %6983  ;;  %v6143_v60 = vpack.c.bf16 %v5147_v43, %v5146_v10  ;;  %v9307_v55 = vmul.f32 %v6982_v51, %v9184_v18  ;;  %7003 = vpow2.f32 %v5927_v27  ;;  %v9312_v59 = vadd.f32 %v8944_v56, %v4516_v44  ;;  %v9319_v18 = vld [vmem:[%s9514_s2] ss:$0 sm:$0xff] }
 0x331   : > { %v4152_v13 = vpop.f32.mrb[23].mxu1  ;;  %v6986_v49 = vpop.eup %6985  ;;  %v5153_v39 = vmul.f32 %v6984_v45, %v9192_v14  ;;  %7005 = vpow2.f32 %v5925_v4  ;;  %v9322_v10 = vadd.f32 %v9319_v18, %v4521_v21  ;;  %v4408_v14 = vadd.f32 %v6614_v8, %v9173_v63 }
 0x332   : > { %v6988_v12 = vpop.eup %6987  ;;  %6251 = vst [vmem:[%s9070_s7 + $0x60] sm:$0xff] %v6143_v60   ;;  %v4965_v28 = vadd.f32 1.0, %v6986_v49  ;;  %7007 = vpow2.f32 %v5928_v41  ;;  %v5926_v9 = vmul.f32 -1.442695, %v9312_v59  ;;  %v9327_v15 = vadd.f32 %v9319_v18, %v4519_v36  ;;  %v6617_v46 = vpop.f32.mrb[8].mxu0  ;;  %v9974_v60 = vld [vmem:[#allocation84_spill] sm:$0xff] }
 0x333   : > { %v6990_v27 = vpop.eup %6989  ;;  %v6158_v56 = vpack.c.bf16 %v5153_v39, %v5152_v26  ;;  %v4963_v42 = vadd.f32 1.0, %v6988_v12  ;;  %v5931_v4 = vmul.f32 -1.442695, %v9322_v10  ;;  %v4522_v47 = vadd.f32 %v4408_v14, %v9973_v23  ;;  %v4412_v16 = vpop.f32.mrb[9].mxu0  ;;  %v9975_v39 = vld [vmem:[#allocation86_spill] sm:$0xff] }
 0x334   : > { %v6992_v2 = vpop.eup %6991  ;;  %7009 = vrcp.f32 %v4965_v28  ;;  %v4968_v25 = vadd.f32 1.0, %v6990_v27  ;;  %v5929_v8 = vmul.f32 -1.442695, %v9327_v15  ;;  %v4400_v22 = vadd.f32 %v4399_v20, %v9139_v17  ;;  %v9334_v43 = vpop.f32.mrb[24].mxu1 }
 0x335   : > { %v6994_v54 = vpop.eup %6993  ;;  %6254 = vst [vmem:[%s9070_s7 + $0x78] sm:$0xff] %v6158_v56   ;;  %7011 = vrcp.f32 %v4963_v42  ;;  %v4966_v63 = vadd.f32 1.0, %v6992_v2  ;;  %v6618_v11 = vpop.f32.mrb[10].mxu0  ;;  %v9337_v51 = vadd.f32 %v9319_v18, %v4522_v47  ;;  %v4421_v26 = vadd.f32 %v6617_v46, %v9225_v52 }
 0x336   : > { %v6996_v7 = vpop.eup %6995  ;;  %7013 = vrcp.f32 %v4968_v25  ;;  %v4969_v0 = vadd.f32 1.0, %v6994_v54  ;;  %v4157_v41 = vpop.f32.mrb[25].mxu1  ;;  %v4520_v53 = vadd.f32 %v4400_v22, %v9974_v60  ;;  %v4413_v17 = vadd.f32 %v4412_v16, %v9194_v62  ;;  %v9976_v62 = vld [vmem:[#allocation85_spill] sm:$0xff] }
 0x337   : > { %v4415_v31 = vpop.f32.mrb[11].mxu0  ;;  %v6998_v44 = vpop.eup %6997  ;;  %7015 = vrcp.f32 %v4966_v63  ;;  %v4967_v45 = vadd.f32 1.0, %v6996_v7  ;;  %v5932_v49 = vmul.f32 -1.442695, %v9337_v51  ;;  %v4525_v6 = vadd.f32 %v4421_v26, %v9975_v39  ;;  %v9977_v26 = vld [vmem:[#allocation99_spill] sm:$0xff] }
 0x338   : > { %v9342_v20 = vpop.f32.mrb[26].mxu1  ;;  %v7000_v21 = vpop.eup %6999  ;;  %v5151_v13 = vmul.f32 %v6998_v44, %v9207_v61  ;;  %7017 = vrcp.f32 %v4969_v0  ;;  %v9349_v28 = vadd.f32 %v9319_v18, %v4520_v53  ;;  %v4523_v14 = vadd.f32 %v4413_v17, %v9976_v62  ;;  %v9978_v53 = vld [vmem:[#allocation108_spill] sm:$0xff] }
 0x339   : > { %v4160_v52 = vpop.f32.mrb[27].mxu1  ;;  %v7002_v36 = vpop.eup %7001  ;;  %v5156_v12 = vmul.f32 %v7000_v21, %v9210_v40  ;;  %7019 = vrcp.f32 %v4967_v45  ;;  %v9355_v42 = vadd.f32 %v9319_v18, %v4525_v6 }
 0x33a   : > { %v7004_v27 = vpop.eup %7003  ;;  %v6153_v56 = vpack.c.bf16 %v5151_v13, %v9307_v55  ;;  %v5154_v61 = vmul.f32 %v7002_v36, %v9214_v30  ;;  %7021 = vpow2.f32 %v5926_v9  ;;  %v5930_v40 = vmul.f32 -1.442695, %v9349_v28  ;;  %v6621_v23 = vpop.f32.mrb[12].mxu0 }
 0x33b   : > { %v7006_v46 = vpop.eup %7005  ;;  %v4972_v2 = vadd.f32 1.0, %v7004_v27  ;;  %7023 = vpow2.f32 %v5931_v4  ;;  %v9359_v25 = vadd.f32 %v9319_v18, %v4523_v14  ;;  %v5935_v55 = vmul.f32 -1.442695, %v9355_v42  ;;  %v4428_v9 = vpop.f32.mrb[13].mxu0 }
 0x33c   : > { %v7008_v47 = vpop.eup %7007  ;;  %6253 = vst [vmem:[%s9070_s7 + $0x70] sm:$0xff] %v6153_v56   ;;  %v4970_v16 = vadd.f32 1.0, %v7006_v46  ;;  %7025 = vpow2.f32 %v5929_v8  ;;  %v4424_v30 = vadd.f32 %v6618_v11, %v9238_v50  ;;  %v4416_v4 = vadd.f32 %v4415_v31, %v9203_v29  ;;  %v9366_v22 = vpop.f32.mrb[28].mxu1 }
 0x33d   : > { %7027 = vrcp.f32 %v4972_v2  ;;  %v4973_v54 = vadd.f32 1.0, %v7008_v47  ;;  %v5933_v63 = vmul.f32 -1.442695, %v9359_v25  ;;  %v6622_v7 = vpop.f32.mrb[14].mxu0  ;;  %v4437_v8 = vadd.f32 %v6621_v23, %v9295_v57  ;;  %v4165_v45 = vpop.f32.mrb[29].mxu1  ;;  %v9981_v23 = vld [vmem:[#allocation89_spill] sm:$0xff] }
 0x33e   : > { %v7010_v0 = vpop.eup %7009  ;;  %7029 = vrcp.f32 %v4970_v16  ;;  %v4526_v41 = vadd.f32 %v4424_v30, %v9977_v26  ;;  %v4429_v44 = vadd.f32 %v4428_v9, %v9259_v19  ;;  %v4431_v50 = vpop.f32.mrb[15].mxu0  ;;  %v4524_v17 = vadd.f32 %v4416_v4, %v9978_v53  ;;  %v9979_v19 = vld [vmem:[#allocation91_spill] sm:$0xff] }
 0x33f   : > { %v7012_v11 = vpop.eup %7011  ;;  %v5157_v60 = vmul.f32 %v7010_v0, %v9229_v38  ;;  %7031 = vrcp.f32 %v4973_v54  ;;  %v4440_v29 = vadd.f32 %v6622_v7, %v9304_v35  ;;  %v9374_v31 = vpop.f32.mrb[30].mxu1  ;;  %v4529_v39 = vadd.f32 %v4437_v8, %v9979_v19 }
 0x340   : > { %v7014_v21 = vpop.eup %7013  ;;  %v5155_v13 = vmul.f32 %v7012_v11, %v9242_v48  ;;  %7033 = vpow2.f32 %v5932_v49  ;;  %v9378_v57 = vadd.f32 %v9319_v18, %v4526_v41  ;;  %v4168_v6 = vpop.f32.mrb[31].mxu1  ;;  %v9383_v35 = vadd.f32 %v9319_v18, %v4524_v17 }
 0x341   : > { %v7016_v52 = vpop.eup %7015  ;;  %v6168_v38 = vpack.c.bf16 %v5157_v60, %v5156_v12  ;;  %v5160_v36 = vmul.f32 %v7014_v21, %v9245_v5  ;;  %7035 = vpow2.f32 %v5930_v40  ;;  %v9391_v5 = vadd.f32 %v9319_v18, %v4529_v39 }
 0x342   : > { %v7018_v62 = vpop.eup %7017  ;;  %v6163_v14 = vpack.c.bf16 %v5155_v13, %v5154_v61  ;;  %v5158_v48 = vmul.f32 %v7016_v52, %v9248_v3  ;;  %7037 = vpow2.f32 %v5935_v55  ;;  %v5936_v49 = vmul.f32 -1.442695, %v9378_v57  ;;  %v6625_v46 = vpop.f32.mrb[16].mxu0  ;;  %v9980_v3 = vld [vmem:[#allocation110_spill] sm:$0xff] }
 0x343   : > { %v7020_v27 = vpop.eup %7019  ;;  %6256 = vst [vmem:[%s9070_s7 + $0x88] sm:$0xff] %v6168_v38   ;;  %v5161_v56 = vmul.f32 %v7018_v62, %v9263_v33  ;;  %7039 = vpow2.f32 %v5933_v63  ;;  %v5934_v12 = vmul.f32 -1.442695, %v9383_v35  ;;  %v4527_v40 = vadd.f32 %v4429_v44, %v9980_v3  ;;  %v4444_v16 = vpop.f32.mrb[17].mxu0 }
 0x344   : > { %v7022_v2 = vpop.eup %7021  ;;  %6255 = vst [vmem:[%s9070_s7 + $0x80] sm:$0xff] %v6163_v14   ;;  %v5159_v61 = vmul.f32 %v7020_v27, %v9275_v58  ;;  %7041 = vpow2.f32 %v5936_v49  ;;  %v4530_v47 = vadd.f32 %v4440_v29, %v9981_v23  ;;  %v5939_v9 = vmul.f32 -1.442695, %v9391_v5  ;;  %v9398_v54 = vpop.f32.mrb[32].mxu1 }
 0x345   : > { %v7024_v55 = vpop.eup %7023  ;;  %v6178_v33 = vpack.c.bf16 %v5161_v56, %v5160_v36  ;;  %v4971_v30 = vadd.f32 1.0, %v7022_v2  ;;  %7043 = vpow2.f32 %v5934_v12  ;;  %v6626_v63 = vpop.f32.mrb[18].mxu0  ;;  %v9401_v0 = vadd.f32 %v9319_v18, %v4527_v40 }
 0x346   : > { %v7026_v4 = vpop.eup %7025  ;;  %v6173_v7 = vpack.c.bf16 %v5159_v61, %v5158_v48  ;;  %v4976_v58 = vadd.f32 1.0, %v7024_v55  ;;  %v9404_v26 = vadd.f32 %v9319_v18, %v4530_v47  ;;  %v4173_v41 = vpop.f32.mrb[33].mxu1  ;;  %v4432_v11 = vadd.f32 %v4431_v50, %v9270_v32  ;;  %v9982_v32 = vld [vmem:[#allocation106_spill] sm:$0xff] }
 0x347   : > { %v4447_v8 = vpop.f32.mrb[19].mxu0  ;;  %v7028_v44 = vpop.eup %7027  ;;  %6258 = vst [vmem:[%s9070_s7 + $0x98] sm:$0xff] %v6178_v33   ;;  %7045 = vrcp.f32 %v4971_v30  ;;  %v4974_v45 = vadd.f32 1.0, %v7026_v4  ;;  %v4453_v60 = vadd.f32 %v6625_v46, %v9366_v22  ;;  %v5937_v21 = vmul.f32 -1.442695, %v9401_v0  ;;  %v9983_v22 = vld [vmem:[#allocation90_spill] sm:$0xff] }
 0x348   : > { %v9409_v53 = vpop.f32.mrb[34].mxu1  ;;  %v7030_v17 = vpop.eup %7029  ;;  %6257 = vst [vmem:[%s9070_s7 + $0x90] sm:$0xff] %v6173_v7   ;;  %v5164_v29 = vmul.f32 %v7028_v44, %v9280_v34  ;;  %7047 = vrcp.f32 %v4976_v58  ;;  %v5940_v13 = vmul.f32 -1.442695, %v9404_v26  ;;  %v4528_v50 = vadd.f32 %v4432_v11, %v9982_v32  ;;  %v9985_v33 = vld [vmem:[#allocation95_spill] sm:$0xff] }
 0x349   : > { %v4176_v19 = vpop.f32.mrb[35].mxu1  ;;  %v7032_v39 = vpop.eup %7031  ;;  %v9416_v6 = vmul.f32 %v7030_v17, %v9285_v1  ;;  %7049 = vrcp.f32 %v4974_v45  ;;  %v4533_v52 = vadd.f32 %v4453_v60, %v9983_v22  ;;  %v4445_v34 = vadd.f32 %v4444_v16, %v9334_v43 }
 0x34a   : > { %v7034_v38 = vpop.eup %7033  ;;  %v5165_v36 = vmul.f32 %v7032_v39, %v9292_v24  ;;  %7051 = vpow2.f32 %v5939_v9  ;;  %v4456_v62 = vadd.f32 %v6626_v63, %v9374_v31  ;;  %v9424_v49 = vadd.f32 %v9319_v18, %v4528_v50  ;;  %v6629_v27 = vpop.f32.mrb[20].mxu0  ;;  %v9984_v24 = vld [vmem:[#allocation5_spill] sm:$0xff] }
 0x34b   : > { %v7036_v14 = vpop.eup %7035  ;;  %v4977_v48 = vadd.f32 1.0, %v7034_v38  ;;  %7053 = vpow2.f32 %v5937_v21  ;;  %v9427_v1 = vadd.f32 %v9319_v18, %v4533_v52  ;;  %v4531_v2 = vadd.f32 %v4445_v34, %v9984_v24  ;;  %v4460_v43 = vpop.f32.mrb[21].mxu0 }
 0x34c   : > { %v7038_v56 = vpop.eup %7037  ;;  %v6188_v12 = vpack.c.bf16 %v5165_v36, %v5164_v29  ;;  %v4975_v46 = vadd.f32 1.0, %v7036_v14  ;;  %7055 = vpow2.f32 %v5940_v13  ;;  %v5938_v3 = vmul.f32 -1.442695, %v9424_v49  ;;  %v4179_v23 = vpop.f32.mrb[36].mxu1  ;;  %v9986_v13 = vld [vmem:[#allocation31_spill] sm:$0xff] }
 0x34d   : > { %v7040_v61 = vpop.eup %7039  ;;  %7057 = vrcp.f32 %v4977_v48  ;;  %v4980_v31 = vadd.f32 1.0, %v7038_v56  ;;  %v5943_v40 = vmul.f32 -1.442695, %v9427_v1  ;;  %v9434_v55 = vadd.f32 %v9319_v18, %v4531_v2  ;;  %v4181_v9 = vpop.f32.mrb[37].mxu1 }
 0x34e   : > { %v7042_v47 = vpop.eup %7041  ;;  %6260 = vst [vmem:[%s9070_s7 + $0xa8] sm:$0xff] %v6188_v12   ;;  %7059 = vrcp.f32 %v4975_v46  ;;  %v4978_v16 = vadd.f32 1.0, %v7040_v61  ;;  %v4534_v30 = vadd.f32 %v4456_v62, %v9985_v33  ;;  %v6630_v63 = vpop.f32.mrb[22].mxu0  ;;  %v4448_v58 = vadd.f32 %v4447_v8, %v9342_v20  ;;  %v9988_v12 = vld [vmem:[#allocation113_spill] sm:$0xff] }
 0x34f   : > { %v7044_v4 = vpop.eup %7043  ;;  %7061 = vrcp.f32 %v4980_v31  ;;  %v4981_v7 = vadd.f32 1.0, %v7042_v47  ;;  %v4469_v41 = vadd.f32 %v6629_v27, %v4179_v23  ;;  %v4182_v44 = vpop.f32.mrb[38].mxu1  ;;  %v5941_v60 = vmul.f32 -1.442695, %v9434_v55 }
 0x350   : > { %v4463_v45 = vpop.f32.mrb[23].mxu0  ;;  %7063 = vrcp.f32 %v4978_v16  ;;  %v4979_v11 = vadd.f32 1.0, %v7044_v4  ;;  %v9440_v17 = vadd.f32 %v9319_v18, %v4534_v30  ;;  %v4184_v29 = vpop.f32.mrb[39].mxu1  ;;  %v4532_v19 = vadd.f32 %v4448_v58, %v9986_v13  ;;  %v9989_v30 = vld [vmem:[#allocation96_spill] sm:$0xff] }
 0x351   : > { %v7046_v21 = vpop.eup %7045  ;;  %7065 = vrcp.f32 %v4981_v7  ;;  %v4537_v39 = vadd.f32 %v4469_v41, %v8925_v37  ;;  %v4461_v32 = vadd.f32 %v4460_v43, %v9398_v54  ;;  %v4472_v22 = vadd.f32 %v6630_v63, %v4182_v44  ;;  %v9987_v54 = vld [vmem:[#allocation93_spill] sm:$0xff] }
 0x352   : > { %v7048_v20 = vpop.eup %7047  ;;  %v5163_v8 = vmul.f32 %v7046_v21, %v9312_v59  ;;  %7067 = vrcp.f32 %v4979_v11  ;;  %v5944_v50 = vmul.f32 -1.442695, %v9440_v17  ;;  %v9448_v38 = vadd.f32 %v9319_v18, %v4532_v19 }
 0x353   : > { %v7050_v52 = vpop.eup %7049  ;;  %7069 = vpow2.f32 %v5938_v3  ;;  %v9451_v36 = vadd.f32 %v9319_v18, %v4537_v39  ;;  %v4535_v62 = vadd.f32 %v4461_v32, %v9987_v54  ;;  %v4538_v46 = vadd.f32 %v4472_v22, %v9988_v12 }
 0x354   : > { %v7052_v34 = vpop.eup %7051  ;;  %v6183_v37 = vpack.c.bf16 %v5163_v8, %v9416_v6  ;;  %7071 = vpow2.f32 %v5943_v40  ;;  %v5942_v27 = vmul.f32 -1.442695, %v9448_v38  ;;  %v4464_v43 = vadd.f32 %v4463_v45, %v9409_v53 }
 0x355   : > { %v7054_v59 = vpop.eup %7053  ;;  %v4984_v14 = vadd.f32 1.0, %v7052_v34  ;;  %7073 = vpow2.f32 %v5941_v60  ;;  %v9458_v56 = vadd.f32 %v9319_v18, %v4535_v62  ;;  %v5947_v6 = vmul.f32 -1.442695, %v9451_v36 }
 0x356   : > { %v7056_v48 = vpop.eup %7055  ;;  %6259 = vst [vmem:[%s9070_s7 + $0xa0] sm:$0xff] %v6183_v37   ;;  %7075 = vpow2.f32 %v5944_v50  ;;  %v5168_v31 = vmul.f32 %v7048_v20, %v9322_v10  ;;  %v9467_v23 = vadd.f32 %v9319_v18, %v4538_v46  ;;  %v5166_v16 = vmul.f32 %v7050_v52, %v9327_v15 }
 0x357   : > { %v7058_v24 = vpop.eup %7057  ;;  %7077 = vrcp.f32 %v4984_v14  ;;  %v4985_v2 = vadd.f32 1.0, %v7056_v48  ;;  %v5945_v40 = vmul.f32 -1.442695, %v9458_v56  ;;  %v4536_v9 = vadd.f32 %v4464_v43, %v9989_v30 }
 0x358   : > { %v7060_v61 = vpop.eup %7059  ;;  %v5169_v3 = vmul.f32 %v7058_v24, %v9337_v51  ;;  %v4982_v10 = vadd.f32 1.0, %v7054_v59  ;;  %v5948_v51 = vmul.f32 -1.442695, %v9467_v23 }
 0x359   : > { %v7062_v47 = vpop.eup %7061  ;;  %v5167_v33 = vmul.f32 %v7060_v61, %v9349_v28  ;;  %7079 = vrcp.f32 %v4985_v2  ;;  %v9474_v58 = vadd.f32 %v9319_v18, %v4536_v9 }
 0x35a   : > { %v7064_v53 = vpop.eup %7063  ;;  %v6198_v63 = vpack.c.bf16 %v5169_v3, %v5168_v31  ;;  %7081 = vpow2.f32 %v5942_v27  ;;  %v5172_v15 = vmul.f32 %v7062_v47, %v9355_v42 }
 0x35b   : > { %v7066_v4 = vpop.eup %7065  ;;  %v6193_v7 = vpack.c.bf16 %v5167_v33, %v5166_v16  ;;  %7083 = vpow2.f32 %v5947_v6  ;;  %v5170_v45 = vmul.f32 %v7064_v53, %v9359_v25  ;;  %v5946_v60 = vmul.f32 -1.442695, %v9474_v58 }
 0x35c   : > { %v7068_v41 = vpop.eup %7067  ;;  %6262 = vst [vmem:[%s9070_s7 + $0xb8] sm:$0xff] %v6198_v63   ;;  %v5173_v28 = vmul.f32 %v7066_v4, %v9378_v57  ;;  %7085 = vpow2.f32 %v5945_v40 }
 0x35d   : > { %v7070_v44 = vpop.eup %7069  ;;  %6261 = vst [vmem:[%s9070_s7 + $0xb0] sm:$0xff] %v6193_v7   ;;  %v5171_v11 = vmul.f32 %v7068_v41, %v9383_v35  ;;  %7087 = vpow2.f32 %v5948_v51 }
 0x35e   : > { %v7072_v18 = vpop.eup %7071  ;;  %v6208_v29 = vpack.c.bf16 %v5173_v28, %v5172_v15  ;;  %7089 = vrcp.f32 %v4982_v10  ;;  %v4983_v21 = vadd.f32 1.0, %v7070_v44 }
 0x35f   : > { %v7074_v13 = vpop.eup %7073  ;;  %v6203_v42 = vpack.c.bf16 %v5171_v11, %v5170_v45  ;;  %v4988_v19 = vadd.f32 1.0, %v7072_v18  ;;  %7091 = vpow2.f32 %v5946_v60 }
 0x360   : > { %v7076_v57 = vpop.eup %7075  ;;  %6264 = vst [vmem:[%s9070_s7 + $0xc8] sm:$0xff] %v6208_v29   ;;  %7093 = vrcp.f32 %v4983_v21  ;;  %v4986_v25 = vadd.f32 1.0, %v7074_v13 }
 0x361   : > { %v7078_v39 = vpop.eup %7077  ;;  %6263 = vst [vmem:[%s9070_s7 + $0xc0] sm:$0xff] %v6203_v42   ;;  %7095 = vrcp.f32 %v4988_v19  ;;  %v4989_v32 = vadd.f32 1.0, %v7076_v57 }
 0x362   : > { %v5176_v8 = vmul.f32 %v7078_v39, %v9391_v5 }
 0x363   : > { %v7080_v35 = vpop.eup %7079  ;;  %7097 = vrcp.f32 %v4989_v32 }
 0x364   : > { %v7082_v20 = vpop.eup %7081  ;;  %v5177_v50 = vmul.f32 %v7080_v35, %v9404_v26  ;;  %7099 = vrcp.f32 %v4986_v25 }
 0x365   : > { %v7084_v22 = vpop.eup %7083  ;;  %v4987_v52 = vadd.f32 1.0, %v7082_v20 }
 0x366   : > { %v7086_v34 = vpop.eup %7085  ;;  %v6218_v37 = vpack.c.bf16 %v5177_v50, %v5176_v8  ;;  %v4992_v54 = vadd.f32 1.0, %v7084_v22 }
 0x367   : > { %v7088_v62 = vpop.eup %7087  ;;  %7101 = vrcp.f32 %v4987_v52  ;;  %v4990_v59 = vadd.f32 1.0, %v7086_v34 }
 0x368   : > { %v7090_v14 = vpop.eup %7089  ;;  %6266 = vst [vmem:[%s9070_s7 + $0xd8] sm:$0xff] %v6218_v37   ;;  %7103 = vrcp.f32 %v4992_v54  ;;  %v4993_v48 = vadd.f32 1.0, %v7088_v62 }
 0x369   : > { %v7092_v27 = vpop.eup %7091  ;;  %7105 = vrcp.f32 %v4990_v59  ;;  %v5174_v46 = vmul.f32 %v7090_v14, %v9401_v0 }
 0x36a   : > { %v7094_v12 = vpop.eup %7093  ;;  %7107 = vrcp.f32 %v4993_v48  ;;  %v4991_v5 = vadd.f32 1.0, %v7092_v27 }
 0x36b   : > { %v7096_v26 = vpop.eup %7095  ;;  %v5175_v24 = vmul.f32 %v7094_v12, %v9424_v49 }
 0x36c   : > { %7109 = vrcp.f32 %v4991_v5  ;;  %v5180_v43 = vmul.f32 %v7096_v26, %v9427_v1 }
 0x36d   : > { %v7098_v2 = vpop.eup %7097  ;;  %v6213_v6 = vpack.c.bf16 %v5175_v24, %v5174_v46 }
 0x36e   : > { %v5181_v61 = vmul.f32 %v7098_v2, %v9440_v17  ;;  %v7100_v31 = vpop.eup %7099 }
 0x36f   : > { %6265 = vst [vmem:[%s9070_s7 + $0xd0] sm:$0xff] %v6213_v6   ;;  %v5178_v16 = vmul.f32 %v7100_v31, %v9434_v55 }
 0x370   : > { %v6228_v3 = vpack.c.bf16 %v5181_v61, %v5180_v43 }
 0x371   : > { %v7102_v40 = vpop.eup %7101 }
 0x372   : > { %v7104_v47 = vpop.eup %7103  ;;  %6268 = vst [vmem:[%s9070_s7 + $0xe8] sm:$0xff] %v6228_v3   ;;  %v5179_v0 = vmul.f32 %v7102_v40, %v9448_v38 }
 0x373   : > { %v7106_v49 = vpop.eup %7105  ;;  %v5184_v1 = vmul.f32 %v7104_v47, %v9451_v36 }
 0x374   : > { %v7108_v33 = vpop.eup %7107  ;;  %v6223_v30 = vpack.c.bf16 %v5179_v0, %v5178_v16  ;;  %v5182_v53 = vmul.f32 %v7106_v49, %v9458_v56 }
 0x375   : > { %v5185_v9 = vmul.f32 %v7108_v33, %v9467_v23 }
 0x376   : > { %v7110_v17 = vpop.eup %7109  ;;  %6267 = vst [vmem:[%s9070_s7 + $0xe0] sm:$0xff] %v6223_v30  }
 0x377   : > { %v6238_v63 = vpack.c.bf16 %v5185_v9, %v5184_v1  ;;  %v5183_v10 = vmul.f32 %v7110_v17, %v9474_v58 }
 0x379   : > { %6270 = vst [vmem:[%s9070_s7 + $0xf8] sm:$0xff] %v6238_v63   ;;  %v6233_v51 = vpack.c.bf16 %v5183_v10, %v5182_v53 }
 0x37b   : > { %6269 = vst [vmem:[%s9070_s7 + $0xf0] sm:$0xff] %v6233_v51  }
 0x37c PF: > { %s13_s14 = sadd.s32 1, %s7163_s14   ;;  %s9990_s12 = smov %s7159_s13 }
 0x37d   : > { %p10_p5 = scmp.ge.s32.totalorder %s13_s14, 4   ;;  %s9991_s13 = smov %s9993_s15 }
 0x37f   :  { %12 = sbr.rel (!%p10_p5) target bundleno = 2 (0x2), region = 64 }

</bundles_post_ra>
